<compile_context>
chip_gen: v5e
topology: v5e:2x2
jax: 0.10.0
libtpu: 0.0.40
codegen_flags: <defaults>
</compile_context>

<pallas_src>
import jax
import jax.numpy as jnp
from jax.experimental import pallas as pl
from jax.experimental.pallas import tpu as pltpu

_TARGET_ROWS = 1024
# (output parity a, tap offset dh) -> transposed-conv kernel tap index (stride=2, pad=1, K=4)
_KTAP = {(0, 0): 3, (0, 1): 1, (1, 0): 2, (1, 1): 0}


def _round_up(x, m):
    return (x + m - 1) // m * m


def _build_w9(w_pt, Cout, Cp):
    # w_pt: (Cin, Cout, 1, 4, 4)  (PyTorch ConvTranspose3d layout)
    # returns (9, Cin, 4*Cp): for shift (s, t), columns [(a*2+b)*Cp : +Cout] hold the
    # tap weights contributing to output parity (a, b); everything else is zero.
    Cin = w_pt.shape[0]
    F = 4 * Cp
    mats = []
    for s in range(3):
        for t in range(3):
            m = jnp.zeros((Cin, F), jnp.float32)
            for a in range(2):
                dh = s - a
                if dh not in (0, 1):
                    continue
                kh = _KTAP[(a, dh)]
                for b in range(2):
                    dw = t - b
                    if dw not in (0, 1):
                        continue
                    kw = _KTAP[(b, dw)]
                    col = (a * 2 + b) * Cp
                    m = m.at[:, col:col + Cout].set(
                        w_pt[:, :, 0, kh, kw].astype(jnp.float32))
            mats.append(m)
    return jnp.stack(mats, axis=0)


def _make_kernel(Tb, Pp, R, Mrows, Wp2):
    def kernel(x_ref, w_ref, b_ref, o_ref):
        # x_ref: (Tb*Pp, Cin) bf16   w_ref: (9, Cin, F) bf16
        # b_ref: (1, F) f32          o_ref: (Tb*R, F)
        bias = b_ref[...]
        for i in range(Tb):                      # static unroll over images in the tile
            base = i * Pp
            acc = None
            for s in range(3):                   # 9 shifted-slice matmuls, f32 accumulate
                for t in range(3):
                    start = base + s * Wp2 + t
                    xs = x_ref[start:start + Mrows, :]
                    contrib = jnp.dot(xs, w_ref[3 * s + t],
                                      preferred_element_type=jnp.float32)
                    acc = contrib if acc is None else acc + contrib
            acc = acc + bias
            o_ref[i * R:i * R + Mrows, :] = jnp.maximum(acc, 0.0).astype(o_ref.dtype)
    return kernel


def deconv3d_block(x, w_pt, bias, *, compute_dtype=jnp.bfloat16):
    # x: (N, Cin, D, H, W) -> (N, Cout, D, 2H, 2W)   (PyTorch semantics)
    N, Cin, D, H, W = x.shape
    Cout = w_pt.shape[1]
    B = N * D
    Wp2 = W + 2
    P = (H + 2) * Wp2            # rows per padded image
    Mrows = H * Wp2              # rows per image in the (junk-column) output slab
    Pp = _round_up(P + 2, 8)     # +2 slack rows so the (s=2,t=2) slice never leaves the image
    R = _round_up(Mrows, 8)
    Cp = _round_up(Cout, 32)     # 4*Cp is a multiple of 128 -> lane-dense stores
    F = 4 * Cp

    Tb = min(B, max(1, min(8, _TARGET_ROWS // max(Mrows, 1))))
    B_pad = _round_up(B, Tb)
    n_blocks = B_pad // Tb

    # ---- input prep: one fused pass over x (channels-last transpose + pads + bf16 cast) ----
    x_cl = jnp.transpose(x, (0, 2, 3, 4, 1)).reshape(B, H, W, Cin)
    x_cl = jnp.pad(x_cl, ((0, B_pad - B), (1, 1), (1, 1), (0, 0)))
    x_flat = x_cl.reshape(B_pad, P, Cin)
    x_flat = jnp.pad(x_flat, ((0, 0), (0, Pp - P), (0, 0)))
    x_flat = x_flat.reshape(B_pad * Pp, Cin).astype(compute_dtype)

    w9 = _build_w9(w_pt, Cout, Cp).astype(compute_dtype)                  # (9, Cin, F)
    b4 = jnp.zeros((4, Cp), jnp.float32).at[:, :Cout].set(
        bias.astype(jnp.float32)[None, :]).reshape(1, F)

    # TODO(synk): for very large Cin/Cout, add K/N grid tiling (P3 accumulator) so the
    # resident (9, Cin, 4*Cp) weight and the f32 accumulator stay within v7x's 64 MiB VMEM.
    out_flat = pl.pallas_call(
        _make_kernel(Tb, Pp, R, Mrows, Wp2),
        out_shape=jax.ShapeDtypeStruct((B_pad * R, F), x.dtype),
        grid=(n_blocks,),
        in_specs=[
            pl.BlockSpec((Tb * Pp, Cin), lambda n: (n, 0)),
            pl.BlockSpec((9, Cin, F), lambda n: (0, 0, 0)),   # resident weights
            pl.BlockSpec((1, F), lambda n: (0, 0)),           # resident bias
        ],
        out_specs=pl.BlockSpec((Tb * R, F), lambda n: (n, 0)),
        compiler_params=pltpu.CompilerParams(
            dimension_semantics=("parallel",),
            vmem_limit_bytes=48 * 1024 * 1024),
    )(x_flat, w9, b4)

    # ---- interleave back to NCDHW (slices + one transpose, fused by XLA) ----
    out = out_flat.reshape(B_pad, R, 4, Cp)[:B, :Mrows, :, :Cout]
    out = out.reshape(B, H, Wp2, 4, Cout)[:, :, :W]
    out = out.reshape(N, D, H, W, 2, 2, Cout)
    out = jnp.transpose(out, (0, 6, 1, 2, 4, 3, 5))           # (N, Cout, D, H, 2, W, 2)
    return out.reshape(N, Cout, D, 2 * H, 2 * W)


def _ref_forward(x, w_pt, bias):
    # pure-JAX reference: transposed conv == dilated conv with flipped kernel
    K, s, p = 4, 2, 1
    k = jnp.transpose(w_pt, (1, 0, 2, 3, 4))
    k = jnp.flip(k, axis=(3, 4))
    y = jax.lax.conv_general_dilated(
        x, k, window_strides=(1, 1, 1),
        padding=[(0, 0), (K - 1 - p, K - 1 - p), (K - 1 - p, K - 1 - p)],
        lhs_dilation=(1, s, s),
        dimension_numbers=('NCDHW', 'OIDHW', 'NCDHW'))
    y = y + bias[None, :, None, None, None]
    return jnp.maximum(y, 0.0)


if __name__ == "__main__":
    N, Cin, Cout, D, H, W = 2, 4, 8, 3, 8, 8
    key = jax.random.PRNGKey(0)
    kx, kw, kb = jax.random.split(key, 3)
    x = jax.random.normal(kx, (N, Cin, D, H, W), jnp.float32)
    # ConvTranspose3d weight layout: (in_channels, out_channels, kD, kH, kW)
    w_pt = jax.random.normal(kw, (Cin, Cout, 1, 4, 4), jnp.float32) * 0.1
    bias = jax.random.normal(kb, (Cout,), jnp.float32) * 0.1

    y = deconv3d_block(x, w_pt, bias)
    y = jax.block_until_ready(y)

    y_ref = _ref_forward(x, w_pt, bias)
    assert y.shape == (N, Cout, D, 2 * H, 2 * W), y.shape
    # bf16 MXU operands with f32 accumulation -> loose tolerance vs. the f32 reference
    assert jnp.allclose(y, y_ref, atol=5e-2, rtol=5e-2), \
        float(jnp.max(jnp.abs(y - y_ref)))
    print("KERNEL_OK")
</pallas_src>

<mosaic_0001>
module attributes {stable_mosaic.version = 11 : i64} {
  func.func @kernel(%arg0: i32, %arg1: memref<624x4xbf16, #tpu.memory_space<vmem>>, %arg2: memref<9x4x128xbf16, #tpu.memory_space<vmem>>, %arg3: memref<1x128xf32, #tpu.memory_space<vmem>>, %arg4: memref<480x128xf32, #tpu.memory_space<vmem>>) attributes {dimension_semantics = [#tpu.dimension_semantics<parallel>], iteration_bounds = array<i64: 1>, scalar_prefetch = 0 : i64, scratch_operands = 0 : i64, tpu.core_type = #tpu.core_type<tc>, window_params = [{transform_indices = @transform_0, window_bounds = array<i64: 624, 4>}, {pipeline_mode = #tpu.pipeline_mode<synchronous>, transform_indices = @transform_1, window_bounds = array<i64: 9, 4, 128>}, {pipeline_mode = #tpu.pipeline_mode<synchronous>, transform_indices = @transform_2, window_bounds = array<i64: 1, 128>}, {transform_indices = @transform_3, window_bounds = array<i64: 480, 128>}]} {
    %c0 = arith.constant 0 : index
    %c0_0 = arith.constant 0 : index
    %0 = vector.load %arg3[%c0, %c0_0] : memref<1x128xf32, #tpu.memory_space<vmem>>, vector<1x128xf32>
    %c0_1 = arith.constant 0 : index
    %c0_2 = arith.constant 0 : index
    %1 = vector.load %arg1[%c0_1, %c0_2] : memref<624x4xbf16, #tpu.memory_space<vmem>>, vector<80x4xbf16>
    %c0_3 = arith.constant 0 : index
    %c0_4 = arith.constant 0 : index
    %c0_5 = arith.constant 0 : index
    %2 = vector.load %arg2[%c0_3, %c0_4, %c0_5] : memref<9x4x128xbf16, #tpu.memory_space<vmem>>, vector<1x4x128xbf16>
    %3 = vector.shape_cast %2 : vector<1x4x128xbf16> to vector<4x128xbf16>
    %cst = arith.constant dense<0.000000e+00> : vector<80x128xf32>
    %4 = tpu.matmul %1, %3, %cst {dimension_numbers = #tpu.dot_dimension_numbers<[1], [0], [0], [1], [0, 0, 1, 1], [], []>} : vector<80x4xbf16>, vector<4x128xbf16>, vector<80x128xf32> -> vector<80x128xf32>
    %c1 = arith.constant 1 : index
    %c0_6 = arith.constant 0 : index
    %5 = vector.load %arg1[%c1, %c0_6] : memref<624x4xbf16, #tpu.memory_space<vmem>>, vector<80x4xbf16>
    %c1_7 = arith.constant 1 : index
    %c0_8 = arith.constant 0 : index
    %c0_9 = arith.constant 0 : index
    %6 = vector.load %arg2[%c1_7, %c0_8, %c0_9] : memref<9x4x128xbf16, #tpu.memory_space<vmem>>, vector<1x4x128xbf16>
    %7 = vector.shape_cast %6 : vector<1x4x128xbf16> to vector<4x128xbf16>
    %cst_10 = arith.constant dense<0.000000e+00> : vector<80x128xf32>
    %8 = tpu.matmul %5, %7, %cst_10 {dimension_numbers = #tpu.dot_dimension_numbers<[1], [0], [0], [1], [0, 0, 1, 1], [], []>} : vector<80x4xbf16>, vector<4x128xbf16>, vector<80x128xf32> -> vector<80x128xf32>
    %9 = arith.addf %4, %8 : vector<80x128xf32>
    %c2 = arith.constant 2 : index
    %c0_11 = arith.constant 0 : index
    %10 = vector.load %arg1[%c2, %c0_11] : memref<624x4xbf16, #tpu.memory_space<vmem>>, vector<80x4xbf16>
    %c2_12 = arith.constant 2 : index
    %c0_13 = arith.constant 0 : index
    %c0_14 = arith.constant 0 : index
    %11 = vector.load %arg2[%c2_12, %c0_13, %c0_14] : memref<9x4x128xbf16, #tpu.memory_space<vmem>>, vector<1x4x128xbf16>
    %12 = vector.shape_cast %11 : vector<1x4x128xbf16> to vector<4x128xbf16>
    %cst_15 = arith.constant dense<0.000000e+00> : vector<80x128xf32>
    %13 = tpu.matmul %10, %12, %cst_15 {dimension_numbers = #tpu.dot_dimension_numbers<[1], [0], [0], [1], [0, 0, 1, 1], [], []>} : vector<80x4xbf16>, vector<4x128xbf16>, vector<80x128xf32> -> vector<80x128xf32>
    %14 = arith.addf %9, %13 : vector<80x128xf32>
    %c10 = arith.constant 10 : index
    %c0_16 = arith.constant 0 : index
    %15 = vector.load %arg1[%c10, %c0_16] : memref<624x4xbf16, #tpu.memory_space<vmem>>, vector<80x4xbf16>
    %c3 = arith.constant 3 : index
    %c0_17 = arith.constant 0 : index
    %c0_18 = arith.constant 0 : index
    %16 = vector.load %arg2[%c3, %c0_17, %c0_18] : memref<9x4x128xbf16, #tpu.memory_space<vmem>>, vector<1x4x128xbf16>
    %17 = vector.shape_cast %16 : vector<1x4x128xbf16> to vector<4x128xbf16>
    %cst_19 = arith.constant dense<0.000000e+00> : vector<80x128xf32>
    %18 = tpu.matmul %15, %17, %cst_19 {dimension_numbers = #tpu.dot_dimension_numbers<[1], [0], [0], [1], [0, 0, 1, 1], [], []>} : vector<80x4xbf16>, vector<4x128xbf16>, vector<80x128xf32> -> vector<80x128xf32>
    %19 = arith.addf %14, %18 : vector<80x128xf32>
    %c11 = arith.constant 11 : index
    %c0_20 = arith.constant 0 : index
    %20 = vector.load %arg1[%c11, %c0_20] : memref<624x4xbf16, #tpu.memory_space<vmem>>, vector<80x4xbf16>
    %c4 = arith.constant 4 : index
    %c0_21 = arith.constant 0 : index
    %c0_22 = arith.constant 0 : index
    %21 = vector.load %arg2[%c4, %c0_21, %c0_22] : memref<9x4x128xbf16, #tpu.memory_space<vmem>>, vector<1x4x128xbf16>
    %22 = vector.shape_cast %21 : vector<1x4x128xbf16> to vector<4x128xbf16>
    %cst_23 = arith.constant dense<0.000000e+00> : vector<80x128xf32>
    %23 = tpu.matmul %20, %22, %cst_23 {dimension_numbers = #tpu.dot_dimension_numbers<[1], [0], [0], [1], [0, 0, 1, 1], [], []>} : vector<80x4xbf16>, vector<4x128xbf16>, vector<80x128xf32> -> vector<80x128xf32>
    %24 = arith.addf %19, %23 : vector<80x128xf32>
    %c12 = arith.constant 12 : index
    %c0_24 = arith.constant 0 : index
    %25 = vector.load %arg1[%c12, %c0_24] : memref<624x4xbf16, #tpu.memory_space<vmem>>, vector<80x4xbf16>
    %c5 = arith.constant 5 : index
    %c0_25 = arith.constant 0 : index
    %c0_26 = arith.constant 0 : index
    %26 = vector.load %arg2[%c5, %c0_25, %c0_26] : memref<9x4x128xbf16, #tpu.memory_space<vmem>>, vector<1x4x128xbf16>
    %27 = vector.shape_cast %26 : vector<1x4x128xbf16> to vector<4x128xbf16>
    %cst_27 = arith.constant dense<0.000000e+00> : vector<80x128xf32>
    %28 = tpu.matmul %25, %27, %cst_27 {dimension_numbers = #tpu.dot_dimension_numbers<[1], [0], [0], [1], [0, 0, 1, 1], [], []>} : vector<80x4xbf16>, vector<4x128xbf16>, vector<80x128xf32> -> vector<80x128xf32>
    %29 = arith.addf %24, %28 : vector<80x128xf32>
    %c20 = arith.constant 20 : index
    %c0_28 = arith.constant 0 : index
    %30 = vector.load %arg1[%c20, %c0_28] : memref<624x4xbf16, #tpu.memory_space<vmem>>, vector<80x4xbf16>
    %c6 = arith.constant 6 : index
    %c0_29 = arith.constant 0 : index
    %c0_30 = arith.constant 0 : index
    %31 = vector.load %arg2[%c6, %c0_29, %c0_30] : memref<9x4x128xbf16, #tpu.memory_space<vmem>>, vector<1x4x128xbf16>
    %32 = vector.shape_cast %31 : vector<1x4x128xbf16> to vector<4x128xbf16>
    %cst_31 = arith.constant dense<0.000000e+00> : vector<80x128xf32>
    %33 = tpu.matmul %30, %32, %cst_31 {dimension_numbers = #tpu.dot_dimension_numbers<[1], [0], [0], [1], [0, 0, 1, 1], [], []>} : vector<80x4xbf16>, vector<4x128xbf16>, vector<80x128xf32> -> vector<80x128xf32>
    %34 = arith.addf %29, %33 : vector<80x128xf32>
    %c21 = arith.constant 21 : index
    %c0_32 = arith.constant 0 : index
    %35 = vector.load %arg1[%c21, %c0_32] : memref<624x4xbf16, #tpu.memory_space<vmem>>, vector<80x4xbf16>
    %c7 = arith.constant 7 : index
    %c0_33 = arith.constant 0 : index
    %c0_34 = arith.constant 0 : index
    %36 = vector.load %arg2[%c7, %c0_33, %c0_34] : memref<9x4x128xbf16, #tpu.memory_space<vmem>>, vector<1x4x128xbf16>
    %37 = vector.shape_cast %36 : vector<1x4x128xbf16> to vector<4x128xbf16>
    %cst_35 = arith.constant dense<0.000000e+00> : vector<80x128xf32>
    %38 = tpu.matmul %35, %37, %cst_35 {dimension_numbers = #tpu.dot_dimension_numbers<[1], [0], [0], [1], [0, 0, 1, 1], [], []>} : vector<80x4xbf16>, vector<4x128xbf16>, vector<80x128xf32> -> vector<80x128xf32>
    %39 = arith.addf %34, %38 : vector<80x128xf32>
    %c22 = arith.constant 22 : index
    %c0_36 = arith.constant 0 : index
    %40 = vector.load %arg1[%c22, %c0_36] : memref<624x4xbf16, #tpu.memory_space<vmem>>, vector<80x4xbf16>
    %c8 = arith.constant 8 : index
    %c0_37 = arith.constant 0 : index
    %c0_38 = arith.constant 0 : index
    %41 = vector.load %arg2[%c8, %c0_37, %c0_38] : memref<9x4x128xbf16, #tpu.memory_space<vmem>>, vector<1x4x128xbf16>
    %42 = vector.shape_cast %41 : vector<1x4x128xbf16> to vector<4x128xbf16>
    %cst_39 = arith.constant dense<0.000000e+00> : vector<80x128xf32>
    %43 = tpu.matmul %40, %42, %cst_39 {dimension_numbers = #tpu.dot_dimension_numbers<[1], [0], [0], [1], [0, 0, 1, 1], [], []>} : vector<80x4xbf16>, vector<4x128xbf16>, vector<80x128xf32> -> vector<80x128xf32>
    %44 = arith.addf %39, %43 : vector<80x128xf32>
    %45 = vector.broadcast %0 : vector<1x128xf32> to vector<80x128xf32>
    %46 = arith.addf %44, %45 : vector<80x128xf32>
    %cst_40 = arith.constant 0.000000e+00 : f32
    %47 = vector.broadcast %cst_40 : f32 to vector<80x128xf32>
    %48 = arith.maximumf %46, %47 : vector<80x128xf32>
    %c0_41 = arith.constant 0 : index
    %c0_42 = arith.constant 0 : index
    %49 = vector.load %arg4[%c0_41, %c0_42] : memref<480x128xf32, #tpu.memory_space<vmem>>, vector<80x128xf32>
    tpu.vector_store %arg4[%c0_41, %c0_42], %48 {strides = array<i32>} : memref<480x128xf32, #tpu.memory_space<vmem>>, vector<80x128xf32>,
    %c104 = arith.constant 104 : index
    %c0_43 = arith.constant 0 : index
    %50 = vector.load %arg1[%c104, %c0_43] : memref<624x4xbf16, #tpu.memory_space<vmem>>, vector<80x4xbf16>
    %c0_44 = arith.constant 0 : index
    %c0_45 = arith.constant 0 : index
    %c0_46 = arith.constant 0 : index
    %51 = vector.load %arg2[%c0_44, %c0_45, %c0_46] : memref<9x4x128xbf16, #tpu.memory_space<vmem>>, vector<1x4x128xbf16>
    %52 = vector.shape_cast %51 : vector<1x4x128xbf16> to vector<4x128xbf16>
    %cst_47 = arith.constant dense<0.000000e+00> : vector<80x128xf32>
    %53 = tpu.matmul %50, %52, %cst_47 {dimension_numbers = #tpu.dot_dimension_numbers<[1], [0], [0], [1], [0, 0, 1, 1], [], []>} : vector<80x4xbf16>, vector<4x128xbf16>, vector<80x128xf32> -> vector<80x128xf32>
    %c105 = arith.constant 105 : index
    %c0_48 = arith.constant 0 : index
    %54 = vector.load %arg1[%c105, %c0_48] : memref<624x4xbf16, #tpu.memory_space<vmem>>, vector<80x4xbf16>
    %c1_49 = arith.constant 1 : index
    %c0_50 = arith.constant 0 : index
    %c0_51 = arith.constant 0 : index
    %55 = vector.load %arg2[%c1_49, %c0_50, %c0_51] : memref<9x4x128xbf16, #tpu.memory_space<vmem>>, vector<1x4x128xbf16>
    %56 = vector.shape_cast %55 : vector<1x4x128xbf16> to vector<4x128xbf16>
    %cst_52 = arith.constant dense<0.000000e+00> : vector<80x128xf32>
    %57 = tpu.matmul %54, %56, %cst_52 {dimension_numbers = #tpu.dot_dimension_numbers<[1], [0], [0], [1], [0, 0, 1, 1], [], []>} : vector<80x4xbf16>, vector<4x128xbf16>, vector<80x128xf32> -> vector<80x128xf32>
    %58 = arith.addf %53, %57 : vector<80x128xf32>
    %c106 = arith.constant 106 : index
    %c0_53 = arith.constant 0 : index
    %59 = vector.load %arg1[%c106, %c0_53] : memref<624x4xbf16, #tpu.memory_space<vmem>>, vector<80x4xbf16>
    %c2_54 = arith.constant 2 : index
    %c0_55 = arith.constant 0 : index
    %c0_56 = arith.constant 0 : index
    %60 = vector.load %arg2[%c2_54, %c0_55, %c0_56] : memref<9x4x128xbf16, #tpu.memory_space<vmem>>, vector<1x4x128xbf16>
    %61 = vector.shape_cast %60 : vector<1x4x128xbf16> to vector<4x128xbf16>
    %cst_57 = arith.constant dense<0.000000e+00> : vector<80x128xf32>
    %62 = tpu.matmul %59, %61, %cst_57 {dimension_numbers = #tpu.dot_dimension_numbers<[1], [0], [0], [1], [0, 0, 1, 1], [], []>} : vector<80x4xbf16>, vector<4x128xbf16>, vector<80x128xf32> -> vector<80x128xf32>
    %63 = arith.addf %58, %62 : vector<80x128xf32>
    %c114 = arith.constant 114 : index
    %c0_58 = arith.constant 0 : index
    %64 = vector.load %arg1[%c114, %c0_58] : memref<624x4xbf16, #tpu.memory_space<vmem>>, vector<80x4xbf16>
    %c3_59 = arith.constant 3 : index
    %c0_60 = arith.constant 0 : index
    %c0_61 = arith.constant 0 : index
    %65 = vector.load %arg2[%c3_59, %c0_60, %c0_61] : memref<9x4x128xbf16, #tpu.memory_space<vmem>>, vector<1x4x128xbf16>
    %66 = vector.shape_cast %65 : vector<1x4x128xbf16> to vector<4x128xbf16>
    %cst_62 = arith.constant dense<0.000000e+00> : vector<80x128xf32>
    %67 = tpu.matmul %64, %66, %cst_62 {dimension_numbers = #tpu.dot_dimension_numbers<[1], [0], [0], [1], [0, 0, 1, 1], [], []>} : vector<80x4xbf16>, vector<4x128xbf16>, vector<80x128xf32> -> vector<80x128xf32>
    %68 = arith.addf %63, %67 : vector<80x128xf32>
    %c115 = arith.constant 115 : index
    %c0_63 = arith.constant 0 : index
    %69 = vector.load %arg1[%c115, %c0_63] : memref<624x4xbf16, #tpu.memory_space<vmem>>, vector<80x4xbf16>
    %c4_64 = arith.constant 4 : index
    %c0_65 = arith.constant 0 : index
    %c0_66 = arith.constant 0 : index
    %70 = vector.load %arg2[%c4_64, %c0_65, %c0_66] : memref<9x4x128xbf16, #tpu.memory_space<vmem>>, vector<1x4x128xbf16>
    %71 = vector.shape_cast %70 : vector<1x4x128xbf16> to vector<4x128xbf16>
    %cst_67 = arith.constant dense<0.000000e+00> : vector<80x128xf32>
    %72 = tpu.matmul %69, %71, %cst_67 {dimension_numbers = #tpu.dot_dimension_numbers<[1], [0], [0], [1], [0, 0, 1, 1], [], []>} : vector<80x4xbf16>, vector<4x128xbf16>, vector<80x128xf32> -> vector<80x128xf32>
    %73 = arith.addf %68, %72 : vector<80x128xf32>
    %c116 = arith.constant 116 : index
    %c0_68 = arith.constant 0 : index
    %74 = vector.load %arg1[%c116, %c0_68] : memref<624x4xbf16, #tpu.memory_space<vmem>>, vector<80x4xbf16>
    %c5_69 = arith.constant 5 : index
    %c0_70 = arith.constant 0 : index
    %c0_71 = arith.constant 0 : index
    %75 = vector.load %arg2[%c5_69, %c0_70, %c0_71] : memref<9x4x128xbf16, #tpu.memory_space<vmem>>, vector<1x4x128xbf16>
    %76 = vector.shape_cast %75 : vector<1x4x128xbf16> to vector<4x128xbf16>
    %cst_72 = arith.constant dense<0.000000e+00> : vector<80x128xf32>
    %77 = tpu.matmul %74, %76, %cst_72 {dimension_numbers = #tpu.dot_dimension_numbers<[1], [0], [0], [1], [0, 0, 1, 1], [], []>} : vector<80x4xbf16>, vector<4x128xbf16>, vector<80x128xf32> -> vector<80x128xf32>
    %78 = arith.addf %73, %77 : vector<80x128xf32>
    %c124 = arith.constant 124 : index
    %c0_73 = arith.constant 0 : index
    %79 = vector.load %arg1[%c124, %c0_73] : memref<624x4xbf16, #tpu.memory_space<vmem>>, vector<80x4xbf16>
    %c6_74 = arith.constant 6 : index
    %c0_75 = arith.constant 0 : index
    %c0_76 = arith.constant 0 : index
    %80 = vector.load %arg2[%c6_74, %c0_75, %c0_76] : memref<9x4x128xbf16, #tpu.memory_space<vmem>>, vector<1x4x128xbf16>
    %81 = vector.shape_cast %80 : vector<1x4x128xbf16> to vector<4x128xbf16>
    %cst_77 = arith.constant dense<0.000000e+00> : vector<80x128xf32>
    %82 = tpu.matmul %79, %81, %cst_77 {dimension_numbers = #tpu.dot_dimension_numbers<[1], [0], [0], [1], [0, 0, 1, 1], [], []>} : vector<80x4xbf16>, vector<4x128xbf16>, vector<80x128xf32> -> vector<80x128xf32>
    %83 = arith.addf %78, %82 : vector<80x128xf32>
    %c125 = arith.constant 125 : index
    %c0_78 = arith.constant 0 : index
    %84 = vector.load %arg1[%c125, %c0_78] : memref<624x4xbf16, #tpu.memory_space<vmem>>, vector<80x4xbf16>
    %c7_79 = arith.constant 7 : index
    %c0_80 = arith.constant 0 : index
    %c0_81 = arith.constant 0 : index
    %85 = vector.load %arg2[%c7_79, %c0_80, %c0_81] : memref<9x4x128xbf16, #tpu.memory_space<vmem>>, vector<1x4x128xbf16>
    %86 = vector.shape_cast %85 : vector<1x4x128xbf16> to vector<4x128xbf16>
    %cst_82 = arith.constant dense<0.000000e+00> : vector<80x128xf32>
    %87 = tpu.matmul %84, %86, %cst_82 {dimension_numbers = #tpu.dot_dimension_numbers<[1], [0], [0], [1], [0, 0, 1, 1], [], []>} : vector<80x4xbf16>, vector<4x128xbf16>, vector<80x128xf32> -> vector<80x128xf32>
    %88 = arith.addf %83, %87 : vector<80x128xf32>
    %c126 = arith.constant 126 : index
    %c0_83 = arith.constant 0 : index
    %89 = vector.load %arg1[%c126, %c0_83] : memref<624x4xbf16, #tpu.memory_space<vmem>>, vector<80x4xbf16>
    %c8_84 = arith.constant 8 : index
    %c0_85 = arith.constant 0 : index
    %c0_86 = arith.constant 0 : index
    %90 = vector.load %arg2[%c8_84, %c0_85, %c0_86] : memref<9x4x128xbf16, #tpu.memory_space<vmem>>, vector<1x4x128xbf16>
    %91 = vector.shape_cast %90 : vector<1x4x128xbf16> to vector<4x128xbf16>
    %cst_87 = arith.constant dense<0.000000e+00> : vector<80x128xf32>
    %92 = tpu.matmul %89, %91, %cst_87 {dimension_numbers = #tpu.dot_dimension_numbers<[1], [0], [0], [1], [0, 0, 1, 1], [], []>} : vector<80x4xbf16>, vector<4x128xbf16>, vector<80x128xf32> -> vector<80x128xf32>
    %93 = arith.addf %88, %92 : vector<80x128xf32>
    %94 = vector.broadcast %0 : vector<1x128xf32> to vector<80x128xf32>
    %95 = arith.addf %93, %94 : vector<80x128xf32>
    %cst_88 = arith.constant 0.000000e+00 : f32
    %96 = vector.broadcast %cst_88 : f32 to vector<80x128xf32>
    %97 = arith.maximumf %95, %96 : vector<80x128xf32>
    %c80 = arith.constant 80 : index
    %c0_89 = arith.constant 0 : index
    %98 = vector.load %arg4[%c80, %c0_89] : memref<480x128xf32, #tpu.memory_space<vmem>>, vector<80x128xf32>
    tpu.vector_store %arg4[%c80, %c0_89], %97 {strides = array<i32>} : memref<480x128xf32, #tpu.memory_space<vmem>>, vector<80x128xf32>,
    %c208 = arith.constant 208 : index
    %c0_90 = arith.constant 0 : index
    %99 = vector.load %arg1[%c208, %c0_90] : memref<624x4xbf16, #tpu.memory_space<vmem>>, vector<80x4xbf16>
    %c0_91 = arith.constant 0 : index
    %c0_92 = arith.constant 0 : index
    %c0_93 = arith.constant 0 : index
    %100 = vector.load %arg2[%c0_91, %c0_92, %c0_93] : memref<9x4x128xbf16, #tpu.memory_space<vmem>>, vector<1x4x128xbf16>
    %101 = vector.shape_cast %100 : vector<1x4x128xbf16> to vector<4x128xbf16>
    %cst_94 = arith.constant dense<0.000000e+00> : vector<80x128xf32>
    %102 = tpu.matmul %99, %101, %cst_94 {dimension_numbers = #tpu.dot_dimension_numbers<[1], [0], [0], [1], [0, 0, 1, 1], [], []>} : vector<80x4xbf16>, vector<4x128xbf16>, vector<80x128xf32> -> vector<80x128xf32>
    %c209 = arith.constant 209 : index
    %c0_95 = arith.constant 0 : index
    %103 = vector.load %arg1[%c209, %c0_95] : memref<624x4xbf16, #tpu.memory_space<vmem>>, vector<80x4xbf16>
    %c1_96 = arith.constant 1 : index
    %c0_97 = arith.constant 0 : index
    %c0_98 = arith.constant 0 : index
    %104 = vector.load %arg2[%c1_96, %c0_97, %c0_98] : memref<9x4x128xbf16, #tpu.memory_space<vmem>>, vector<1x4x128xbf16>
    %105 = vector.shape_cast %104 : vector<1x4x128xbf16> to vector<4x128xbf16>
    %cst_99 = arith.constant dense<0.000000e+00> : vector<80x128xf32>
    %106 = tpu.matmul %103, %105, %cst_99 {dimension_numbers = #tpu.dot_dimension_numbers<[1], [0], [0], [1], [0, 0, 1, 1], [], []>} : vector<80x4xbf16>, vector<4x128xbf16>, vector<80x128xf32> -> vector<80x128xf32>
    %107 = arith.addf %102, %106 : vector<80x128xf32>
    %c210 = arith.constant 210 : index
    %c0_100 = arith.constant 0 : index
    %108 = vector.load %arg1[%c210, %c0_100] : memref<624x4xbf16, #tpu.memory_space<vmem>>, vector<80x4xbf16>
    %c2_101 = arith.constant 2 : index
    %c0_102 = arith.constant 0 : index
    %c0_103 = arith.constant 0 : index
    %109 = vector.load %arg2[%c2_101, %c0_102, %c0_103] : memref<9x4x128xbf16, #tpu.memory_space<vmem>>, vector<1x4x128xbf16>
    %110 = vector.shape_cast %109 : vector<1x4x128xbf16> to vector<4x128xbf16>
    %cst_104 = arith.constant dense<0.000000e+00> : vector<80x128xf32>
    %111 = tpu.matmul %108, %110, %cst_104 {dimension_numbers = #tpu.dot_dimension_numbers<[1], [0], [0], [1], [0, 0, 1, 1], [], []>} : vector<80x4xbf16>, vector<4x128xbf16>, vector<80x128xf32> -> vector<80x128xf32>
    %112 = arith.addf %107, %111 : vector<80x128xf32>
    %c218 = arith.constant 218 : index
    %c0_105 = arith.constant 0 : index
    %113 = vector.load %arg1[%c218, %c0_105] : memref<624x4xbf16, #tpu.memory_space<vmem>>, vector<80x4xbf16>
    %c3_106 = arith.constant 3 : index
    %c0_107 = arith.constant 0 : index
    %c0_108 = arith.constant 0 : index
    %114 = vector.load %arg2[%c3_106, %c0_107, %c0_108] : memref<9x4x128xbf16, #tpu.memory_space<vmem>>, vector<1x4x128xbf16>
    %115 = vector.shape_cast %114 : vector<1x4x128xbf16> to vector<4x128xbf16>
    %cst_109 = arith.constant dense<0.000000e+00> : vector<80x128xf32>
    %116 = tpu.matmul %113, %115, %cst_109 {dimension_numbers = #tpu.dot_dimension_numbers<[1], [0], [0], [1], [0, 0, 1, 1], [], []>} : vector<80x4xbf16>, vector<4x128xbf16>, vector<80x128xf32> -> vector<80x128xf32>
    %117 = arith.addf %112, %116 : vector<80x128xf32>
    %c219 = arith.constant 219 : index
    %c0_110 = arith.constant 0 : index
    %118 = vector.load %arg1[%c219, %c0_110] : memref<624x4xbf16, #tpu.memory_space<vmem>>, vector<80x4xbf16>
    %c4_111 = arith.constant 4 : index
    %c0_112 = arith.constant 0 : index
    %c0_113 = arith.constant 0 : index
    %119 = vector.load %arg2[%c4_111, %c0_112, %c0_113] : memref<9x4x128xbf16, #tpu.memory_space<vmem>>, vector<1x4x128xbf16>
    %120 = vector.shape_cast %119 : vector<1x4x128xbf16> to vector<4x128xbf16>
    %cst_114 = arith.constant dense<0.000000e+00> : vector<80x128xf32>
    %121 = tpu.matmul %118, %120, %cst_114 {dimension_numbers = #tpu.dot_dimension_numbers<[1], [0], [0], [1], [0, 0, 1, 1], [], []>} : vector<80x4xbf16>, vector<4x128xbf16>, vector<80x128xf32> -> vector<80x128xf32>
    %122 = arith.addf %117, %121 : vector<80x128xf32>
    %c220 = arith.constant 220 : index
    %c0_115 = arith.constant 0 : index
    %123 = vector.load %arg1[%c220, %c0_115] : memref<624x4xbf16, #tpu.memory_space<vmem>>, vector<80x4xbf16>
    %c5_116 = arith.constant 5 : index
    %c0_117 = arith.constant 0 : index
    %c0_118 = arith.constant 0 : index
    %124 = vector.load %arg2[%c5_116, %c0_117, %c0_118] : memref<9x4x128xbf16, #tpu.memory_space<vmem>>, vector<1x4x128xbf16>
    %125 = vector.shape_cast %124 : vector<1x4x128xbf16> to vector<4x128xbf16>
    %cst_119 = arith.constant dense<0.000000e+00> : vector<80x128xf32>
    %126 = tpu.matmul %123, %125, %cst_119 {dimension_numbers = #tpu.dot_dimension_numbers<[1], [0], [0], [1], [0, 0, 1, 1], [], []>} : vector<80x4xbf16>, vector<4x128xbf16>, vector<80x128xf32> -> vector<80x128xf32>
    %127 = arith.addf %122, %126 : vector<80x128xf32>
    %c228 = arith.constant 228 : index
    %c0_120 = arith.constant 0 : index
    %128 = vector.load %arg1[%c228, %c0_120] : memref<624x4xbf16, #tpu.memory_space<vmem>>, vector<80x4xbf16>
    %c6_121 = arith.constant 6 : index
    %c0_122 = arith.constant 0 : index
    %c0_123 = arith.constant 0 : index
    %129 = vector.load %arg2[%c6_121, %c0_122, %c0_123] : memref<9x4x128xbf16, #tpu.memory_space<vmem>>, vector<1x4x128xbf16>
    %130 = vector.shape_cast %129 : vector<1x4x128xbf16> to vector<4x128xbf16>
    %cst_124 = arith.constant dense<0.000000e+00> : vector<80x128xf32>
    %131 = tpu.matmul %128, %130, %cst_124 {dimension_numbers = #tpu.dot_dimension_numbers<[1], [0], [0], [1], [0, 0, 1, 1], [], []>} : vector<80x4xbf16>, vector<4x128xbf16>, vector<80x128xf32> -> vector<80x128xf32>
    %132 = arith.addf %127, %131 : vector<80x128xf32>
    %c229 = arith.constant 229 : index
    %c0_125 = arith.constant 0 : index
    %133 = vector.load %arg1[%c229, %c0_125] : memref<624x4xbf16, #tpu.memory_space<vmem>>, vector<80x4xbf16>
    %c7_126 = arith.constant 7 : index
    %c0_127 = arith.constant 0 : index
    %c0_128 = arith.constant 0 : index
    %134 = vector.load %arg2[%c7_126, %c0_127, %c0_128] : memref<9x4x128xbf16, #tpu.memory_space<vmem>>, vector<1x4x128xbf16>
    %135 = vector.shape_cast %134 : vector<1x4x128xbf16> to vector<4x128xbf16>
    %cst_129 = arith.constant dense<0.000000e+00> : vector<80x128xf32>
    %136 = tpu.matmul %133, %135, %cst_129 {dimension_numbers = #tpu.dot_dimension_numbers<[1], [0], [0], [1], [0, 0, 1, 1], [], []>} : vector<80x4xbf16>, vector<4x128xbf16>, vector<80x128xf32> -> vector<80x128xf32>
    %137 = arith.addf %132, %136 : vector<80x128xf32>
    %c230 = arith.constant 230 : index
    %c0_130 = arith.constant 0 : index
    %138 = vector.load %arg1[%c230, %c0_130] : memref<624x4xbf16, #tpu.memory_space<vmem>>, vector<80x4xbf16>
    %c8_131 = arith.constant 8 : index
    %c0_132 = arith.constant 0 : index
    %c0_133 = arith.constant 0 : index
    %139 = vector.load %arg2[%c8_131, %c0_132, %c0_133] : memref<9x4x128xbf16, #tpu.memory_space<vmem>>, vector<1x4x128xbf16>
    %140 = vector.shape_cast %139 : vector<1x4x128xbf16> to vector<4x128xbf16>
    %cst_134 = arith.constant dense<0.000000e+00> : vector<80x128xf32>
    %141 = tpu.matmul %138, %140, %cst_134 {dimension_numbers = #tpu.dot_dimension_numbers<[1], [0], [0], [1], [0, 0, 1, 1], [], []>} : vector<80x4xbf16>, vector<4x128xbf16>, vector<80x128xf32> -> vector<80x128xf32>
    %142 = arith.addf %137, %141 : vector<80x128xf32>
    %143 = vector.broadcast %0 : vector<1x128xf32> to vector<80x128xf32>
    %144 = arith.addf %142, %143 : vector<80x128xf32>
    %cst_135 = arith.constant 0.000000e+00 : f32
    %145 = vector.broadcast %cst_135 : f32 to vector<80x128xf32>
    %146 = arith.maximumf %144, %145 : vector<80x128xf32>
    %c160 = arith.constant 160 : index
    %c0_136 = arith.constant 0 : index
    %147 = vector.load %arg4[%c160, %c0_136] : memref<480x128xf32, #tpu.memory_space<vmem>>, vector<80x128xf32>
    tpu.vector_store %arg4[%c160, %c0_136], %146 {strides = array<i32>} : memref<480x128xf32, #tpu.memory_space<vmem>>, vector<80x128xf32>,
    %c312 = arith.constant 312 : index
    %c0_137 = arith.constant 0 : index
    %148 = vector.load %arg1[%c312, %c0_137] : memref<624x4xbf16, #tpu.memory_space<vmem>>, vector<80x4xbf16>
    %c0_138 = arith.constant 0 : index
    %c0_139 = arith.constant 0 : index
    %c0_140 = arith.constant 0 : index
    %149 = vector.load %arg2[%c0_138, %c0_139, %c0_140] : memref<9x4x128xbf16, #tpu.memory_space<vmem>>, vector<1x4x128xbf16>
    %150 = vector.shape_cast %149 : vector<1x4x128xbf16> to vector<4x128xbf16>
    %cst_141 = arith.constant dense<0.000000e+00> : vector<80x128xf32>
    %151 = tpu.matmul %148, %150, %cst_141 {dimension_numbers = #tpu.dot_dimension_numbers<[1], [0], [0], [1], [0, 0, 1, 1], [], []>} : vector<80x4xbf16>, vector<4x128xbf16>, vector<80x128xf32> -> vector<80x128xf32>
    %c313 = arith.constant 313 : index
    %c0_142 = arith.constant 0 : index
    %152 = vector.load %arg1[%c313, %c0_142] : memref<624x4xbf16, #tpu.memory_space<vmem>>, vector<80x4xbf16>
    %c1_143 = arith.constant 1 : index
    %c0_144 = arith.constant 0 : index
    %c0_145 = arith.constant 0 : index
    %153 = vector.load %arg2[%c1_143, %c0_144, %c0_145] : memref<9x4x128xbf16, #tpu.memory_space<vmem>>, vector<1x4x128xbf16>
    %154 = vector.shape_cast %153 : vector<1x4x128xbf16> to vector<4x128xbf16>
    %cst_146 = arith.constant dense<0.000000e+00> : vector<80x128xf32>
    %155 = tpu.matmul %152, %154, %cst_146 {dimension_numbers = #tpu.dot_dimension_numbers<[1], [0], [0], [1], [0, 0, 1, 1], [], []>} : vector<80x4xbf16>, vector<4x128xbf16>, vector<80x128xf32> -> vector<80x128xf32>
    %156 = arith.addf %151, %155 : vector<80x128xf32>
    %c314 = arith.constant 314 : index
    %c0_147 = arith.constant 0 : index
    %157 = vector.load %arg1[%c314, %c0_147] : memref<624x4xbf16, #tpu.memory_space<vmem>>, vector<80x4xbf16>
    %c2_148 = arith.constant 2 : index
    %c0_149 = arith.constant 0 : index
    %c0_150 = arith.constant 0 : index
    %158 = vector.load %arg2[%c2_148, %c0_149, %c0_150] : memref<9x4x128xbf16, #tpu.memory_space<vmem>>, vector<1x4x128xbf16>
    %159 = vector.shape_cast %158 : vector<1x4x128xbf16> to vector<4x128xbf16>
    %cst_151 = arith.constant dense<0.000000e+00> : vector<80x128xf32>
    %160 = tpu.matmul %157, %159, %cst_151 {dimension_numbers = #tpu.dot_dimension_numbers<[1], [0], [0], [1], [0, 0, 1, 1], [], []>} : vector<80x4xbf16>, vector<4x128xbf16>, vector<80x128xf32> -> vector<80x128xf32>
    %161 = arith.addf %156, %160 : vector<80x128xf32>
    %c322 = arith.constant 322 : index
    %c0_152 = arith.constant 0 : index
    %162 = vector.load %arg1[%c322, %c0_152] : memref<624x4xbf16, #tpu.memory_space<vmem>>, vector<80x4xbf16>
    %c3_153 = arith.constant 3 : index
    %c0_154 = arith.constant 0 : index
    %c0_155 = arith.constant 0 : index
    %163 = vector.load %arg2[%c3_153, %c0_154, %c0_155] : memref<9x4x128xbf16, #tpu.memory_space<vmem>>, vector<1x4x128xbf16>
    %164 = vector.shape_cast %163 : vector<1x4x128xbf16> to vector<4x128xbf16>
    %cst_156 = arith.constant dense<0.000000e+00> : vector<80x128xf32>
    %165 = tpu.matmul %162, %164, %cst_156 {dimension_numbers = #tpu.dot_dimension_numbers<[1], [0], [0], [1], [0, 0, 1, 1], [], []>} : vector<80x4xbf16>, vector<4x128xbf16>, vector<80x128xf32> -> vector<80x128xf32>
    %166 = arith.addf %161, %165 : vector<80x128xf32>
    %c323 = arith.constant 323 : index
    %c0_157 = arith.constant 0 : index
    %167 = vector.load %arg1[%c323, %c0_157] : memref<624x4xbf16, #tpu.memory_space<vmem>>, vector<80x4xbf16>
    %c4_158 = arith.constant 4 : index
    %c0_159 = arith.constant 0 : index
    %c0_160 = arith.constant 0 : index
    %168 = vector.load %arg2[%c4_158, %c0_159, %c0_160] : memref<9x4x128xbf16, #tpu.memory_space<vmem>>, vector<1x4x128xbf16>
    %169 = vector.shape_cast %168 : vector<1x4x128xbf16> to vector<4x128xbf16>
    %cst_161 = arith.constant dense<0.000000e+00> : vector<80x128xf32>
    %170 = tpu.matmul %167, %169, %cst_161 {dimension_numbers = #tpu.dot_dimension_numbers<[1], [0], [0], [1], [0, 0, 1, 1], [], []>} : vector<80x4xbf16>, vector<4x128xbf16>, vector<80x128xf32> -> vector<80x128xf32>
    %171 = arith.addf %166, %170 : vector<80x128xf32>
    %c324 = arith.constant 324 : index
    %c0_162 = arith.constant 0 : index
    %172 = vector.load %arg1[%c324, %c0_162] : memref<624x4xbf16, #tpu.memory_space<vmem>>, vector<80x4xbf16>
    %c5_163 = arith.constant 5 : index
    %c0_164 = arith.constant 0 : index
    %c0_165 = arith.constant 0 : index
    %173 = vector.load %arg2[%c5_163, %c0_164, %c0_165] : memref<9x4x128xbf16, #tpu.memory_space<vmem>>, vector<1x4x128xbf16>
    %174 = vector.shape_cast %173 : vector<1x4x128xbf16> to vector<4x128xbf16>
    %cst_166 = arith.constant dense<0.000000e+00> : vector<80x128xf32>
    %175 = tpu.matmul %172, %174, %cst_166 {dimension_numbers = #tpu.dot_dimension_numbers<[1], [0], [0], [1], [0, 0, 1, 1], [], []>} : vector<80x4xbf16>, vector<4x128xbf16>, vector<80x128xf32> -> vector<80x128xf32>
    %176 = arith.addf %171, %175 : vector<80x128xf32>
    %c332 = arith.constant 332 : index
    %c0_167 = arith.constant 0 : index
    %177 = vector.load %arg1[%c332, %c0_167] : memref<624x4xbf16, #tpu.memory_space<vmem>>, vector<80x4xbf16>
    %c6_168 = arith.constant 6 : index
    %c0_169 = arith.constant 0 : index
    %c0_170 = arith.constant 0 : index
    %178 = vector.load %arg2[%c6_168, %c0_169, %c0_170] : memref<9x4x128xbf16, #tpu.memory_space<vmem>>, vector<1x4x128xbf16>
    %179 = vector.shape_cast %178 : vector<1x4x128xbf16> to vector<4x128xbf16>
    %cst_171 = arith.constant dense<0.000000e+00> : vector<80x128xf32>
    %180 = tpu.matmul %177, %179, %cst_171 {dimension_numbers = #tpu.dot_dimension_numbers<[1], [0], [0], [1], [0, 0, 1, 1], [], []>} : vector<80x4xbf16>, vector<4x128xbf16>, vector<80x128xf32> -> vector<80x128xf32>
    %181 = arith.addf %176, %180 : vector<80x128xf32>
    %c333 = arith.constant 333 : index
    %c0_172 = arith.constant 0 : index
    %182 = vector.load %arg1[%c333, %c0_172] : memref<624x4xbf16, #tpu.memory_space<vmem>>, vector<80x4xbf16>
    %c7_173 = arith.constant 7 : index
    %c0_174 = arith.constant 0 : index
    %c0_175 = arith.constant 0 : index
    %183 = vector.load %arg2[%c7_173, %c0_174, %c0_175] : memref<9x4x128xbf16, #tpu.memory_space<vmem>>, vector<1x4x128xbf16>
    %184 = vector.shape_cast %183 : vector<1x4x128xbf16> to vector<4x128xbf16>
    %cst_176 = arith.constant dense<0.000000e+00> : vector<80x128xf32>
    %185 = tpu.matmul %182, %184, %cst_176 {dimension_numbers = #tpu.dot_dimension_numbers<[1], [0], [0], [1], [0, 0, 1, 1], [], []>} : vector<80x4xbf16>, vector<4x128xbf16>, vector<80x128xf32> -> vector<80x128xf32>
    %186 = arith.addf %181, %185 : vector<80x128xf32>
    %c334 = arith.constant 334 : index
    %c0_177 = arith.constant 0 : index
    %187 = vector.load %arg1[%c334, %c0_177] : memref<624x4xbf16, #tpu.memory_space<vmem>>, vector<80x4xbf16>
    %c8_178 = arith.constant 8 : index
    %c0_179 = arith.constant 0 : index
    %c0_180 = arith.constant 0 : index
    %188 = vector.load %arg2[%c8_178, %c0_179, %c0_180] : memref<9x4x128xbf16, #tpu.memory_space<vmem>>, vector<1x4x128xbf16>
    %189 = vector.shape_cast %188 : vector<1x4x128xbf16> to vector<4x128xbf16>
    %cst_181 = arith.constant dense<0.000000e+00> : vector<80x128xf32>
    %190 = tpu.matmul %187, %189, %cst_181 {dimension_numbers = #tpu.dot_dimension_numbers<[1], [0], [0], [1], [0, 0, 1, 1], [], []>} : vector<80x4xbf16>, vector<4x128xbf16>, vector<80x128xf32> -> vector<80x128xf32>
    %191 = arith.addf %186, %190 : vector<80x128xf32>
    %192 = vector.broadcast %0 : vector<1x128xf32> to vector<80x128xf32>
    %193 = arith.addf %191, %192 : vector<80x128xf32>
    %cst_182 = arith.constant 0.000000e+00 : f32
    %194 = vector.broadcast %cst_182 : f32 to vector<80x128xf32>
    %195 = arith.maximumf %193, %194 : vector<80x128xf32>
    %c240 = arith.constant 240 : index
    %c0_183 = arith.constant 0 : index
    %196 = vector.load %arg4[%c240, %c0_183] : memref<480x128xf32, #tpu.memory_space<vmem>>, vector<80x128xf32>
    tpu.vector_store %arg4[%c240, %c0_183], %195 {strides = array<i32>} : memref<480x128xf32, #tpu.memory_space<vmem>>, vector<80x128xf32>,
    %c416 = arith.constant 416 : index
    %c0_184 = arith.constant 0 : index
    %197 = vector.load %arg1[%c416, %c0_184] : memref<624x4xbf16, #tpu.memory_space<vmem>>, vector<80x4xbf16>
    %c0_185 = arith.constant 0 : index
    %c0_186 = arith.constant 0 : index
    %c0_187 = arith.constant 0 : index
    %198 = vector.load %arg2[%c0_185, %c0_186, %c0_187] : memref<9x4x128xbf16, #tpu.memory_space<vmem>>, vector<1x4x128xbf16>
    %199 = vector.shape_cast %198 : vector<1x4x128xbf16> to vector<4x128xbf16>
    %cst_188 = arith.constant dense<0.000000e+00> : vector<80x128xf32>
    %200 = tpu.matmul %197, %199, %cst_188 {dimension_numbers = #tpu.dot_dimension_numbers<[1], [0], [0], [1], [0, 0, 1, 1], [], []>} : vector<80x4xbf16>, vector<4x128xbf16>, vector<80x128xf32> -> vector<80x128xf32>
    %c417 = arith.constant 417 : index
    %c0_189 = arith.constant 0 : index
    %201 = vector.load %arg1[%c417, %c0_189] : memref<624x4xbf16, #tpu.memory_space<vmem>>, vector<80x4xbf16>
    %c1_190 = arith.constant 1 : index
    %c0_191 = arith.constant 0 : index
    %c0_192 = arith.constant 0 : index
    %202 = vector.load %arg2[%c1_190, %c0_191, %c0_192] : memref<9x4x128xbf16, #tpu.memory_space<vmem>>, vector<1x4x128xbf16>
    %203 = vector.shape_cast %202 : vector<1x4x128xbf16> to vector<4x128xbf16>
    %cst_193 = arith.constant dense<0.000000e+00> : vector<80x128xf32>
    %204 = tpu.matmul %201, %203, %cst_193 {dimension_numbers = #tpu.dot_dimension_numbers<[1], [0], [0], [1], [0, 0, 1, 1], [], []>} : vector<80x4xbf16>, vector<4x128xbf16>, vector<80x128xf32> -> vector<80x128xf32>
    %205 = arith.addf %200, %204 : vector<80x128xf32>
    %c418 = arith.constant 418 : index
    %c0_194 = arith.constant 0 : index
    %206 = vector.load %arg1[%c418, %c0_194] : memref<624x4xbf16, #tpu.memory_space<vmem>>, vector<80x4xbf16>
    %c2_195 = arith.constant 2 : index
    %c0_196 = arith.constant 0 : index
    %c0_197 = arith.constant 0 : index
    %207 = vector.load %arg2[%c2_195, %c0_196, %c0_197] : memref<9x4x128xbf16, #tpu.memory_space<vmem>>, vector<1x4x128xbf16>
    %208 = vector.shape_cast %207 : vector<1x4x128xbf16> to vector<4x128xbf16>
    %cst_198 = arith.constant dense<0.000000e+00> : vector<80x128xf32>
    %209 = tpu.matmul %206, %208, %cst_198 {dimension_numbers = #tpu.dot_dimension_numbers<[1], [0], [0], [1], [0, 0, 1, 1], [], []>} : vector<80x4xbf16>, vector<4x128xbf16>, vector<80x128xf32> -> vector<80x128xf32>
    %210 = arith.addf %205, %209 : vector<80x128xf32>
    %c426 = arith.constant 426 : index
    %c0_199 = arith.constant 0 : index
    %211 = vector.load %arg1[%c426, %c0_199] : memref<624x4xbf16, #tpu.memory_space<vmem>>, vector<80x4xbf16>
    %c3_200 = arith.constant 3 : index
    %c0_201 = arith.constant 0 : index
    %c0_202 = arith.constant 0 : index
    %212 = vector.load %arg2[%c3_200, %c0_201, %c0_202] : memref<9x4x128xbf16, #tpu.memory_space<vmem>>, vector<1x4x128xbf16>
    %213 = vector.shape_cast %212 : vector<1x4x128xbf16> to vector<4x128xbf16>
    %cst_203 = arith.constant dense<0.000000e+00> : vector<80x128xf32>
    %214 = tpu.matmul %211, %213, %cst_203 {dimension_numbers = #tpu.dot_dimension_numbers<[1], [0], [0], [1], [0, 0, 1, 1], [], []>} : vector<80x4xbf16>, vector<4x128xbf16>, vector<80x128xf32> -> vector<80x128xf32>
    %215 = arith.addf %210, %214 : vector<80x128xf32>
    %c427 = arith.constant 427 : index
    %c0_204 = arith.constant 0 : index
    %216 = vector.load %arg1[%c427, %c0_204] : memref<624x4xbf16, #tpu.memory_space<vmem>>, vector<80x4xbf16>
    %c4_205 = arith.constant 4 : index
    %c0_206 = arith.constant 0 : index
    %c0_207 = arith.constant 0 : index
    %217 = vector.load %arg2[%c4_205, %c0_206, %c0_207] : memref<9x4x128xbf16, #tpu.memory_space<vmem>>, vector<1x4x128xbf16>
    %218 = vector.shape_cast %217 : vector<1x4x128xbf16> to vector<4x128xbf16>
    %cst_208 = arith.constant dense<0.000000e+00> : vector<80x128xf32>
    %219 = tpu.matmul %216, %218, %cst_208 {dimension_numbers = #tpu.dot_dimension_numbers<[1], [0], [0], [1], [0, 0, 1, 1], [], []>} : vector<80x4xbf16>, vector<4x128xbf16>, vector<80x128xf32> -> vector<80x128xf32>
    %220 = arith.addf %215, %219 : vector<80x128xf32>
    %c428 = arith.constant 428 : index
    %c0_209 = arith.constant 0 : index
    %221 = vector.load %arg1[%c428, %c0_209] : memref<624x4xbf16, #tpu.memory_space<vmem>>, vector<80x4xbf16>
    %c5_210 = arith.constant 5 : index
    %c0_211 = arith.constant 0 : index
    %c0_212 = arith.constant 0 : index
    %222 = vector.load %arg2[%c5_210, %c0_211, %c0_212] : memref<9x4x128xbf16, #tpu.memory_space<vmem>>, vector<1x4x128xbf16>
    %223 = vector.shape_cast %222 : vector<1x4x128xbf16> to vector<4x128xbf16>
    %cst_213 = arith.constant dense<0.000000e+00> : vector<80x128xf32>
    %224 = tpu.matmul %221, %223, %cst_213 {dimension_numbers = #tpu.dot_dimension_numbers<[1], [0], [0], [1], [0, 0, 1, 1], [], []>} : vector<80x4xbf16>, vector<4x128xbf16>, vector<80x128xf32> -> vector<80x128xf32>
    %225 = arith.addf %220, %224 : vector<80x128xf32>
    %c436 = arith.constant 436 : index
    %c0_214 = arith.constant 0 : index
    %226 = vector.load %arg1[%c436, %c0_214] : memref<624x4xbf16, #tpu.memory_space<vmem>>, vector<80x4xbf16>
    %c6_215 = arith.constant 6 : index
    %c0_216 = arith.constant 0 : index
    %c0_217 = arith.constant 0 : index
    %227 = vector.load %arg2[%c6_215, %c0_216, %c0_217] : memref<9x4x128xbf16, #tpu.memory_space<vmem>>, vector<1x4x128xbf16>
    %228 = vector.shape_cast %227 : vector<1x4x128xbf16> to vector<4x128xbf16>
    %cst_218 = arith.constant dense<0.000000e+00> : vector<80x128xf32>
    %229 = tpu.matmul %226, %228, %cst_218 {dimension_numbers = #tpu.dot_dimension_numbers<[1], [0], [0], [1], [0, 0, 1, 1], [], []>} : vector<80x4xbf16>, vector<4x128xbf16>, vector<80x128xf32> -> vector<80x128xf32>
    %230 = arith.addf %225, %229 : vector<80x128xf32>
    %c437 = arith.constant 437 : index
    %c0_219 = arith.constant 0 : index
    %231 = vector.load %arg1[%c437, %c0_219] : memref<624x4xbf16, #tpu.memory_space<vmem>>, vector<80x4xbf16>
    %c7_220 = arith.constant 7 : index
    %c0_221 = arith.constant 0 : index
    %c0_222 = arith.constant 0 : index
    %232 = vector.load %arg2[%c7_220, %c0_221, %c0_222] : memref<9x4x128xbf16, #tpu.memory_space<vmem>>, vector<1x4x128xbf16>
    %233 = vector.shape_cast %232 : vector<1x4x128xbf16> to vector<4x128xbf16>
    %cst_223 = arith.constant dense<0.000000e+00> : vector<80x128xf32>
    %234 = tpu.matmul %231, %233, %cst_223 {dimension_numbers = #tpu.dot_dimension_numbers<[1], [0], [0], [1], [0, 0, 1, 1], [], []>} : vector<80x4xbf16>, vector<4x128xbf16>, vector<80x128xf32> -> vector<80x128xf32>
    %235 = arith.addf %230, %234 : vector<80x128xf32>
    %c438 = arith.constant 438 : index
    %c0_224 = arith.constant 0 : index
    %236 = vector.load %arg1[%c438, %c0_224] : memref<624x4xbf16, #tpu.memory_space<vmem>>, vector<80x4xbf16>
    %c8_225 = arith.constant 8 : index
    %c0_226 = arith.constant 0 : index
    %c0_227 = arith.constant 0 : index
    %237 = vector.load %arg2[%c8_225, %c0_226, %c0_227] : memref<9x4x128xbf16, #tpu.memory_space<vmem>>, vector<1x4x128xbf16>
    %238 = vector.shape_cast %237 : vector<1x4x128xbf16> to vector<4x128xbf16>
    %cst_228 = arith.constant dense<0.000000e+00> : vector<80x128xf32>
    %239 = tpu.matmul %236, %238, %cst_228 {dimension_numbers = #tpu.dot_dimension_numbers<[1], [0], [0], [1], [0, 0, 1, 1], [], []>} : vector<80x4xbf16>, vector<4x128xbf16>, vector<80x128xf32> -> vector<80x128xf32>
    %240 = arith.addf %235, %239 : vector<80x128xf32>
    %241 = vector.broadcast %0 : vector<1x128xf32> to vector<80x128xf32>
    %242 = arith.addf %240, %241 : vector<80x128xf32>
    %cst_229 = arith.constant 0.000000e+00 : f32
    %243 = vector.broadcast %cst_229 : f32 to vector<80x128xf32>
    %244 = arith.maximumf %242, %243 : vector<80x128xf32>
    %c320 = arith.constant 320 : index
    %c0_230 = arith.constant 0 : index
    %245 = vector.load %arg4[%c320, %c0_230] : memref<480x128xf32, #tpu.memory_space<vmem>>, vector<80x128xf32>
    tpu.vector_store %arg4[%c320, %c0_230], %244 {strides = array<i32>} : memref<480x128xf32, #tpu.memory_space<vmem>>, vector<80x128xf32>,
    %c520 = arith.constant 520 : index
    %c0_231 = arith.constant 0 : index
    %246 = vector.load %arg1[%c520, %c0_231] : memref<624x4xbf16, #tpu.memory_space<vmem>>, vector<80x4xbf16>
    %c0_232 = arith.constant 0 : index
    %c0_233 = arith.constant 0 : index
    %c0_234 = arith.constant 0 : index
    %247 = vector.load %arg2[%c0_232, %c0_233, %c0_234] : memref<9x4x128xbf16, #tpu.memory_space<vmem>>, vector<1x4x128xbf16>
    %248 = vector.shape_cast %247 : vector<1x4x128xbf16> to vector<4x128xbf16>
    %cst_235 = arith.constant dense<0.000000e+00> : vector<80x128xf32>
    %249 = tpu.matmul %246, %248, %cst_235 {dimension_numbers = #tpu.dot_dimension_numbers<[1], [0], [0], [1], [0, 0, 1, 1], [], []>} : vector<80x4xbf16>, vector<4x128xbf16>, vector<80x128xf32> -> vector<80x128xf32>
    %c521 = arith.constant 521 : index
    %c0_236 = arith.constant 0 : index
    %250 = vector.load %arg1[%c521, %c0_236] : memref<624x4xbf16, #tpu.memory_space<vmem>>, vector<80x4xbf16>
    %c1_237 = arith.constant 1 : index
    %c0_238 = arith.constant 0 : index
    %c0_239 = arith.constant 0 : index
    %251 = vector.load %arg2[%c1_237, %c0_238, %c0_239] : memref<9x4x128xbf16, #tpu.memory_space<vmem>>, vector<1x4x128xbf16>
    %252 = vector.shape_cast %251 : vector<1x4x128xbf16> to vector<4x128xbf16>
    %cst_240 = arith.constant dense<0.000000e+00> : vector<80x128xf32>
    %253 = tpu.matmul %250, %252, %cst_240 {dimension_numbers = #tpu.dot_dimension_numbers<[1], [0], [0], [1], [0, 0, 1, 1], [], []>} : vector<80x4xbf16>, vector<4x128xbf16>, vector<80x128xf32> -> vector<80x128xf32>
    %254 = arith.addf %249, %253 : vector<80x128xf32>
    %c522 = arith.constant 522 : index
    %c0_241 = arith.constant 0 : index
    %255 = vector.load %arg1[%c522, %c0_241] : memref<624x4xbf16, #tpu.memory_space<vmem>>, vector<80x4xbf16>
    %c2_242 = arith.constant 2 : index
    %c0_243 = arith.constant 0 : index
    %c0_244 = arith.constant 0 : index
    %256 = vector.load %arg2[%c2_242, %c0_243, %c0_244] : memref<9x4x128xbf16, #tpu.memory_space<vmem>>, vector<1x4x128xbf16>
    %257 = vector.shape_cast %256 : vector<1x4x128xbf16> to vector<4x128xbf16>
    %cst_245 = arith.constant dense<0.000000e+00> : vector<80x128xf32>
    %258 = tpu.matmul %255, %257, %cst_245 {dimension_numbers = #tpu.dot_dimension_numbers<[1], [0], [0], [1], [0, 0, 1, 1], [], []>} : vector<80x4xbf16>, vector<4x128xbf16>, vector<80x128xf32> -> vector<80x128xf32>
    %259 = arith.addf %254, %258 : vector<80x128xf32>
    %c530 = arith.constant 530 : index
    %c0_246 = arith.constant 0 : index
    %260 = vector.load %arg1[%c530, %c0_246] : memref<624x4xbf16, #tpu.memory_space<vmem>>, vector<80x4xbf16>
    %c3_247 = arith.constant 3 : index
    %c0_248 = arith.constant 0 : index
    %c0_249 = arith.constant 0 : index
    %261 = vector.load %arg2[%c3_247, %c0_248, %c0_249] : memref<9x4x128xbf16, #tpu.memory_space<vmem>>, vector<1x4x128xbf16>
    %262 = vector.shape_cast %261 : vector<1x4x128xbf16> to vector<4x128xbf16>
    %cst_250 = arith.constant dense<0.000000e+00> : vector<80x128xf32>
    %263 = tpu.matmul %260, %262, %cst_250 {dimension_numbers = #tpu.dot_dimension_numbers<[1], [0], [0], [1], [0, 0, 1, 1], [], []>} : vector<80x4xbf16>, vector<4x128xbf16>, vector<80x128xf32> -> vector<80x128xf32>
    %264 = arith.addf %259, %263 : vector<80x128xf32>
    %c531 = arith.constant 531 : index
    %c0_251 = arith.constant 0 : index
    %265 = vector.load %arg1[%c531, %c0_251] : memref<624x4xbf16, #tpu.memory_space<vmem>>, vector<80x4xbf16>
    %c4_252 = arith.constant 4 : index
    %c0_253 = arith.constant 0 : index
    %c0_254 = arith.constant 0 : index
    %266 = vector.load %arg2[%c4_252, %c0_253, %c0_254] : memref<9x4x128xbf16, #tpu.memory_space<vmem>>, vector<1x4x128xbf16>
    %267 = vector.shape_cast %266 : vector<1x4x128xbf16> to vector<4x128xbf16>
    %cst_255 = arith.constant dense<0.000000e+00> : vector<80x128xf32>
    %268 = tpu.matmul %265, %267, %cst_255 {dimension_numbers = #tpu.dot_dimension_numbers<[1], [0], [0], [1], [0, 0, 1, 1], [], []>} : vector<80x4xbf16>, vector<4x128xbf16>, vector<80x128xf32> -> vector<80x128xf32>
    %269 = arith.addf %264, %268 : vector<80x128xf32>
    %c532 = arith.constant 532 : index
    %c0_256 = arith.constant 0 : index
    %270 = vector.load %arg1[%c532, %c0_256] : memref<624x4xbf16, #tpu.memory_space<vmem>>, vector<80x4xbf16>
    %c5_257 = arith.constant 5 : index
    %c0_258 = arith.constant 0 : index
    %c0_259 = arith.constant 0 : index
    %271 = vector.load %arg2[%c5_257, %c0_258, %c0_259] : memref<9x4x128xbf16, #tpu.memory_space<vmem>>, vector<1x4x128xbf16>
    %272 = vector.shape_cast %271 : vector<1x4x128xbf16> to vector<4x128xbf16>
    %cst_260 = arith.constant dense<0.000000e+00> : vector<80x128xf32>
    %273 = tpu.matmul %270, %272, %cst_260 {dimension_numbers = #tpu.dot_dimension_numbers<[1], [0], [0], [1], [0, 0, 1, 1], [], []>} : vector<80x4xbf16>, vector<4x128xbf16>, vector<80x128xf32> -> vector<80x128xf32>
    %274 = arith.addf %269, %273 : vector<80x128xf32>
    %c540 = arith.constant 540 : index
    %c0_261 = arith.constant 0 : index
    %275 = vector.load %arg1[%c540, %c0_261] : memref<624x4xbf16, #tpu.memory_space<vmem>>, vector<80x4xbf16>
    %c6_262 = arith.constant 6 : index
    %c0_263 = arith.constant 0 : index
    %c0_264 = arith.constant 0 : index
    %276 = vector.load %arg2[%c6_262, %c0_263, %c0_264] : memref<9x4x128xbf16, #tpu.memory_space<vmem>>, vector<1x4x128xbf16>
    %277 = vector.shape_cast %276 : vector<1x4x128xbf16> to vector<4x128xbf16>
    %cst_265 = arith.constant dense<0.000000e+00> : vector<80x128xf32>
    %278 = tpu.matmul %275, %277, %cst_265 {dimension_numbers = #tpu.dot_dimension_numbers<[1], [0], [0], [1], [0, 0, 1, 1], [], []>} : vector<80x4xbf16>, vector<4x128xbf16>, vector<80x128xf32> -> vector<80x128xf32>
    %279 = arith.addf %274, %278 : vector<80x128xf32>
    %c541 = arith.constant 541 : index
    %c0_266 = arith.constant 0 : index
    %280 = vector.load %arg1[%c541, %c0_266] : memref<624x4xbf16, #tpu.memory_space<vmem>>, vector<80x4xbf16>
    %c7_267 = arith.constant 7 : index
    %c0_268 = arith.constant 0 : index
    %c0_269 = arith.constant 0 : index
    %281 = vector.load %arg2[%c7_267, %c0_268, %c0_269] : memref<9x4x128xbf16, #tpu.memory_space<vmem>>, vector<1x4x128xbf16>
    %282 = vector.shape_cast %281 : vector<1x4x128xbf16> to vector<4x128xbf16>
    %cst_270 = arith.constant dense<0.000000e+00> : vector<80x128xf32>
    %283 = tpu.matmul %280, %282, %cst_270 {dimension_numbers = #tpu.dot_dimension_numbers<[1], [0], [0], [1], [0, 0, 1, 1], [], []>} : vector<80x4xbf16>, vector<4x128xbf16>, vector<80x128xf32> -> vector<80x128xf32>
    %284 = arith.addf %279, %283 : vector<80x128xf32>
    %c542 = arith.constant 542 : index
    %c0_271 = arith.constant 0 : index
    %285 = vector.load %arg1[%c542, %c0_271] : memref<624x4xbf16, #tpu.memory_space<vmem>>, vector<80x4xbf16>
    %c8_272 = arith.constant 8 : index
    %c0_273 = arith.constant 0 : index
    %c0_274 = arith.constant 0 : index
    %286 = vector.load %arg2[%c8_272, %c0_273, %c0_274] : memref<9x4x128xbf16, #tpu.memory_space<vmem>>, vector<1x4x128xbf16>
    %287 = vector.shape_cast %286 : vector<1x4x128xbf16> to vector<4x128xbf16>
    %cst_275 = arith.constant dense<0.000000e+00> : vector<80x128xf32>
    %288 = tpu.matmul %285, %287, %cst_275 {dimension_numbers = #tpu.dot_dimension_numbers<[1], [0], [0], [1], [0, 0, 1, 1], [], []>} : vector<80x4xbf16>, vector<4x128xbf16>, vector<80x128xf32> -> vector<80x128xf32>
    %289 = arith.addf %284, %288 : vector<80x128xf32>
    %290 = vector.broadcast %0 : vector<1x128xf32> to vector<80x128xf32>
    %291 = arith.addf %289, %290 : vector<80x128xf32>
    %cst_276 = arith.constant 0.000000e+00 : f32
    %292 = vector.broadcast %cst_276 : f32 to vector<80x128xf32>
    %293 = arith.maximumf %291, %292 : vector<80x128xf32>
    %c400 = arith.constant 400 : index
    %c0_277 = arith.constant 0 : index
    %294 = vector.load %arg4[%c400, %c0_277] : memref<480x128xf32, #tpu.memory_space<vmem>>, vector<80x128xf32>
    tpu.vector_store %arg4[%c400, %c0_277], %293 {strides = array<i32>} : memref<480x128xf32, #tpu.memory_space<vmem>>, vector<80x128xf32>,
    return
  }
  func.func @transform_0(%arg0: i32) -> (i32, i32) {
    %c0_i32 = arith.constant 0 : i32
    %c0_i32_0 = arith.constant 0 : i32
    return %arg0, %c0_i32 : i32, i32
  }
  func.func @transform_1(%arg0: i32) -> (i32, i32, i32) {
    %c0_i32 = arith.constant 0 : i32
    %c0_i32_0 = arith.constant 0 : i32
    %c0_i32_1 = arith.constant 0 : i32
    %c0_i32_2 = arith.constant 0 : i32
    return %c0_i32, %c0_i32_0, %c0_i32_1 : i32, i32, i32
  }
  func.func @transform_2(%arg0: i32) -> (i32, i32) {
    %c0_i32 = arith.constant 0 : i32
    %c0_i32_0 = arith.constant 0 : i32
    %c0_i32_1 = arith.constant 0 : i32
    return %c0_i32, %c0_i32_0 : i32, i32
  }
  func.func @transform_3(%arg0: i32) -> (i32, i32) {
    %c0_i32 = arith.constant 0 : i32
    %c0_i32_0 = arith.constant 0 : i32
    return %arg0, %c0_i32 : i32, i32
  }
}

</mosaic_0001>

<bundles_post_ra>
// kernel: tpu_custom_call.1
= control target key start
LH: loop header
LB: loop body
LE: loop exit
PB: predicated region body
PF: predicated region fallthrough
CT: control target
= control target key end

     0   :  { %vm120_vm0 = vcmask 1041408   ;;  %vm104_vm1 = vcmask 31744   ;;  %vm59_vm2 = vsmask.f32 7424  ;;  %s8571_s0 = inlined_call_operand.vmem [shape: bf16[624,4], index: 0, kind: input, shape index: {}]   ;;  %s8572_s1 = inlined_call_operand.vmem [shape: bf16[9,4,128], index: 1, kind: input, shape index: {}]   ;;  %s8573_s2 = inlined_call_operand.vmem [shape: f32[1,128], index: 2, kind: input, shape index: {}]   ;;  %s8574_s3 = inlined_call_operand.hbm [shape: f32[480,128], index: 3, kind: output, shape index: {}]  }
   0x1   :  { %v27_v0 = vld [vmem:[%s8572_s1] sm:$0x3]  ;;  %v5538_v1 = vld [vmem:[%s8572_s1 + $0x2] sm:$0x3]  ;;  %v6321_v7 = vld [vmem:[%s8571_s0 + $0x8] sm:$0xff] }
   0x2   :  { %v6217_v2 = vld [vmem:[%s8571_s0] sm:$0xff]   ;;  %v169_v3 = vsel %vm120_vm0, %v27_v0, 0  ;;  %v122_v4 = vsel %vm120_vm0, %v5538_v1, 0  ;;  %v6326_v8 = vld [vmem:[%s8571_s0 + $0x18] sm:$0xff]  ;;  %v5593_v9 = vld [vmem:[%s8572_s1 + $0x8] sm:$0x3] }
   0x3   :  { %v61_v5 = vshrl.u32 %v6217_v2, 16  ;;  %v63_v6 = vshll.u32 %v6217_v2, 16  ;;  %178 = vmatpush.bf16.msra.mxu1 %v169_v3  ;;  %131 = vmatpush.bf16.msra.mxu0 %v122_v4  ;;  %v6334_v10 = vld [vmem:[%s8571_s0 + $0x20] sm:$0xff]  ;;  %v68_v12 = vshll.u32 %v6321_v7, 16  ;;  %v475_v13 = vsel %vm120_vm0, %v5593_v9, 0  ;;  %v6368_v32 = vld [vmem:[%s8571_s0 + $0x10] sm:$0xff] }
   0x4   :  { %6240 = vmatpush.bf16.msra.mxu3 %v169_v3  ;;  %6239 = vmatpush.bf16.msra.mxu2 %v122_v4  ;;  %v84_v14 = vshll.u32 %v6326_v8, 16  ;;  %v5599_v15 = vld [vmem:[%s8572_s1 + $0xa] sm:$0x3]  ;;  %v88_v16 = vshrl.u32 %v6326_v8, 16  ;;  %v92_v17 = vshll.u32 %v6334_v10, 16 }
   0x5   :  { %v65_v11 = vrot.slane %v63_v6, 1  ;;  %v555_v18 = vsel %vm120_vm0, %v5599_v15, 0  ;;  %v5565_v19 = vld [vmem:[%s8572_s1 + $0x4] sm:$0x3]  ;;  %v70_v21 = vrot.slane %v68_v12, 1 }
   0x6   :  { %5560 = vmatmul.msk.bf16.vlgmr.msra.gmra.mxu1 %vm104_vm1, %v6217_v2  ;;  %v6349_v22 = vrot.slane %v84_v14, 1  ;;  %v239_v23 = vsel %vm120_vm0, %v5565_v19, 0  ;;  %v5571_v24 = vld [vmem:[%s8572_s1 + $0x6] sm:$0x3]  ;;  %v94_v25 = vrot.slane %v92_v17, 1 }
   0x7   :  { %484 = vmatpush.bf16.msrb.mxu0 %v475_v13  ;;  %v66_v20 = vor.u32 %v65_v11, %v61_v5  ;;  %5563 = vmatmul.msk.bf16.vlgmr.msra.gmra.mxu3 %vm104_vm1, %v6326_v8  ;;  %v353_v26 = vsel %vm120_vm0, %v5571_v24, 0  ;;  %v28_v27 = vld [vmem:[%s8571_s0 + $0x28] sm:$0x1] }
   0x8   :  { %564 = vmatpush.bf16.msrb.mxu1 %v555_v18  ;;  %v90_v29 = vor.u32 %v88_v16, %v6349_v22  ;;  %248 = vmatpush.bf16.msrb.mxu2 %v239_v23  ;;  %v52_v30 = vunpack.c.l.b16 %v28_v27 }
   0x9   :  { %v71_v28 = vsel %vm59_vm2, %v66_v20, %v70_v21  ;;  %362 = vmatpush.bf16.msrb.mxu3 %v353_v26 }
   0xa   :  { %5555 = vmatmul.msk.bf16.vlgmr.msra.gmra.mxu0 %vm104_vm1, %v71_v28  ;;  %v95_v31 = vsel %vm59_vm2, %v90_v29, %v94_v25 }
   0xb   :  { %8 = vsyncpa [#allocation3], 0  ;;  %5558 = vmatmul.msk.bf16.vlgmr.msra.gmra.mxu2 %vm104_vm1, %v95_v31  ;;  %v5605_v33 = vld [vmem:[%s8572_s1 + $0xc] sm:$0x3]  ;;  %v5627_v34 = vld [vmem:[%s8572_s1 + $0xe] sm:$0x3]  ;;  %v6377_v35 = vpack.c.b16 %v52_v30, %v52_v30 }
   0xc   :  { %v669_v36 = vsel %vm120_vm0, %v5605_v33, 0  ;;  %v791_v37 = vsel %vm120_vm0, %v5627_v34, 0  ;;  %v72_v38 = vshrl.u32 %v6321_v7, 16  ;;  %v76_v39 = vshll.u32 %v6368_v32, 16  ;;  %v285_v46 = vld [vmem:[%s8571_s0 + $0x4] sm:$0xe] }
   0xd   :  { %678 = vmatpush.bf16.msra.mxu2 %v669_v36  ;;  %800 = vmatpush.bf16.msra.mxu3 %v791_v37  ;;  %v96_v40 = vshrl.u32 %v6334_v10, 16  ;;  %v100_v41 = vshll.u32 %v6377_v35, 16  ;;  %v6391_v47 = vld [vmem:[%s8571_s0 + $0x8] sm:$0xff]   ;;  %v309_v50 = vunpack.c.l.b16 %v285_v46  ;;  %v5633_v52 = vld [vmem:[%s8572_s1 + $0x10] sm:$0x3]  ;;  %v80_v60 = vshrl.u32 %v6368_v32, 16 }
   0xe   :  { %v74_v42 = vor.u32 %v72_v38, %v70_v21  ;;  %v78_v43 = vrot.slane %v76_v39, 1  ;;  %v310_v51 = vunpack.c.l.b16 %v6391_v47  ;;  %v871_v53 = vsel %vm120_vm0, %v5633_v52, 0  ;;  %v5639_v54 = vld [vmem:[%s8572_s1 + $0x2] sm:$0x3]  ;;  %v6148_v55 = vld [vmem:[%s8571_s0 + $0xc] sm:$0xff]  ;;  %v6149_v15 = vld [vmem:[%s8571_s0 + $0x14] sm:$0xff] }
   0xf   :  { %v98_v44 = vor.u32 %v96_v40, %v94_v25  ;;  %v102_v45 = vrot.slane %v100_v41, 1  ;;  %880 = vmatpush.bf16.msra.mxu0 %v871_v53  ;;  %v1051_v57 = vsel %vm120_vm0, %v5639_v54, 0  ;;  %v6228_v58 = vld [vmem:[%s8571_s0] sm:$0xf0]  ;;  %v6229_v59 = vld [vmem:[%s8571_s0] sm:$0xe] }
  0x10   :  { %v79_v48 = vsel %vm59_vm2, %v74_v42, %v78_v43  ;;  %v320_v56 = vpack.c.b16 %v310_v51, %v309_v50  ;;  %1060 = vmatpush.bf16.msra.mxu1 %v1051_v57  ;;  %v327_v62 = vrot.slane %v6148_v55, 1  ;;  %v6230_v63 = vor.u32 %v6229_v59, %v6228_v58  ;;  %v521_v4 = vld [vmem:[%s8571_s0 + $0x4] sm:$0xc]  ;;  %s5526_s25 = sshll.u32 %s8574_s3, 4  ;;  %s6285_s26 = smov 128   ;;  %s5527_s25 = int_to_ptr.hbm [resolvable:$true] %s5526_s25 }
  0x11   :  { %v103_v49 = vsel %vm59_vm2, %v98_v44, %v102_v45  ;;  %vm211_vm3 = vcmask 1046528   ;;  %v82_v0 = vor.u32 %v80_v60, %v78_v43  ;;  %v213_v3 = vrot.slane %v6321_v7, 1  ;;  %s6286_s27 = smov 8  }
  0x12   :  { %v326_v61 = vrot.slane %v320_v56, 1  ;;  %v212_v2 = vrot.slane %v6230_v63, 1  ;;  %v525_v6 = vunpack.c.l.b16 %v521_v4  ;;  %v407_v11 = vshrl.u32 %v320_v56, 16 }
  0x13   :  { %v87_v5 = vsel %vm59_vm2, %v82_v0, %v6349_v22  ;;  %v410_v12 = vshll.u32 %v320_v56, 16  ;;  %v418_v13 = vshll.u32 %v6148_v55, 16  ;;  %v529_v21 = vrot.slane %v6148_v55, 2  ;;  %v295_v56 = vld [vmem:[%s8571_s0 + $0x2c] sm:$0x1] }
  0x14   :  { %v328_v1 = vsel %vm211_vm3, %v326_v61, %v327_v62  ;;  %v214_v9 = vsel %vm211_vm3, %v212_v2, %v213_v3  ;;  %v526_v14 = vpack.c.b16 %v310_v51, %v525_v6  ;;  %v409_v16 = vrot.slane %v407_v11, 1  ;;  %v960_v61 = vld [vmem:[%s8572_s1] sm:$0x3]  ;;  %v601_v0 = vld [vmem:[%s8571_s0 + $0x8] sm:$0xc] }
  0x15   :  { %v412_v17 = vrot.slane %v410_v12, 2  ;;  %v420_v19 = vrot.slane %v418_v13, 2  ;;  %vm527_vm4 = vcmask 1045504   ;;  %v329_v22 = vrot.slane %v6149_v15, 1  ;;  %v399_v6 = vld [vmem:[%s8571_s0 + $0x2c] sm:$0x3] }
  0x16   :  { %5561 = vmatmul.msk.bf16.gmra.mxu1 %vm104_vm1, %v6321_v7  ;;  %v415_v7 = vshrl.u32 %v6148_v55, 16  ;;  %v528_v20 = vrot.slane %v526_v14, 2  ;;  %vm405_vm5 = vsmask.f32 6400  ;;  %v215_v27 = vrot.slane %v6368_v32, 1 }
  0x17   :  { %5564 = vmatmul.msk.bf16.gmra.mxu3 %vm104_vm1, %v6334_v10  ;;  %v413_v23 = vor.u32 %v412_v17, %v409_v16  ;;  %v330_v26 = vsel %vm211_vm3, %v327_v62, %v329_v22  ;;  %v217_v30 = vrot.slane %v6326_v8, 1  ;;  %v219_v31 = vrot.slane %v6334_v10, 1  ;;  %v5666_v62 = vld [vmem:[%s8572_s1 + $0x4] sm:$0x3]  ;;  %v6500_v17 = vld [vmem:[%s8571_s0 + $0x10] sm:$0xff] }
  0x18   :  { %v417_v18 = vrot.slane %v415_v7, 1  ;;  %v530_v25 = vsel %vm527_vm4, %v528_v20, %v529_v21  ;;  %v216_v29 = vsel %vm211_vm3, %v213_v3, %v215_v27  ;;  %v424_v33 = vshrl.u32 %v6149_v15, 16 }
  0x19   :  { %v427_v34 = vshll.u32 %v6149_v15, 16  ;;  %v220_v36 = vsel %vm211_vm3, %v217_v30, %v219_v31  ;;  %v531_v39 = vrot.slane %v6149_v15, 2  ;;  %v218_v43 = vsel %vm211_vm3, %v215_v27, %v217_v30 }
  0x1a   :  { %5556 = vmatmul.msk.bf16.gmra.mxu0 %vm104_vm1, %v79_v48  ;;  %v421_v24 = vor.u32 %v420_v19, %v417_v18  ;;  %v426_v37 = vrot.slane %v424_v33, 1  ;;  %v221_v44 = vrot.slane %v6377_v35, 1  ;;  %v319_v58 = vunpack.c.l.b16 %v295_v56  ;;  %v6519_v33 = vld [vmem:[%s8571_s0 + $0x34] sm:$0xff]  }
  0x1b   :  { %5559 = vmatmul.msk.bf16.gmra.mxu2 %vm104_vm1, %v103_v49  ;;  %v429_v38 = vrot.slane %v427_v34, 2  ;;  %v532_v8 = vsel %vm527_vm4, %v529_v21, %v531_v39  ;;  %v6464_v49 = vld [vmem:[%s8571_s0 + $0x24] sm:$0xff]  ;;  %v1166_v2 = vsel %vm120_vm0, %v5666_v62, 0  ;;  %v626_v11 = vunpack.c.h.b16 %v6391_v47  ;;  %v6524_v34 = vld [vmem:[%s8571_s0 + $0x34] sm:$0xf0] }
  0x1c   :  { %v422_v28 = vsel %vm405_vm5, %v413_v23, %v421_v24  ;;  %v222_v48 = vsel %vm211_vm3, %v219_v31, %v221_v44  ;;  %v333_v53 = vrot.slane %v6464_v49, 1  ;;  %v442_v59 = vshrl.u32 %v6464_v49, 16  ;;  %v5672_v23 = vld [vmem:[%s8572_s1 + $0x6] sm:$0x3]  ;;  %v6533_v44 = vld [vmem:[%s8571_s0 + $0x18] sm:$0xff] }
  0x1d   :  { %v430_v41 = vor.u32 %v429_v38, %v426_v37  ;;  %v445_v60 = vshll.u32 %v6464_v49, 16  ;;  %v325_v63 = vpack.c.b16 %v319_v58, %v319_v58  ;;  %v403_v13 = vunpack.c.l.b16 %v399_v6 }
  0x1e   :  { %v444_v3 = vrot.slane %v442_v59, 1  ;;  %v731_v21 = vshrl.u32 %v6500_v17, 16  ;;  %vm721_vm6 = vsmask.f32 5376  ;;  %vm843_vm7 = vcmask 1044480  }
  0x1f   :  { %v431_v42 = vsel %vm405_vm5, %v421_v24, %v430_v41  ;;  %v447_v4 = vrot.slane %v445_v60, 2  ;;  %v335_v12 = vrot.slane %v325_v63, 1  ;;  %v404_v19 = vpack.c.b16 %v403_v13, %v403_v13 }
  0x20   :  { %v733_v30 = vrot.slane %v731_v21, 2  ;;  %v845_v63 = vrot.slane %v6500_v17, 3 }
  0x21   :  { %v448_v7 = vor.u32 %v447_v4, %v444_v3  ;;  %v336_v16 = vsel %vm211_vm3, %v333_v53, %v335_v12  ;;  %v451_v24 = vshrl.u32 %v404_v19, 16  ;;  %v537_v38 = vrot.slane %v404_v19, 2  ;;  %v6561_v4 = vld [vmem:[%s8571_s0 + $0x20] sm:$0xff] }
  0x22   :  { %v645_v3 = vrot.slane %v6533_v44, 2  ;;  %v752_v13 = vshll.u32 %v6561_v4, 16 }
  0x26   :  { %5562 = vmatmul.msk.bf16.gmra.mxu1 %vm104_vm1, %v6368_v32  ;;  %v6150_v32 = vld [vmem:[%s8571_s0 + $0x1c] sm:$0xff] }
  0x27   :  { %5588 = vmatmul.msk.bf16.vlgmr.msrb.gmra.mxu3 %vm104_vm1, %v328_v1  ;;  %v331_v40 = vrot.slane %v6150_v32, 1  ;;  %v433_v45 = vshrl.u32 %v6150_v32, 16  ;;  %v436_v46 = vshll.u32 %v6150_v32, 16  ;;  %v533_v52 = vrot.slane %v6150_v32, 2 }
  0x28   :  { %v1098_v1 = vsel %vm120_vm0, %v960_v61, 0  ;;  %1175 = vmatpush.bf16.msrb.mxu3 %v1166_v2  ;;  %v453_v32 = vrot.slane %v451_v24, 1 }
  0x29   :  { %v332_v10 = vsel %vm211_vm3, %v329_v22, %v331_v40  ;;  %v435_v50 = vrot.slane %v433_v45, 1  ;;  %v438_v51 = vrot.slane %v436_v46, 2  ;;  %v534_v35 = vsel %vm527_vm4, %v531_v39, %v533_v52  ;;  %v6541_v46 = vld [vmem:[%s8571_s0 + $0x3c] sm:$0xff] }
  0x2a   :  { %5557 = vmatmul.msk.bf16.gmra.mxu0 %vm104_vm1, %v87_v5  ;;  %v334_v55 = vsel %vm211_vm3, %v331_v40, %v333_v53  ;;  %v535_v5 = vrot.slane %v6464_v49, 2  ;;  %v734_v22 = vshll.u32 %v6500_v17, 16  ;;  %v837_v49 = vld [vmem:[%s8571_s0 + $0x8] sm:$0x8] }
  0x2b   :  { %5566 = vmatmul.msk.bf16.vlgmr.msrb.gmra.mxu2 %vm104_vm1, %v214_v9  ;;  %v439_v54 = vor.u32 %v438_v51, %v435_v50  ;;  %v625_v9 = vunpack.c.l.b16 %v601_v0  ;;  %v740_v51 = vshrl.u32 %v6533_v44, 16  ;;  %v841_v53 = vunpack.c.l.b16 %v837_v49 }
  0x2c   :  { %1107 = vmatpush.bf16.msrb.mxu2 %v1098_v1  ;;  %v536_v14 = vsel %vm527_vm4, %v533_v52, %v535_v5  ;;  %v736_v31 = vrot.slane %v734_v22, 3  ;;  %v743_v52 = vshll.u32 %v6533_v44, 16 }
  0x2d   :  { %v440_v57 = vsel %vm405_vm5, %v430_v41, %v439_v54  ;;  %v636_v15 = vpack.c.b16 %v626_v11, %v625_v9  ;;  %v449_v18 = vsel %vm405_vm5, %v439_v54, %v448_v7  ;;  %v992_v54 = vshrl.u32 %v6519_v33, 16 }
  0x2e   :  { %v737_v40 = vor.u32 %v736_v31, %v733_v30  ;;  %v742_v56 = vrot.slane %v740_v51, 2  ;;  %v842_v58 = vpack.c.b16 %v626_v11, %v841_v53  ;;  %v6571_v11 = vld [vmem:[%s8571_s0 + $0x44] sm:$0xff]  ;;  %v647_v31 = vrot.slane %v6561_v4, 2  ;;  %v715_v51 = vld [vmem:[%s8571_s0 + $0x30] sm:$0x7] }
  0x2f   :  { %v723_v47 = vshrl.u32 %v636_v15, 16  ;;  %v726_v20 = vshll.u32 %v636_v15, 16 }
  0x30   :  { %v844_v62 = vrot.slane %v842_v58, 3  ;;  %v719_v58 = vunpack.c.l.b16 %v715_v51  ;;  %v6250_v51 = vld [vmem:[%s8571_s0 + $0x34] sm:$0xe] }
  0x31   :  { %v725_v27 = vrot.slane %v723_v47, 2 }
  0x32   :  { %v846_v6 = vsel %vm843_vm7, %v844_v62, %v845_v63 }
  0x36   :  { %5600 = vmatmul.msk.bf16.vlgmr.msrb.gmra.mxu1 %vm104_vm1, %v530_v25  ;;  %v454_v25 = vshll.u32 %v404_v19, 16  ;;  %v754_v19 = vrot.slane %v752_v13, 3 }
  0x37   :  { %5589 = vmatmul.msk.bf16.gmra.mxu3 %vm104_vm1, %v330_v26  ;;  %v1279_v26 = vsel %vm120_vm0, %v5672_v23, 0 }
  0x38   :  { %v456_v37 = vrot.slane %v454_v25, 2 }
  0x3a   :  { %5594 = vmatmul.msk.bf16.vlgmr.msrb.gmra.mxu0 %vm104_vm1, %v422_v28  ;;  %v5694_v28 = vld [vmem:[%s8572_s1 + $0x8] sm:$0x3]  ;;  %v457_v41 = vor.u32 %v456_v37, %v453_v32 }
  0x3b   :  { %5567 = vmatmul.msk.bf16.gmra.mxu2 %vm104_vm1, %v216_v29  ;;  %1288 = vmatpush.bf16.msrb.mxu0 %v1279_v26  ;;  %v728_v29 = vrot.slane %v726_v20, 3 }
  0x3c   :  { %v458_v45 = vsel %vm405_vm5, %v448_v7, %v457_v41  ;;  %v749_v7 = vshrl.u32 %v6561_v4, 16  ;;  %v6603_v41 = vld [vmem:[%s8571_s0 + $0x4c] sm:$0xff] }
  0x3d   :  { %v729_v39 = vor.u32 %v728_v29, %v725_v27  ;;  %v847_v27 = vrot.slane %v6533_v44, 3 }
  0x46   :  { %5601 = vmatmul.msk.bf16.gmra.mxu1 %vm104_vm1, %v532_v8  ;;  %v538_v8 = vsel %vm527_vm4, %v535_v5, %v537_v38  ;;  %v848_v38 = vsel %vm843_vm7, %v845_v63, %v847_v27 }
  0x47   :  { %5590 = vmatmul.msk.bf16.gmra.mxu3 %vm104_vm1, %v332_v10  ;;  %v738_v10 = vsel %vm721_vm6, %v729_v39, %v737_v40 }
  0x4a   :  { %5595 = vmatmul.msk.bf16.gmra.mxu0 %vm104_vm1, %v431_v42  ;;  %v642_v42 = vrot.slane %v636_v15, 2 }
  0x4b   :  { %5568 = vmatmul.msk.bf16.gmra.mxu2 %vm104_vm1, %v218_v43  ;;  %v643_v43 = vrot.slane %v6500_v17, 2  ;;  %v1007_v17 = vshll.u32 %v6571_v11, 16 }
  0x4d   :  { %v644_v50 = vsel %vm527_vm4, %v642_v42, %v643_v43  ;;  %v646_v12 = vsel %vm527_vm4, %v643_v43, %v645_v3  ;;  %v1009_v24 = vrot.slane %v1007_v17, 1 }
  0x56   :  { %5602 = vmatmul.msk.bf16.gmra.mxu1 %vm104_vm1, %v534_v35 }
  0x57   :  { %5591 = vmatmul.msk.bf16.gmra.mxu3 %vm104_vm1, %v334_v55  ;;  %v999_v55 = vshll.u32 %v6541_v46, 16 }
  0x59   :  { %v1001_v60 = vrot.slane %v999_v55, 1 }
  0x5a   :  { %5596 = vmatmul.msk.bf16.gmra.mxu0 %vm104_vm1, %v440_v57  ;;  %v745_v57 = vrot.slane %v743_v52, 3 }
  0x5b   :  { %5569 = vmatmul.msk.bf16.gmra.mxu2 %vm104_vm1, %v220_v36  ;;  %v1399_v36 = vsel %vm120_vm0, %v5694_v28, 0 }
  0x5c   :  { %1408 = vmatpush.bf16.msrb.mxu1 %v1399_v36  ;;  %v746_v61 = vor.u32 %v745_v57, %v742_v56  ;;  %v6591_v36 = vld [vmem:[%s8571_s0 + $0x28] sm:$0xff] }
  0x5d   :  { %v761_v42 = vshll.u32 %v6591_v36, 16 }
  0x5e   :  { %v747_v2 = vsel %vm721_vm6, %v737_v40, %v746_v61 }
  0x66   :  { %5603 = vmatmul.msk.bf16.gmra.mxu1 %vm104_vm1, %v536_v14 }
  0x67   :  { %5592 = vmatmul.msk.bf16.gmra.mxu3 %vm104_vm1, %v336_v16  ;;  %v1003_v16 = vshrl.u32 %v6541_v46, 16 }
  0x69   :  { %v1005_v23 = vor.u32 %v1003_v16, %v1001_v60 }
  0x6a   :  { %5597 = vmatmul.msk.bf16.gmra.mxu0 %vm104_vm1, %v449_v18  ;;  %v751_v18 = vrot.slane %v749_v7, 2 }
  0x6b   :  { %5570 = vmatmul.msk.bf16.gmra.mxu2 %vm104_vm1, %v222_v48  ;;  %v994_v48 = vshll.u32 %v6519_v33, 16  ;;  %v1010_v29 = vsel %vm59_vm2, %v1005_v23, %v1009_v24 }
  0x6c   :  { %v755_v25 = vor.u32 %v754_v19, %v751_v18  ;;  %v1019_v18 = vshrl.u32 %v6603_v41, 16 }
  0x6d   :  { %v996_v35 = vrot.slane %v994_v48, 1  ;;  %v1015_v48 = vshll.u32 %v6603_v41, 16 }
  0x6e   :  { %v756_v30 = vsel %vm721_vm6, %v746_v61, %v755_v25 }
  0x6f   :  { %v997_v59 = vor.u32 %v996_v35, %v992_v54  ;;  %v1017_v56 = vrot.slane %v1015_v48, 1 }
  0x71   :  { %v1002_v1 = vsel %vm59_vm2, %v997_v59, %v1001_v60  ;;  %v849_v60 = vrot.slane %v6561_v4, 3  ;;  %v6635_v4 = vld [vmem:[%s8571_s0 + $0x54] sm:$0xff] }
  0x72   :  { %v1023_v19 = vshll.u32 %v6635_v4, 16 }
  0x76   :  { %5604 = vmatmul.msk.bf16.gmra.mxu1 %vm104_vm1, %v538_v8  ;;  %v648_v8 = vsel %vm527_vm4, %v645_v3, %v647_v31 }
  0x77   :  { %5628 = vmatmul.msk.bf16.vlgmr.msra.gmra.mxu3 %vm104_vm1, %v738_v10  ;;  %v758_v10 = vshrl.u32 %v6591_v36, 16 }
  0x79   :  { %v760_v49 = vrot.slane %v758_v10, 2 }
  0x7a   :  { %5598 = vmatmul.msk.bf16.gmra.mxu0 %vm104_vm1, %v458_v45  ;;  %v1011_v45 = vshrl.u32 %v6571_v11, 16 }
  0x7b   :  { %5622 = vmatmul.msk.bf16.vlgmr.msra.gmra.mxu2 %vm104_vm1, %v644_v50  ;;  %v763_v50 = vrot.slane %v761_v42, 3 }
  0x7c   :  { %v1013_v55 = vor.u32 %v1011_v45, %v1009_v24 }
  0x7d   :  { %v764_v57 = vor.u32 %v763_v50, %v760_v49 }
  0x7e   :  { %v1018_v62 = vsel %vm59_vm2, %v1013_v55, %v1017_v56 }
  0x7f   :  { %v765_v63 = vsel %vm721_vm6, %v755_v25, %v764_v57 }
  0x83   :  { %v180_v0 = vpop.f32.mrf.mxu1 }
  0x86   :  { %5656 = vmatmul.msk.bf16.vlgmr.msra.gmra.mxu1 %vm104_vm1, %v1002_v1  ;;  %v6623_v1 = vpack.c.b16 %v719_v58, %v719_v58 }
  0x87   :  { %v133_v5 = vpop.f32.mrf.mxu0  ;;  %5629 = vmatmul.msk.bf16.gmra.mxu3 %vm104_vm1, %v747_v2 }
  0x88   :  { %v6565_v9 = vadd.f32 %v180_v0, %v133_v5  ;;  %v649_v0 = vrot.slane %v6591_v36, 2  ;;  %v850_v5 = vsel %vm843_vm7, %v847_v27, %v849_v60  ;;  %v767_v13 = vshrl.u32 %v6623_v1, 16 }
  0x8a   :  { %5634 = vmatmul.msk.bf16.vlgmr.msra.gmra.mxu0 %vm104_vm1, %v846_v6  ;;  %v195_v14 = vpop.f32.mrf.mxu3  ;;  %v650_v7 = vsel %vm527_vm4, %v647_v31, %v649_v0  ;;  %v5706_v31 = vld [vmem:[%s8572_s1 + $0xc] sm:$0x3] }
  0x8b   :  { %v182_v15 = vpop.f32.mrf.mxu1  ;;  %5623 = vmatmul.msk.bf16.gmra.mxu2 %vm104_vm1, %v646_v12 }
  0x8e   :  { %v148_v20 = vpop.f32.mrf.mxu2 }
  0x8f   :  { %v135_v47 = vpop.f32.mrf.mxu0  ;;  %v6582_v22 = vadd.f32 %v195_v14, %v148_v20  ;;  %v770_v14 = vshll.u32 %v6623_v1, 16 }
  0x90   :  { %v6580_v21 = vadd.f32 %v182_v15, %v135_v47  ;;  %v611_v15 = vld [vmem:[%s8571_s0 + $0x30] sm:$0x3]  ;;  %v769_v47 = vrot.slane %v767_v13, 2  ;;  %v6251_v13 = vor.u32 %v6250_v51, %v6524_v34 }
  0x91   :  { %v772_v20 = vrot.slane %v770_v14, 3  ;;  %v635_v23 = vunpack.c.l.b16 %v611_v15 }
  0x92   :  { %v197_v26 = vpop.f32.mrf.mxu3 }
  0x93   :  { %v185_v28 = vpop.f32.mrf.mxu1 }
  0x96   :  { %v150_v37 = vpop.f32.mrf.mxu2  ;;  %5657 = vmatmul.msk.bf16.gmra.mxu1 %vm104_vm1, %v1010_v29  ;;  %v1025_v29 = vrot.slane %v1023_v19, 1 }
  0x97   :  { %v138_v32 = vpop.f32.mrf.mxu0  ;;  %v6597_v40 = vadd.f32 %v197_v26, %v150_v37  ;;  %5630 = vmatmul.msk.bf16.gmra.mxu3 %vm104_vm1, %v756_v30  ;;  %v5700_v30 = vld [vmem:[%s8572_s1 + $0xa] sm:$0x3]  ;;  %v641_v37 = vpack.c.b16 %v635_v23, %v635_v23 }
  0x98   :  { %v6595_v39 = vadd.f32 %v185_v28, %v138_v32  ;;  %v1021_v28 = vor.u32 %v1019_v18, %v1017_v56  ;;  %v773_v32 = vor.u32 %v772_v20, %v769_v47 }
  0x99   :  { %v651_v50 = vrot.slane %v641_v37, 2 }
  0x9a   :  { %5635 = vmatmul.msk.bf16.gmra.mxu0 %vm104_vm1, %v848_v38  ;;  %v200_v43 = vpop.f32.mrf.mxu3  ;;  %v961_v38 = vld [vmem:[%s8571_s0 + $0x5c] sm:$0x1]  ;;  %v1026_v45 = vsel %vm59_vm2, %v1021_v28, %v1025_v29  ;;  %v774_v49 = vsel %vm721_vm6, %v764_v57, %v773_v32 }
  0x9b   :  { %v187_v44 = vpop.f32.mrf.mxu1  ;;  %5624 = vmatmul.msk.bf16.gmra.mxu2 %vm104_vm1, %v648_v8  ;;  %v1477_v8 = vsel %vm120_vm0, %v5700_v30, 0  ;;  %v984_v48 = vunpack.c.l.b16 %v961_v38  ;;  %v652_v57 = vsel %vm527_vm4, %v649_v0, %v651_v50  ;;  %v1212_v0 = vld [vmem:[%s8571_s0 + $0x38] sm:$0xe]  ;;  %v853_v30 = vrot.slane %v6623_v1, 3 }
  0x9c   :  { %1486 = vmatpush.bf16.msra.mxu2 %v1477_v8 }
  0x9d   :  { %v6671_v58 = vpack.c.b16 %v984_v48, %v984_v48 }
  0x9e   :  { %v153_v53 = vpop.f32.mrf.mxu2 }
  0x9f   :  { %v140_v52 = vpop.f32.mrf.mxu0  ;;  %v6617_v35 = vadd.f32 %v200_v43, %v153_v53  ;;  %v851_v43 = vrot.slane %v6591_v36, 3 }
  0xa0   :  { %v6615_v54 = vadd.f32 %v187_v44, %v140_v52 }
  0xa1   :  { %v852_v55 = vsel %vm843_vm7, %v849_v60, %v851_v43  ;;  %v1027_v60 = vshrl.u32 %v6635_v4, 16 }
  0xa2   :  { %v202_v59 = vpop.f32.mrf.mxu3 }
  0xa3   :  { %v190_v61 = vpop.f32.mrf.mxu1  ;;  %v1029_v20 = vor.u32 %v1027_v60, %v1025_v29  ;;  %v1142_v60 = vrot.slane %v6571_v11, 1 }
  0xa6   :  { %v155_v3 = vpop.f32.mrf.mxu2  ;;  %5658 = vmatmul.msk.bf16.gmra.mxu1 %vm104_vm1, %v1018_v62 }
  0xa7   :  { %v143_v2 = vpop.f32.mrf.mxu0  ;;  %v6629_v12 = vadd.f32 %v202_v59, %v155_v3  ;;  %5631 = vmatmul.msk.bf16.gmra.mxu3 %vm104_vm1, %v765_v63  ;;  %v1031_v3 = vshll.u32 %v6671_v58, 16 }
  0xa8   :  { %v6627_v6 = vadd.f32 %v190_v61, %v143_v2  ;;  %v5728_v61 = vld [vmem:[%s8572_s1 + $0xe] sm:$0x3] }
  0xa9   :  { %v1033_v23 = vrot.slane %v1031_v3, 1 }
  0xaa   :  { %5636 = vmatmul.msk.bf16.gmra.mxu0 %vm104_vm1, %v850_v5  ;;  %v364_v16 = vpop.f32.mrf.mxu3  ;;  %v6690_v5 = vld [vmem:[%s8571_s0 + $0x3c] sm:$0xff]  }
  0xab   :  { %v192_v17 = vpop.f32.mrf.mxu1  ;;  %5625 = vmatmul.msk.bf16.gmra.mxu2 %vm104_vm1, %v650_v7  ;;  %v5734_v7 = vld [vmem:[%s8572_s1 + $0x10] sm:$0x3]  ;;  %v1236_v18 = vunpack.c.l.b16 %v6690_v5  ;;  %v1034_v37 = vsel %vm59_vm2, %v1029_v20, %v1033_v23 }
  0xac   :  { %v1788_v14 = vsel %vm120_vm0, %v5734_v7, 0 }
  0xad   :  { %1797 = vmatpush.bf16.msra.mxu1 %v1788_v14  ;;  %v6732_v14 = vld [vmem:[%s8571_s0 + $0x48] sm:$0xff] }
  0xae   :  { %v250_v25 = vpop.f32.mrf.mxu2  ;;  %v1348_v20 = vshrl.u32 %v6732_v14, 16  ;;  %v1351_v23 = vshll.u32 %v6732_v14, 16 }
  0xaf   :  { %v145_v24 = vpop.f32.mrf.mxu0  ;;  %v275_v27 = vadd.f32 %v250_v25, %v6565_v9  ;;  %v1590_v9 = vsel %vm120_vm0, %v5706_v31, 0  ;;  %v1140_v25 = vrot.slane %v6541_v46, 1 }
  0xb0   :  { %v6647_v26 = vadd.f32 %v192_v17, %v145_v24  ;;  %1599 = vmatpush.bf16.msra.mxu3 %v1590_v9  ;;  %v1235_v17 = vunpack.c.l.b16 %v1212_v0  ;;  %v1139_v24 = vrot.slane %v6251_v13, 1  ;;  %v854_v9 = vsel %vm843_vm7, %v851_v43, %v853_v30 }
  0xb1   :  { %v389_v10 = vadd.f32 %v364_v16, %v275_v27  ;;  %v1350_v30 = vrot.slane %v1348_v20, 1 }
  0xb2   :  { %v366_v42 = vpop.f32.mrf.mxu3  ;;  %v1246_v31 = vpack.c.b16 %v1236_v18, %v1235_v17  ;;  %v1141_v29 = vsel %vm211_vm3, %v1139_v24, %v1140_v25 }
  0xb3   :  { %v566_v44 = vpop.f32.mrf.mxu1 }
  0xb4   :  { %v1331_v1 = vshrl.u32 %v1246_v31, 16  ;;  %v1252_v0 = vrot.slane %v1246_v31, 1 }
  0xb6   :  { %v252_v52 = vpop.f32.mrf.mxu2  ;;  %5659 = vmatmul.msk.bf16.gmra.mxu1 %vm104_vm1, %v1026_v45  ;;  %v1333_v43 = vrot.slane %v1331_v1, 1 }
  0xb7   :  { %v486_v53 = vpop.f32.mrf.mxu0  ;;  %v276_v56 = vadd.f32 %v252_v52, %v6580_v21  ;;  %5632 = vmatmul.msk.bf16.gmra.mxu3 %vm104_vm1, %v774_v49  ;;  %v1710_v21 = vsel %vm120_vm0, %v5728_v61, 0 }
  0xb8   :  { %v511_v36 = vadd.f32 %v486_v53, %v389_v10  ;;  %1719 = vmatpush.bf16.msra.mxu0 %v1710_v21  ;;  %v1334_v10 = vshll.u32 %v1246_v31, 16  ;;  %v1353_v31 = vrot.slane %v1351_v23, 2 }
  0xb9   :  { %v390_v59 = vadd.f32 %v366_v42, %v276_v56 }
  0xba   :  { %5637 = vmatmul.msk.bf16.gmra.mxu0 %vm104_vm1, %v852_v55  ;;  %v6678_v62 = vadd.f32 %v566_v44, %v511_v36  ;;  %v369_v63 = vpop.f32.mrf.mxu3  ;;  %v1336_v53 = vrot.slane %v1334_v10, 2 }
  0xbb   :  { %v568_v2 = vpop.f32.mrf.mxu1  ;;  %5626 = vmatmul.msk.bf16.gmra.mxu2 %vm104_vm1, %v652_v57 }
  0xbc   :  { %v1337_v61 = vor.u32 %v1336_v53, %v1333_v43 }
  0xbe   :  { %v255_v15 = vpop.f32.mrf.mxu2 }
  0xbf   :  { %v488_v16 = vpop.f32.mrf.mxu0  ;;  %v277_v19 = vadd.f32 %v255_v15, %v6595_v39  ;;  %v6709_v39 = vld [vmem:[%s8571_s0 + $0x40] sm:$0xff] }
  0xc0   :  { %v512_v47 = vadd.f32 %v488_v16, %v390_v59  ;;  %v1339_v45 = vshrl.u32 %v6709_v39, 16  ;;  %v1342_v48 = vshll.u32 %v6709_v39, 16 }
  0xc1   :  { %v391_v27 = vadd.f32 %v369_v63, %v277_v19 }
  0xc2   :  { %v6700_v28 = vadd.f32 %v568_v2, %v512_v47  ;;  %v371_v34 = vpop.f32.mrf.mxu3  ;;  %v1344_v55 = vrot.slane %v1342_v48, 2 }
  0xc3   :  { %v571_v32 = vpop.f32.mrf.mxu1 }
  0xc6   :  { %v257_v38 = vpop.f32.mrf.mxu2  ;;  %5660 = vmatmul.msk.bf16.gmra.mxu1 %vm104_vm1, %v1034_v37 }
  0xc7   :  { %v491_v8 = vpop.f32.mrf.mxu0  ;;  %v278_v42 = vadd.f32 %v257_v38, %v6615_v54  ;;  %5667 = vmatmul.msk.bf16.vlgmr.msrb.gmra.mxu3 %vm104_vm1, %v1141_v29  ;;  %v1341_v54 = vrot.slane %v1339_v45, 1  ;;  %v1354_v38 = vor.u32 %v1353_v31, %v1350_v30 }
  0xc8   :  { %v513_v44 = vadd.f32 %v491_v8, %v391_v27  ;;  %v1144_v8 = vrot.slane %v6603_v41, 1 }
  0xc9   :  { %v392_v49 = vadd.f32 %v371_v34, %v278_v42  ;;  %v1345_v63 = vor.u32 %v1344_v55, %v1341_v54  ;;  %v1255_v42 = vrot.slane %v6732_v14, 1 }
  0xca   :  { %5638 = vmatmul.msk.bf16.gmra.mxu0 %vm104_vm1, %v854_v9  ;;  %v6719_v50 = vadd.f32 %v571_v32, %v513_v44  ;;  %v374_v51 = vpop.f32.mrf.mxu3 }
  0xcb   :  { %v573_v52 = vpop.f32.mrf.mxu1  ;;  %5661 = vmatmul.msk.bf16.vlgmr.msrb.gmra.mxu2 %vm104_vm1, %v6519_v33  ;;  %v1253_v33 = vrot.slane %v6709_v39, 1  ;;  %v1346_v13 = vsel %vm405_vm5, %v1337_v61, %v1345_v63  ;;  %v1355_v45 = vsel %vm405_vm5, %v1345_v63, %v1354_v38 }
  0xcd   :  { %v1254_v17 = vsel %vm211_vm3, %v1252_v0, %v1253_v33  ;;  %v1146_v0 = vrot.slane %v6635_v4, 1 }
  0xce   :  { %v260_v56 = vpop.f32.mrf.mxu2 }
  0xcf   :  { %v493_v36 = vpop.f32.mrf.mxu0  ;;  %v279_v57 = vadd.f32 %v260_v56, %v6627_v6  ;;  %v1143_v6 = vsel %vm211_vm3, %v1140_v25, %v1142_v60 }
  0xd0   :  { %v514_v59 = vadd.f32 %v493_v36, %v392_v49 }
  0xd1   :  { %v393_v21 = vadd.f32 %v374_v51, %v279_v57  ;;  %v1256_v51 = vsel %vm211_vm3, %v1253_v33, %v1255_v42 }
  0xd2   :  { %v6725_v2 = vadd.f32 %v573_v52, %v514_v59  ;;  %v376_v3 = vpop.f32.mrf.mxu3 }
  0xd3   :  { %v576_v7 = vpop.f32.mrf.mxu1 }
  0xd6   :  { %v262_v15 = vpop.f32.mrf.mxu2  ;;  %5695 = vmatmul.msk.bf16.vlgmr.msrb.gmra.mxu1 %vm104_vm1, %v1346_v13 }
  0xd7   :  { %v496_v16 = vpop.f32.mrf.mxu0  ;;  %v280_v19 = vadd.f32 %v262_v15, %v6647_v26  ;;  %5668 = vmatmul.msk.bf16.gmra.mxu3 %vm104_vm1, %v1143_v6 }
  0xd8   :  { %v515_v47 = vadd.f32 %v496_v16, %v393_v21 }
  0xd9   :  { %v394_v24 = vadd.f32 %v376_v3, %v280_v19 }
  0xda   :  { %5689 = vmatmul.msk.bf16.vlgmr.msrb.gmra.mxu0 %vm104_vm1, %v1254_v17  ;;  %v6742_v27 = vadd.f32 %v576_v7, %v515_v47  ;;  %v379_v25 = vpop.f32.mrf.mxu3 }
  0xdb   :  { %v578_v34 = vpop.f32.mrf.mxu1  ;;  %5662 = vmatmul.msk.bf16.gmra.mxu2 %vm104_vm1, %v6541_v46  ;;  %v6755_v46 = vld [vmem:[%s8571_s0 + $0x50] sm:$0xff] }
  0xdc   :  { %v1357_v53 = vshrl.u32 %v6755_v46, 16  ;;  %v1360_v54 = vshll.u32 %v6755_v46, 16  ;;  %v1257_v6 = vrot.slane %v6755_v46, 1 }
  0xde   :  { %v265_v26 = vpop.f32.mrf.mxu2  ;;  %v1359_v59 = vrot.slane %v1357_v53, 1  ;;  %v1362_v61 = vrot.slane %v1360_v54, 2  ;;  %v1258_v47 = vsel %vm211_vm3, %v1255_v42, %v1257_v6  ;;  %v1148_v42 = vrot.slane %v6671_v58, 1  ;;  %v5740_v53 = vld [vmem:[%s8572_s1 + $0x2] sm:$0x3] }
  0xdf   :  { %v498_v32 = vpop.f32.mrf.mxu0  ;;  %v281_v37 = vadd.f32 %v265_v26, %v6582_v22  ;;  %v1145_v22 = vsel %vm211_vm3, %v1142_v60, %v1144_v8  ;;  %v1874_v54 = vld [vmem:[%s8572_s1] sm:$0x3] }
  0xe0   :  { %v516_v29 = vadd.f32 %v498_v32, %v394_v24  ;;  %v1363_v3 = vor.u32 %v1362_v61, %v1359_v59  ;;  %v1149_v58 = vsel %vm211_vm3, %v1146_v0, %v1148_v42  ;;  %v1965_v59 = vsel %vm120_vm0, %v5740_v53, 0 }
  0xe1   :  { %v395_v9 = vadd.f32 %v379_v25, %v281_v37  ;;  %v2012_v61 = vsel %vm120_vm0, %v1874_v54, 0  ;;  %1974 = vmatpush.bf16.msrb.mxu2 %v1965_v59 }
  0xe2   :  { %v6748_v1 = vadd.f32 %v578_v34, %v516_v29  ;;  %v381_v10 = vpop.f32.mrf.mxu3  ;;  %v1364_v16 = vsel %vm405_vm5, %v1354_v38, %v1363_v3  ;;  %2021 = vmatpush.bf16.msrb.mxu3 %v2012_v61 }
  0xe3   :  { %v581_v44 = vpop.f32.mrf.mxu1 }
  0xe6   :  { %v267_v48 = vpop.f32.mrf.mxu2  ;;  %5696 = vmatmul.msk.bf16.gmra.mxu1 %vm104_vm1, %v1355_v45 }
  0xe7   :  { %v501_v49 = vpop.f32.mrf.mxu0  ;;  %v282_v52 = vadd.f32 %v267_v48, %v6597_v40  ;;  %5669 = vmatmul.msk.bf16.gmra.mxu3 %vm104_vm1, %v1145_v22 }
  0xe8   :  { %v517_v43 = vadd.f32 %v501_v49, %v395_v9 }
  0xe9   :  { %v396_v55 = vadd.f32 %v381_v10, %v282_v52  ;;  %v6811_v52 = vld [vmem:[%s8573_s2] ss:$0 sm:$0xff] }
  0xea   :  { %5690 = vmatmul.msk.bf16.gmra.mxu0 %vm104_vm1, %v1256_v51  ;;  %v6765_v56 = vadd.f32 %v581_v44, %v517_v43  ;;  %v384_v36 = vpop.f32.mrf.mxu3  ;;  %v1523_v43 = vld [vmem:[%s8571_s0 + $0x3c] sm:$0xc] }
  0xeb   :  { %v583_v57 = vpop.f32.mrf.mxu1  ;;  %5663 = vmatmul.msk.bf16.gmra.mxu2 %vm104_vm1, %v6571_v11  ;;  %v6778_v11 = vld [vmem:[%s8571_s0 + $0x58] sm:$0xff] }
  0xec   :  { %v1366_v24 = vshrl.u32 %v6778_v11, 16  ;;  %v1369_v25 = vshll.u32 %v6778_v11, 16 }
  0xee   :  { %v270_v40 = vpop.f32.mrf.mxu2  ;;  %v1368_v32 = vrot.slane %v1366_v24, 1  ;;  %v1371_v37 = vrot.slane %v1369_v25, 2  ;;  %v5767_v25 = vld [vmem:[%s8572_s1 + $0x4] sm:$0x3] }
  0xef   :  { %v503_v63 = vpop.f32.mrf.mxu0  ;;  %v283_v60 = vadd.f32 %v270_v40, %v6617_v35  ;;  %v1147_v35 = vsel %vm211_vm3, %v1144_v8, %v1146_v0  ;;  %v1547_v0 = vunpack.c.h.b16 %v6690_v5 }
  0xf0   :  { %v518_v21 = vadd.f32 %v503_v63, %v396_v55  ;;  %v6795_v9 = vor.u32 %v1371_v37, %v1368_v32  ;;  %v2080_v32 = vsel %vm120_vm0, %v5767_v25, 0 }
  0xf1   :  { %v397_v33 = vadd.f32 %v384_v36, %v283_v60  ;;  %2089 = vmatpush.bf16.msrb.mxu0 %v2080_v32 }
  0xf2   :  { %v6771_v7 = vadd.f32 %v583_v57, %v518_v21  ;;  %v386_v13 = vpop.f32.mrf.mxu3  ;;  %v1373_v49 = vsel %vm405_vm5, %v1363_v3, %v6795_v9  ;;  %v1222_v21 = vld [vmem:[%s8571_s0 + $0x60] sm:$0x1]  ;;  %v1546_v3 = vunpack.c.l.b16 %v1523_v43 }
  0xf3   :  { %v586_v15 = vpop.f32.mrf.mxu1 }
  0xf6   :  { %v272_v17 = vpop.f32.mrf.mxu2  ;;  %5697 = vmatmul.msk.bf16.gmra.mxu1 %vm104_vm1, %v1364_v16  ;;  %v1245_v16 = vunpack.c.l.b16 %v1222_v21 }
  0xf7   :  { %v506_v19 = vpop.f32.mrf.mxu0  ;;  %v284_v20 = vadd.f32 %v272_v17, %v6629_v12  ;;  %5670 = vmatmul.msk.bf16.gmra.mxu3 %vm104_vm1, %v1147_v35  ;;  %v1325_v12 = vld [vmem:[%s8571_s0 + $0x60] sm:$0x3] }
  0xf8   :  { %v519_v23 = vadd.f32 %v506_v19, %v397_v33  ;;  %v1328_v10 = vunpack.c.l.b16 %v1325_v12 }
  0xf9   :  { %v398_v34 = vadd.f32 %v386_v13, %v284_v20  ;;  %v1557_v20 = vpack.c.b16 %v1547_v0, %v1546_v3 }
  0xfa   :  { %5691 = vmatmul.msk.bf16.gmra.mxu0 %vm104_vm1, %v1258_v47  ;;  %v6788_v30 = vadd.f32 %v586_v15, %v519_v23  ;;  %v802_v31 = vpop.f32.mrf.mxu3  ;;  %v6806_v51 = vpack.c.b16 %v1328_v10, %v1328_v10 }
  0xfb   :  { %v588_v26 = vpop.f32.mrf.mxu1  ;;  %5664 = vmatmul.msk.bf16.gmra.mxu2 %vm104_vm1, %v6603_v41  ;;  %v1259_v41 = vrot.slane %v6778_v11, 1  ;;  %v1642_v21 = vshrl.u32 %v1557_v20, 16  ;;  %v1645_v3 = vshll.u32 %v1557_v20, 16 }
  0xfc   :  { %v1375_v63 = vshrl.u32 %v6806_v51, 16  ;;  %v1378_v60 = vshll.u32 %v6806_v51, 16 }
  0xfd   :  { %v1260_v57 = vsel %vm211_vm3, %v1257_v6, %v1259_v41  ;;  %v1445_v6 = vld [vmem:[%s8571_s0 + $0x38] sm:$0xc] }
  0xfe   :  { %v680_v38 = vpop.f32.mrf.mxu2  ;;  %v1377_v19 = vrot.slane %v1375_v63, 1  ;;  %v1380_v47 = vrot.slane %v1378_v60, 2  ;;  %v1448_v23 = vunpack.c.l.b16 %v1445_v6 }
  0xff   :  { %v508_v29 = vpop.f32.mrf.mxu0  ;;  %v705_v44 = vadd.f32 %v680_v38, %v6678_v62  ;;  %v1563_v38 = vrot.slane %v1557_v20, 2  ;;  %v1647_v20 = vrot.slane %v1645_v3, 3 }
 0x100   :  { %v520_v8 = vadd.f32 %v508_v29, %v398_v34  ;;  %v1381_v29 = vor.u32 %v1380_v47, %v1377_v19  ;;  %v1449_v10 = vpack.c.b16 %v1236_v18, %v1448_v23  ;;  %v1756_v18 = vld [vmem:[%s8571_s0 + $0x3c] sm:$0x8]  ;;  %v1644_v47 = vrot.slane %v1642_v21, 2 }
 0x101   :  { %v827_v62 = vadd.f32 %v802_v31, %v705_v44  ;;  %v1759_v61 = vunpack.c.l.b16 %v1756_v18 }
 0x102   :  { %v6799_v45 = vadd.f32 %v588_v26, %v520_v8  ;;  %v804_v22 = vpop.f32.mrf.mxu3  ;;  %v1251_v26 = vpack.c.b16 %v1245_v16, %v1245_v16  ;;  %v1382_v43 = vsel %vm405_vm5, %v6795_v9, %v1381_v29  ;;  %v1450_v54 = vrot.slane %v1449_v10, 2 }
 0x103   :  { %v6802_v48 = vpop.f32.mrf.mxu1  ;;  %v1648_v32 = vor.u32 %v1647_v20, %v1644_v47 }
 0x106   :  { %v682_v55 = vpop.f32.mrf.mxu2  ;;  %5698 = vmatmul.msk.bf16.gmra.mxu1 %vm104_vm1, %v1373_v49  ;;  %v1261_v49 = vrot.slane %v1251_v26, 1 }
 0x107   :  { %v882_v36 = vpop.f32.mrf.mxu0  ;;  %5671 = vmatmul.msk.bf16.gmra.mxu3 %vm104_vm1, %v1149_v58  ;;  %v706_v33 = vadd.f32 %v682_v55, %v6700_v28  ;;  %v6849_v28 = vld [vmem:[%s8571_s0 + $0x44] sm:$0xff]  ;;  %v1451_v55 = vrot.slane %v6709_v39, 2 }
 0x108   :  { %v907_v40 = vadd.f32 %v882_v36, %v827_v62  ;;  %v1564_v8 = vrot.slane %v6849_v28, 2  ;;  %v1262_v59 = vsel %vm211_vm3, %v1259_v41, %v1261_v49 }
 0x109   :  { %v828_v24 = vadd.f32 %v804_v22, %v706_v33  ;;  %v1452_v39 = vsel %vm527_vm4, %v1450_v54, %v1451_v55  ;;  %v1650_v33 = vshrl.u32 %v6849_v28, 16 }
 0x10a   :  { %v920_v13 = vadd.f32 %v6811_v52, %v907_v40  ;;  %5692 = vmatmul.msk.bf16.gmra.mxu0 %vm104_vm1, %v1260_v57  ;;  %v807_v15 = vpop.f32.mrf.mxu3  ;;  %v1565_v53 = vsel %vm527_vm4, %v1563_v38, %v1564_v8 }
 0x10b   :  { %v6842_v17 = vpop.f32.mrf.mxu1  ;;  %5665 = vmatmul.msk.bf16.gmra.mxu2 %vm104_vm1, %v6635_v4  ;;  %v5773_v4 = vld [vmem:[%s8572_s1 + $0x6] sm:$0x3]  ;;  %v1652_v23 = vrot.slane %v1650_v33, 2 }
 0x10c   :  { %v930_v35 = vmax.f32 %v920_v13, 0.0  ;;  %v2193_v37 = vsel %vm120_vm0, %v5773_v4, 0  ;;  %v1653_v13 = vshll.u32 %v6849_v28, 16 }
 0x10d   :  { %2202 = vmatpush.bf16.msrb.mxu1 %v2193_v37 }
 0x10e   :  { %940 = vst [vmem:[#allocation2] sm:$0xff] %v930_v35  ;;  %v685_v34 = vpop.f32.mrf.mxu2 }
 0x10f   :  { %v884_v31 = vpop.f32.mrf.mxu0  ;;  %v707_v42 = vadd.f32 %v685_v34, %v6719_v50  ;;  %v1762_v34 = vrot.slane %v6849_v28, 3 }
 0x110   :  { %v908_v12 = vadd.f32 %v884_v31, %v828_v24  ;;  %v1655_v24 = vrot.slane %v1653_v13, 3 }
 0x111   :  { %v829_v50 = vadd.f32 %v807_v15, %v707_v42  ;;  %v1760_v15 = vpack.c.b16 %v1547_v0, %v1759_v61  ;;  %v1453_v42 = vrot.slane %v6732_v14, 2 }
 0x112   :  { %v921_v44 = vadd.f32 %v6811_v52, %v908_v12  ;;  %v809_v22 = vpop.f32.mrf.mxu3  ;;  %v1656_v37 = vor.u32 %v1655_v24, %v1652_v23 }
 0x113   :  { %v6866_v62 = vpop.f32.mrf.mxu1  ;;  %v1761_v4 = vrot.slane %v1760_v15, 3 }
 0x114   :  { %v931_v58 = vmax.f32 %v921_v44, 0.0 }
 0x115   :  { %v1763_v38 = vsel %vm843_vm7, %v1761_v4, %v1762_v34 }
 0x116   :  { %941 = vst [vmem:[#allocation2 + $0x8] sm:$0xff] %v931_v58  ;;  %v687_v36 = vpop.f32.mrf.mxu2  ;;  %5699 = vmatmul.msk.bf16.gmra.mxu1 %vm104_vm1, %v1382_v43  ;;  %v1454_v58 = vsel %vm527_vm4, %v1451_v55, %v1453_v42  ;;  %v6920_v55 = vld [vmem:[%s8571_s0 + $0x54] sm:$0xff] }
 0x117   :  { %v887_v57 = vpop.f32.mrf.mxu0  ;;  %5723 = vmatmul.msk.bf16.vlgmr.msra.gmra.mxu3 %vm104_vm1, %v1565_v53  ;;  %v708_v40 = vadd.f32 %v687_v36, %v6725_v2  ;;  %v6894_v2 = vld [vmem:[%s8571_s0 + $0x4c] sm:$0xff]  ;;  %v1671_v4 = vshll.u32 %v6920_v55, 16 }
 0x118   :  { %v909_v9 = vadd.f32 %v887_v57, %v829_v50  ;;  %v1566_v5 = vrot.slane %v6894_v2, 2  ;;  %v1662_v54 = vshll.u32 %v6894_v2, 16 }
 0x119   :  { %v830_v16 = vadd.f32 %v809_v22, %v708_v40  ;;  %v1568_v40 = vrot.slane %v6920_v55, 2 }
 0x11a   :  { %v922_v63 = vadd.f32 %v6811_v52, %v909_v9  ;;  %5693 = vmatmul.msk.bf16.gmra.mxu0 %vm104_vm1, %v1262_v59  ;;  %v812_v60 = vpop.f32.mrf.mxu3  ;;  %v1567_v10 = vsel %vm527_vm4, %v1564_v8, %v1566_v5  ;;  %v1659_v8 = vshrl.u32 %v6894_v2, 16  ;;  %v1664_v9 = vrot.slane %v1662_v54, 3 }
 0x11b   :  { %v6886_v6 = vpop.f32.mrf.mxu1  ;;  %5701 = vmatmul.msk.bf16.vlgmr.msra.gmra.mxu2 %vm104_vm1, %v1452_v39  ;;  %v1764_v39 = vrot.slane %v6894_v2, 3  ;;  %v1569_v15 = vsel %vm527_vm4, %v1566_v5, %v1568_v40 }
 0x11c   :  { %v932_v41 = vmax.f32 %v922_v63, 0.0  ;;  %v1661_v59 = vrot.slane %v1659_v8, 2  ;;  %v1533_v8 = vld [vmem:[%s8571_s0 + $0x64] sm:$0x3] }
 0x11e   :  { %942 = vst [vmem:[#allocation2 + $0x10] sm:$0xff] %v932_v41  ;;  %v690_v35 = vpop.f32.mrf.mxu2  ;;  %v1665_v3 = vor.u32 %v1664_v9, %v1661_v59  ;;  %v1765_v41 = vsel %vm843_vm7, %v1762_v34, %v1764_v39 }
 0x11f   :  { %v889_v19 = vpop.f32.mrf.mxu0  ;;  %v709_v0 = vadd.f32 %v690_v35, %v6742_v27  ;;  %v1657_v27 = vsel %vm721_vm6, %v1648_v32, %v1656_v37 }
 0x120   :  { %v910_v25 = vadd.f32 %v889_v19, %v830_v16  ;;  %v1455_v16 = vrot.slane %v6755_v46, 2 }
 0x121   :  { %v831_v28 = vadd.f32 %v812_v60, %v709_v0  ;;  %v6946_v0 = vld [vmem:[%s8571_s0 + $0x5c] sm:$0xff] }
 0x122   :  { %v923_v31 = vadd.f32 %v6811_v52, %v910_v25  ;;  %v814_v26 = vpop.f32.mrf.mxu3  ;;  %v1456_v20 = vsel %vm527_vm4, %v1453_v42, %v1455_v16  ;;  %v1668_v25 = vshrl.u32 %v6920_v55, 16  ;;  %v1677_v9 = vshrl.u32 %v6946_v0, 16 }
 0x123   :  { %v6900_v29 = vpop.f32.mrf.mxu1 }
 0x124   :  { %v933_v12 = vmax.f32 %v923_v31, 0.0  ;;  %v1670_v32 = vrot.slane %v1668_v25, 2 }
 0x126   :  { %943 = vst [vmem:[#allocation2 + $0x18] sm:$0xff] %v933_v12  ;;  %v692_v44 = vpop.f32.mrf.mxu2  ;;  %5735 = vmatmul.msk.bf16.vlgmr.msra.gmra.mxu1 %vm104_vm1, %v1763_v38  ;;  %v1766_v38 = vrot.slane %v6920_v55, 3 }
 0x127   :  { %v892_v22 = vpop.f32.mrf.mxu0  ;;  %5724 = vmatmul.msk.bf16.gmra.mxu3 %vm104_vm1, %v1567_v10  ;;  %v710_v43 = vadd.f32 %v692_v44, %v6748_v1  ;;  %v1570_v10 = vrot.slane %v6946_v0, 2 }
 0x128   :  { %v911_v49 = vadd.f32 %v892_v22, %v831_v28 }
 0x129   :  { %v832_v1 = vadd.f32 %v814_v26, %v710_v43  ;;  %v1571_v43 = vsel %vm527_vm4, %v1568_v40, %v1570_v10 }
 0x12a   :  { %v924_v53 = vadd.f32 %v6811_v52, %v911_v49  ;;  %5729 = vmatmul.msk.bf16.vlgmr.msra.gmra.mxu0 %vm104_vm1, %v1657_v27  ;;  %v817_v14 = vpop.f32.mrf.mxu3 }
 0x12b   :  { %v6914_v50 = vpop.f32.mrf.mxu1  ;;  %5702 = vmatmul.msk.bf16.gmra.mxu2 %vm104_vm1, %v1454_v58  ;;  %v1767_v58 = vsel %vm843_vm7, %v1764_v39, %v1766_v38 }
 0x12c   :  { %v934_v18 = vmax.f32 %v924_v53, 0.0  ;;  %v1457_v53 = vrot.slane %v6778_v11, 2 }
 0x12e   :  { %944 = vst [vmem:[#allocation2 + $0x20] sm:$0xff] %v934_v18  ;;  %v695_v36 = vpop.f32.mrf.mxu2 }
 0x12f   :  { %v894_v57 = vpop.f32.mrf.mxu0  ;;  %v711_v63 = vadd.f32 %v695_v36, %v6765_v56  ;;  %v1666_v56 = vsel %vm721_vm6, %v1656_v37, %v1665_v3  ;;  %v1673_v37 = vrot.slane %v1671_v4, 3  ;;  %v1556_v36 = vunpack.c.l.b16 %v1533_v8 }
 0x130   :  { %v912_v61 = vadd.f32 %v894_v57, %v832_v1  ;;  %v1458_v1 = vsel %vm527_vm4, %v1455_v16, %v1457_v53 }
 0x131   :  { %v833_v35 = vadd.f32 %v817_v14, %v711_v63  ;;  %v1674_v22 = vor.u32 %v1673_v37, %v1670_v32  ;;  %v1562_v63 = vpack.c.b16 %v1556_v36, %v1556_v36 }
 0x132   :  { %v925_v60 = vadd.f32 %v6811_v52, %v912_v61  ;;  %v819_v21 = vpop.f32.mrf.mxu3  ;;  %v1680_v61 = vshll.u32 %v6946_v0, 16 }
 0x133   :  { %v6926_v13 = vpop.f32.mrf.mxu1  ;;  %v1675_v18 = vsel %vm721_vm6, %v1665_v3, %v1674_v22 }
 0x134   :  { %v935_v33 = vmax.f32 %v925_v60, 0.0 }
 0x136   :  { %945 = vst [vmem:[#allocation2 + $0x28] sm:$0xff] %v935_v33  ;;  %v697_v2 = vpop.f32.mrf.mxu2  ;;  %5736 = vmatmul.msk.bf16.gmra.mxu1 %vm104_vm1, %v1765_v41  ;;  %v1679_v33 = vrot.slane %v1677_v9, 2  ;;  %v1682_v41 = vrot.slane %v1680_v61, 3 }
 0x137   :  { %v897_v19 = vpop.f32.mrf.mxu0  ;;  %5725 = vmatmul.msk.bf16.gmra.mxu3 %vm104_vm1, %v1569_v15  ;;  %v712_v23 = vadd.f32 %v697_v2, %v6771_v7  ;;  %v5795_v2 = vld [vmem:[%s8572_s1 + $0x8] sm:$0x3] }
 0x138   :  { %v913_v47 = vadd.f32 %v897_v19, %v833_v35  ;;  %v1636_v35 = vld [vmem:[%s8571_s0 + $0x64] sm:$0x7]  ;;  %v5801_v19 = vld [vmem:[%s8572_s1 + $0xa] sm:$0x3] }
 0x139   :  { %v834_v7 = vadd.f32 %v819_v21, %v712_v23  ;;  %v1639_v25 = vunpack.c.l.b16 %v1636_v35 }
 0x13a   :  { %v926_v24 = vadd.f32 %v6811_v52, %v913_v47  ;;  %5730 = vmatmul.msk.bf16.gmra.mxu0 %vm104_vm1, %v1666_v56  ;;  %v822_v46 = vpop.f32.mrf.mxu3  ;;  %v1572_v56 = vrot.slane %v1562_v63, 2  ;;  %v2313_v47 = vsel %vm120_vm0, %v5795_v2, 0  ;;  %v7029_v2 = vld [vmem:[%s8571_s0 + $0x70] sm:$0xff]  }
 0x13b   :  { %v6940_v5 = vpop.f32.mrf.mxu1  ;;  %5703 = vmatmul.msk.bf16.gmra.mxu2 %vm104_vm1, %v1456_v20  ;;  %v2391_v20 = vsel %vm120_vm0, %v5801_v19, 0 }
 0x13c   :  { %v936_v34 = vmax.f32 %v926_v24, 0.0  ;;  %2322 = vmatpush.bf16.msra.mxu2 %v2313_v47  ;;  %2400 = vmatpush.bf16.msra.mxu3 %v2391_v20 }
 0x13e   :  { %946 = vst [vmem:[#allocation2 + $0x30] sm:$0xff] %v936_v34  ;;  %v700_v31 = vpop.f32.mrf.mxu2 }
 0x13f   :  { %v899_v26 = vpop.f32.mrf.mxu0  ;;  %v713_v42 = vadd.f32 %v700_v31, %v6788_v30  ;;  %v1573_v31 = vsel %vm527_vm4, %v1570_v10, %v1572_v56  ;;  %v5807_v10 = vld [vmem:[%s8572_s1 + $0xc] sm:$0x3] }
 0x140   :  { %v914_v12 = vadd.f32 %v899_v26, %v834_v7  ;;  %v1459_v26 = vrot.slane %v6806_v51, 2  ;;  %v6231_v51 = vld [vmem:[%s8571_s0 + $0x68] sm:$0xff]  }
 0x141   :  { %v835_v14 = vadd.f32 %v822_v46, %v713_v42  ;;  %v1683_v46 = vor.u32 %v1682_v41, %v1679_v33  ;;  %v1640_v42 = vpack.c.b16 %v1639_v25, %v1639_v25  ;;  %v1906_v61 = vshrl.u32 %v6231_v51, 16 }
 0x142   :  { %v927_v28 = vadd.f32 %v6811_v52, %v914_v12  ;;  %v824_v44 = vpop.f32.mrf.mxu3 }
 0x143   :  { %v6952_v49 = vpop.f32.mrf.mxu1  ;;  %v1684_v12 = vsel %vm721_vm6, %v1674_v22, %v1683_v46  ;;  %v1770_v9 = vrot.slane %v1640_v42, 3 }
 0x144   :  { %v937_v27 = vmax.f32 %v927_v28, 0.0 }
 0x146   :  { %947 = vst [vmem:[#allocation2 + $0x38] sm:$0xff] %v937_v27  ;;  %v702_v30 = vpop.f32.mrf.mxu2  ;;  %5737 = vmatmul.msk.bf16.gmra.mxu1 %vm104_vm1, %v1767_v58  ;;  %v1460_v27 = vsel %vm527_vm4, %v1457_v53, %v1459_v26  ;;  %v5829_v53 = vld [vmem:[%s8572_s1 + $0xe] sm:$0x3]  ;;  %v7059_v26 = vld [vmem:[%s8571_s0 + $0x78] sm:$0xff] }
 0x147   :  { %v902_v54 = vpop.f32.mrf.mxu0  ;;  %5726 = vmatmul.msk.bf16.gmra.mxu3 %vm104_vm1, %v1571_v43  ;;  %v714_v11 = vadd.f32 %v702_v30, %v6799_v45  ;;  %v1768_v45 = vrot.slane %v6946_v0, 3  ;;  %v1689_v43 = vshll.u32 %v1640_v42, 16  ;;  %v1908_v30 = vshll.u32 %v6231_v51, 16 }
 0x148   :  { %v915_v55 = vadd.f32 %v902_v54, %v835_v14  ;;  %v2504_v14 = vsel %vm120_vm0, %v5807_v10, 0  ;;  %v7013_v54 = vld [vmem:[%s8571_s0 + $0x70] sm:$0xff] }
 0x149   :  { %v836_v60 = vadd.f32 %v824_v44, %v714_v11  ;;  %v1769_v7 = vsel %vm843_vm7, %v1766_v38, %v1768_v45  ;;  %2513 = vmatpush.bf16.msra.mxu0 %v2504_v14  ;;  %v1691_v11 = vrot.slane %v1689_v43, 3  ;;  %v1913_v63 = vshll.u32 %v7013_v54, 16 }
 0x14a   :  { %v928_v57 = vadd.f32 %v6811_v52, %v915_v55  ;;  %5731 = vmatmul.msk.bf16.gmra.mxu0 %vm104_vm1, %v1675_v18  ;;  %v1177_v59 = vpop.f32.mrf.mxu3  ;;  %v2624_v18 = vsel %vm120_vm0, %v5829_v53, 0  ;;  %v2054_v14 = vrot.slane %v7013_v54, 1 }
 0x14b   :  { %v6969_v40 = vpop.f32.mrf.mxu1  ;;  %5704 = vmatmul.msk.bf16.gmra.mxu2 %vm104_vm1, %v1458_v1  ;;  %2633 = vmatpush.bf16.msra.mxu1 %v2624_v18  ;;  %v1915_v35 = vrot.slane %v1913_v63, 1  ;;  %v7083_v63 = vld [vmem:[%s8571_s0 + $0x7c] sm:$0xff] }
 0x14c   :  { %v938_v39 = vmax.f32 %v928_v57, 0.0 }
 0x14e   :  { %948 = vst [vmem:[#allocation2 + $0x40] sm:$0xff] %v938_v39  ;;  %v1109_v3 = vpop.f32.mrf.mxu2  ;;  %v1910_v39 = vrot.slane %v1908_v30, 1 }
 0x14f   :  { %v904_v21 = vpop.f32.mrf.mxu0  ;;  %v1110_v16 = vadd.f32 %v1109_v3, %v6802_v48 }
 0x150   :  { %v916_v15 = vadd.f32 %v904_v21, %v836_v60 }
 0x151   :  { %v1202_v48 = vadd.f32 %v1177_v59, %v1110_v16  ;;  %v1911_v16 = vor.u32 %v1910_v39, %v1906_v61 }
 0x152   :  { %v929_v23 = vadd.f32 %v6811_v52, %v916_v15  ;;  %v1179_v24 = vpop.f32.mrf.mxu3  ;;  %v1771_v15 = vsel %vm843_vm7, %v1768_v45, %v1770_v9 }
 0x153   :  { %v1410_v34 = vpop.f32.mrf.mxu1 }
 0x154   :  { %v939_v4 = vmax.f32 %v929_v23, 0.0  ;;  %v2150_v23 = vunpack.c.l.b16 %v7029_v2 }
 0x156   :  { %949 = vst [vmem:[#allocation2 + $0x48] sm:$0xff] %v939_v4  ;;  %v1111_v32 = vpop.f32.mrf.mxu2  ;;  %5738 = vmatmul.msk.bf16.gmra.mxu1 %vm104_vm1, %v1769_v7  ;;  %v6232_v7 = vld [vmem:[%s8571_s0 + $0x68] sm:$0xf0] }
 0x157   :  { %v1290_v37 = vpop.f32.mrf.mxu0  ;;  %v1112_v28 = vadd.f32 %v1111_v32, %v6842_v17  ;;  %5727 = vmatmul.msk.bf16.gmra.mxu3 %vm104_vm1, %v1573_v31  ;;  %v1686_v17 = vshrl.u32 %v1640_v42, 16  ;;  %v6233_v31 = vld [vmem:[%s8571_s0 + $0x68] sm:$0xe] }
 0x158   :  { %v1315_v44 = vadd.f32 %v1290_v37, %v1202_v48  ;;  %v1916_v48 = vsel %vm59_vm2, %v1911_v16, %v1915_v35 }
 0x159   :  { %v1203_v38 = vadd.f32 %v1179_v24, %v1112_v28  ;;  %v1688_v36 = vrot.slane %v1686_v17, 2 }
 0x15a   :  { %5732 = vmatmul.msk.bf16.gmra.mxu0 %vm104_vm1, %v1684_v12  ;;  %v7003_v22 = vadd.f32 %v1410_v34, %v1315_v44  ;;  %v1182_v58 = vpop.f32.mrf.mxu3  ;;  %v6234_v12 = vor.u32 %v6233_v31, %v6232_v7 }
 0x15b   :  { %v1412_v8 = vpop.f32.mrf.mxu1  ;;  %5705 = vmatmul.msk.bf16.gmra.mxu2 %vm104_vm1, %v1460_v27  ;;  %v1692_v33 = vor.u32 %v1691_v11, %v1688_v36 }
 0x15c   :  { %v2053_v43 = vrot.slane %v6234_v12, 1 }
 0x15d   :  { %v1693_v47 = vsel %vm721_vm6, %v1683_v46, %v1692_v33 }
 0x15e   :  { %v1114_v55 = vpop.f32.mrf.mxu2 }
 0x15f   :  { %v1292_v1 = vpop.f32.mrf.mxu0  ;;  %v1115_v57 = vadd.f32 %v1114_v55, %v6866_v62  ;;  %v2126_v62 = vld [vmem:[%s8571_s0 + $0x6c] sm:$0xe] }
 0x160   :  { %v1316_v59 = vadd.f32 %v1292_v1, %v1203_v38  ;;  %v2149_v20 = vunpack.c.l.b16 %v2126_v62  ;;  %v1917_v38 = vshrl.u32 %v7013_v54, 16  ;;  %v2055_v1 = vsel %vm211_vm3, %v2053_v43, %v2054_v14 }
 0x161   :  { %v1204_v60 = vadd.f32 %v1182_v58, %v1115_v57 }
 0x162   :  { %v7018_v21 = vadd.f32 %v1412_v8, %v1316_v59  ;;  %v1184_v3 = vpop.f32.mrf.mxu3  ;;  %v7048_v46 = vpack.c.b16 %v2150_v23, %v2149_v20 }
 0x163   :  { %v1415_v41 = vpop.f32.mrf.mxu1 }
 0x164   :  { %v2166_v44 = vrot.slane %v7048_v46, 1 }
 0x166   :  { %v1116_v19 = vpop.f32.mrf.mxu2  ;;  %5739 = vmatmul.msk.bf16.gmra.mxu1 %vm104_vm1, %v1771_v15  ;;  %v1925_v15 = vshrl.u32 %v7059_v26, 16 }
 0x167   :  { %v1295_v56 = vpop.f32.mrf.mxu0  ;;  %v1117_v0 = vadd.f32 %v1116_v19, %v6886_v6  ;;  %5762 = vmatmul.msk.bf16.vlgmr.msrb.gmra.mxu3 %vm104_vm1, %v6231_v51  ;;  %v7044_v6 = vld [vmem:[%s8571_s0 + $0x74] sm:$0xff]  ;;  %v1921_v51 = vshll.u32 %v7059_v26, 16 }
 0x168   :  { %v1317_v45 = vadd.f32 %v1295_v56, %v1204_v60  ;;  %v2167_v27 = vrot.slane %v7044_v6, 1  ;;  %v2056_v56 = vrot.slane %v7059_v26, 1 }
 0x169   :  { %v1205_v24 = vadd.f32 %v1184_v3, %v1117_v0  ;;  %v1923_v30 = vrot.slane %v1921_v51, 1 }
 0x16a   :  { %5733 = vmatmul.msk.bf16.gmra.mxu0 %vm104_vm1, %v1693_v47  ;;  %v7038_v25 = vadd.f32 %v1415_v41, %v1317_v45  ;;  %v1187_v4 = vpop.f32.mrf.mxu3  ;;  %v2168_v53 = vsel %vm211_vm3, %v2166_v44, %v2167_v27  ;;  %v2169_v41 = vrot.slane %v7083_v63, 1 }
 0x16b   :  { %v1417_v34 = vpop.f32.mrf.mxu1  ;;  %5757 = vmatmul.msk.bf16.vlgmr.msrb.gmra.mxu2 %vm104_vm1, %v1916_v48  ;;  %v1927_v45 = vor.u32 %v1925_v15, %v1923_v30 }
 0x16c   :  { %v2170_v0 = vsel %vm211_vm3, %v2167_v27, %v2169_v41 }
 0x16e   :  { %v1119_v32 = vpop.f32.mrf.mxu2 }
 0x16f   :  { %v1297_v37 = vpop.f32.mrf.mxu0  ;;  %v1120_v42 = vadd.f32 %v1119_v32, %v6900_v29  ;;  %v1919_v29 = vor.u32 %v1917_v38, %v1915_v35 }
 0x170   :  { %v1318_v28 = vadd.f32 %v1297_v37, %v1205_v24  ;;  %v2057_v24 = vsel %vm211_vm3, %v2054_v14, %v2056_v56 }
 0x171   :  { %v1206_v10 = vadd.f32 %v1187_v4, %v1120_v42  ;;  %v1924_v57 = vsel %vm59_vm2, %v1919_v29, %v1923_v30  ;;  %v7111_v42 = vld [vmem:[%s8571_s0 + $0x84] sm:$0xff] }
 0x172   :  { %v7066_v58 = vadd.f32 %v1417_v34, %v1318_v28  ;;  %v1189_v17 = vpop.f32.mrf.mxu3  ;;  %v2171_v38 = vrot.slane %v7111_v42, 1 }
 0x173   :  { %v1420_v8 = vpop.f32.mrf.mxu1 }
 0x174   :  { %v2172_v29 = vsel %vm211_vm3, %v2169_v41, %v2171_v38 }
 0x176   :  { %v1121_v18 = vpop.f32.mrf.mxu2  ;;  %5790 = vmatmul.msk.bf16.vlgmr.msrb.gmra.mxu1 %vm104_vm1, %v2168_v53 }
 0x177   :  { %v1300_v55 = vpop.f32.mrf.mxu0  ;;  %v1122_v36 = vadd.f32 %v1121_v18, %v6914_v50  ;;  %5763 = vmatmul.msk.bf16.gmra.mxu3 %vm104_vm1, %v7013_v54  ;;  %v7088_v50 = vld [vmem:[%s8571_s0 + $0x80] sm:$0xff] }
 0x178   :  { %v1319_v11 = vadd.f32 %v1300_v55, %v1206_v10  ;;  %v1929_v16 = vshll.u32 %v7088_v50, 16  ;;  %v1933_v51 = vshrl.u32 %v7088_v50, 16 }
 0x179   :  { %v1207_v59 = vadd.f32 %v1189_v17, %v1122_v36 }
 0x17a   :  { %5768 = vmatmul.msk.bf16.vlgmr.msrb.gmra.mxu0 %vm104_vm1, %v2055_v1  ;;  %v7077_v9 = vadd.f32 %v1420_v8, %v1319_v11  ;;  %v1192_v61 = vpop.f32.mrf.mxu3  ;;  %v1931_v20 = vrot.slane %v1929_v16, 1  ;;  %v2058_v8 = vrot.slane %v7088_v50, 1 }
 0x17b   :  { %v1422_v39 = vpop.f32.mrf.mxu1  ;;  %5758 = vmatmul.msk.bf16.gmra.mxu2 %vm104_vm1, %v1924_v57 }
 0x17c   :  { %v1932_v7 = vsel %vm59_vm2, %v1927_v45, %v1931_v20  ;;  %v1935_v30 = vor.u32 %v1933_v51, %v1931_v20  ;;  %v2059_v36 = vsel %vm211_vm3, %v2056_v56, %v2058_v8  ;;  %v2136_v20 = vld [vmem:[%s8571_s0 + $0x94] sm:$0x1] }
 0x17e   :  { %v1124_v54 = vpop.f32.mrf.mxu2 }
 0x17f   :  { %v1302_v60 = vpop.f32.mrf.mxu0  ;;  %v1125_v3 = vadd.f32 %v1124_v54, %v6926_v13 }
 0x180   :  { %v1320_v33 = vadd.f32 %v1302_v60, %v1207_v59 }
 0x181   :  { %v1208_v35 = vadd.f32 %v1192_v61, %v1125_v3 }
 0x182   :  { %v7094_v62 = vadd.f32 %v1422_v39, %v1320_v33  ;;  %v1194_v19 = vpop.f32.mrf.mxu3 }
 0x183   :  { %v1425_v47 = vpop.f32.mrf.mxu1 }
 0x186   :  { %v1126_v48 = vpop.f32.mrf.mxu2  ;;  %5791 = vmatmul.msk.bf16.gmra.mxu1 %vm104_vm1, %v2170_v0 }
 0x187   :  { %v1305_v13 = vpop.f32.mrf.mxu0  ;;  %v1127_v4 = vadd.f32 %v1126_v48, %v6940_v5  ;;  %5764 = vmatmul.msk.bf16.gmra.mxu3 %vm104_vm1, %v7059_v26  ;;  %v7116_v5 = vld [vmem:[%s8571_s0 + $0x88] sm:$0xff] }
 0x188   :  { %v1321_v34 = vadd.f32 %v1305_v13, %v1208_v35  ;;  %v1937_v10 = vshll.u32 %v7116_v5, 16  ;;  %v1941_v35 = vshrl.u32 %v7116_v5, 16  ;;  %v2060_v45 = vrot.slane %v7116_v5, 1 }
 0x189   :  { %v1209_v31 = vadd.f32 %v1194_v19, %v1127_v4 }
 0x18a   :  { %5769 = vmatmul.msk.bf16.gmra.mxu0 %vm104_vm1, %v2057_v24  ;;  %v7105_v32 = vadd.f32 %v1425_v47, %v1321_v34  ;;  %v1197_v37 = vpop.f32.mrf.mxu3  ;;  %v1939_v18 = vrot.slane %v1937_v10, 1 }
 0x18b   :  { %v1427_v12 = vpop.f32.mrf.mxu1  ;;  %5759 = vmatmul.msk.bf16.gmra.mxu2 %vm104_vm1, %v1932_v7  ;;  %v2159_v7 = vunpack.c.l.b16 %v2136_v20 }
 0x18c   :  { %v1940_v59 = vsel %vm59_vm2, %v1935_v30, %v1939_v18  ;;  %v1943_v24 = vor.u32 %v1941_v35, %v1939_v18  ;;  %v2248_v30 = vshll.u32 %v7048_v46, 16  ;;  %v2253_v18 = vshrl.u32 %v7044_v6, 16  ;;  %v2788_v35 = vld [vmem:[%s8572_s1] sm:$0x3] }
 0x18d   :  { %v2926_v20 = vsel %vm120_vm0, %v2788_v35, 0 }
 0x18e   :  { %v1129_v26 = vpop.f32.mrf.mxu2  ;;  %2935 = vmatpush.bf16.msrb.mxu0 %v2926_v20  ;;  %v7244_v20 = vld [vmem:[%s8573_s2] ss:$0 sm:$0xff] }
 0x18f   :  { %v1307_v28 = vpop.f32.mrf.mxu0  ;;  %v1130_v44 = vadd.f32 %v1129_v26, %v6952_v49  ;;  %v1875_v49 = vld [vmem:[%s8571_s0 + $0x90] sm:$0x1] }
 0x190   :  { %v1322_v27 = vadd.f32 %v1307_v28, %v1209_v31  ;;  %v1898_v61 = vunpack.c.l.b16 %v1875_v49 }
 0x191   :  { %v1210_v17 = vadd.f32 %v1197_v37, %v1130_v44  ;;  %v5835_v44 = vld [vmem:[%s8572_s1 + $0x10] sm:$0x3] }
 0x192   :  { %v7122_v43 = vadd.f32 %v1427_v12, %v1322_v27  ;;  %v1199_v14 = vpop.f32.mrf.mxu3  ;;  %v7144_v33 = vpack.c.b16 %v1898_v61, %v1898_v61  ;;  %v2061_v12 = vsel %vm211_vm3, %v2058_v8, %v2060_v45  ;;  %v5841_v27 = vld [vmem:[%s8572_s1 + $0x2] sm:$0x3]  ;;  %v2702_v51 = vsel %vm120_vm0, %v5835_v44, 0 }
 0x193   :  { %v1430_v53 = vpop.f32.mrf.mxu1  ;;  %v2879_v10 = vsel %vm120_vm0, %v5841_v27, 0  ;;  %v2165_v8 = vpack.c.b16 %v2159_v7, %v2159_v7  ;;  %2711 = vmatpush.bf16.msrb.mxu2 %v2702_v51 }
 0x194   :  { %v1945_v19 = vshll.u32 %v7144_v33, 16  ;;  %2888 = vmatpush.bf16.msrb.mxu3 %v2879_v10 }
 0x196   :  { %v1131_v55 = vpop.f32.mrf.mxu2  ;;  %5792 = vmatmul.msk.bf16.gmra.mxu1 %vm104_vm1, %v2172_v29  ;;  %v1947_v4 = vrot.slane %v1945_v19, 1  ;;  %v5868_v19 = vld [vmem:[%s8572_s1 + $0x4] sm:$0x3] }
 0x197   :  { %v1310_v1 = vpop.f32.mrf.mxu0  ;;  %v1132_v11 = vadd.f32 %v1131_v55, %v6969_v40  ;;  %5765 = vmatmul.msk.bf16.gmra.mxu3 %vm104_vm1, %v7088_v50  ;;  %v7142_v40 = vld [vmem:[%s8571_s0 + $0x8c] sm:$0xff] }
 0x198   :  { %v1323_v57 = vadd.f32 %v1310_v1, %v1210_v17  ;;  %v2173_v16 = vrot.slane %v7142_v40, 1  ;;  %v2437_v1 = vld [vmem:[%s8571_s0 + $0x70] sm:$0xc] }
 0x199   :  { %v1211_v39 = vadd.f32 %v1199_v14, %v1132_v11 }
 0x19a   :  { %5770 = vmatmul.msk.bf16.gmra.mxu0 %vm104_vm1, %v2059_v36  ;;  %v7136_v54 = vadd.f32 %v1430_v53, %v1323_v57  ;;  %v1601_v60 = vpop.f32.mrf.mxu3  ;;  %v2174_v13 = vsel %vm211_vm3, %v2171_v38, %v2173_v16  ;;  %v1948_v38 = vsel %vm59_vm2, %v1943_v24, %v1947_v4  ;;  %v2245_v53 = vshrl.u32 %v7048_v46, 16 }
 0x19b   :  { %v1432_v3 = vpop.f32.mrf.mxu1  ;;  %5760 = vmatmul.msk.bf16.gmra.mxu2 %vm104_vm1, %v1940_v59  ;;  %v2256_v36 = vshll.u32 %v7044_v6, 16  ;;  %v2175_v46 = vrot.slane %v2165_v8, 1 }
 0x19c   :  { %v2247_v59 = vrot.slane %v2245_v53, 1 }
 0x19e   :  { %v1488_v41 = vpop.f32.mrf.mxu2 }
 0x19f   :  { %v1312_v50 = vpop.f32.mrf.mxu0  ;;  %v1513_v56 = vadd.f32 %v1488_v41, %v7003_v22  ;;  %v2359_v22 = vld [vmem:[%s8571_s0 + $0x6c] sm:$0xc]  ;;  %v2461_v41 = vunpack.c.h.b16 %v7029_v2 }
 0x1a0   :  { %v1324_v15 = vadd.f32 %v1312_v50, %v1211_v39  ;;  %v2362_v28 = vunpack.c.l.b16 %v2359_v22  ;;  %v2460_v50 = vunpack.c.l.b16 %v2437_v1  ;;  %v2062_v22 = vrot.slane %v7144_v33, 1 }
 0x1a1   :  { %v1626_v34 = vadd.f32 %v1601_v60, %v1513_v56  ;;  %v2250_v60 = vrot.slane %v2248_v30, 2  ;;  %v2365_v56 = vrot.slane %v7044_v6, 2 }
 0x1a2   :  { %v7150_v47 = vadd.f32 %v1432_v3, %v1324_v15  ;;  %v1603_v0 = vpop.f32.mrf.mxu3  ;;  %v2255_v3 = vrot.slane %v2253_v18, 1 }
 0x1a3   :  { %v1799_v48 = vpop.f32.mrf.mxu1 }
 0x1a6   :  { %v1490_v31 = vpop.f32.mrf.mxu2  ;;  %5793 = vmatmul.msk.bf16.gmra.mxu1 %vm104_vm1, %v2174_v13 }
 0x1a7   :  { %v1721_v37 = vpop.f32.mrf.mxu0  ;;  %5766 = vmatmul.msk.bf16.gmra.mxu3 %vm104_vm1, %v7116_v5  ;;  %v1514_v17 = vadd.f32 %v1490_v31, %v7018_v21  ;;  %v2363_v21 = vpack.c.b16 %v2150_v23, %v2362_v28 }
 0x1a8   :  { %v1746_v26 = vadd.f32 %v1721_v37, %v1626_v34  ;;  %v7204_v34 = vpack.c.b16 %v2461_v41, %v2460_v50  ;;  %v2176_v37 = vsel %vm211_vm3, %v2173_v16, %v2175_v46  ;;  %v2063_v16 = vsel %vm211_vm3, %v2060_v45, %v2062_v22 }
 0x1a9   :  { %v1627_v57 = vadd.f32 %v1603_v0, %v1514_v17  ;;  %v2364_v23 = vrot.slane %v2363_v21, 2  ;;  %v2258_v0 = vrot.slane %v2256_v36, 2  ;;  %v2262_v36 = vshrl.u32 %v7083_v63, 16 }
 0x1aa   :  { %v1824_v14 = vadd.f32 %v1799_v48, %v1746_v26  ;;  %5771 = vmatmul.msk.bf16.gmra.mxu0 %vm104_vm1, %v2061_v12  ;;  %v1606_v29 = vpop.f32.mrf.mxu3  ;;  %v2994_v48 = vsel %vm120_vm0, %v5868_v19, 0  ;;  %v2251_v12 = vor.u32 %v2250_v60, %v2247_v59  ;;  %v2556_v51 = vshrl.u32 %v7204_v34, 16 }
 0x1ab   :  { %v1801_v55 = vpop.f32.mrf.mxu1  ;;  %5761 = vmatmul.msk.bf16.gmra.mxu2 %vm104_vm1, %v1948_v38  ;;  %3003 = vmatpush.bf16.msrb.mxu1 %v2994_v48  ;;  %v2366_v33 = vsel %vm527_vm4, %v2364_v23, %v2365_v56  ;;  %v7218_v26 = vor.u32 %v2258_v0, %v2255_v3  ;;  %v2559_v17 = vshll.u32 %v7204_v34, 16  ;;  %v2264_v3 = vrot.slane %v2262_v36, 1 }
 0x1ac   :  { %v1834_v49 = vadd.f32 %v6811_v52, %v1824_v14  ;;  %v2558_v30 = vrot.slane %v2556_v51, 2  ;;  %v2477_v19 = vrot.slane %v7204_v34, 2 }
 0x1ad   :  { %v2260_v53 = vsel %vm405_vm5, %v2251_v12, %v7218_v26 }
 0x1ae   :  { %v1844_v11 = vmax.f32 %v1834_v49, 0.0  ;;  %v1493_v61 = vpop.f32.mrf.mxu2 }
 0x1af   :  { %v1723_v39 = vpop.f32.mrf.mxu0  ;;  %v1515_v13 = vadd.f32 %v1493_v61, %v7038_v25  ;;  %v7213_v25 = vld [vmem:[%s8571_s0 + $0x78] sm:$0xff] }
 0x1b0   :  { %1854 = vst [vmem:[#allocation2 + $0x50] sm:$0xff] %v1844_v11  ;;  %v1747_v15 = vadd.f32 %v1723_v39, %v1627_v57  ;;  %v2564_v14 = vshrl.u32 %v7213_v25, 16  ;;  %v2567_v8 = vshll.u32 %v7213_v25, 16  ;;  %v2265_v11 = vshll.u32 %v7083_v63, 16 }
 0x1b1   :  { %v1628_v44 = vadd.f32 %v1606_v29, %v1515_v13  ;;  %v2478_v0 = vrot.slane %v7213_v25, 2 }
 0x1b2   :  { %v1825_v24 = vadd.f32 %v1801_v55, %v1747_v15  ;;  %v1608_v4 = vpop.f32.mrf.mxu3  ;;  %v2561_v55 = vrot.slane %v2559_v17, 3  ;;  %v2566_v21 = vrot.slane %v2564_v14, 2  ;;  %v2569_v1 = vrot.slane %v2567_v8, 3 }
 0x1b3   :  { %v1804_v31 = vpop.f32.mrf.mxu1  ;;  %v2267_v50 = vrot.slane %v2265_v11, 2  ;;  %v2271_v17 = vshrl.u32 %v7111_v42, 16  ;;  %v2274_v14 = vshll.u32 %v7111_v42, 16 }
 0x1b4   :  { %v1835_v7 = vadd.f32 %v6811_v52, %v1825_v24  ;;  %v2562_v39 = vor.u32 %v2561_v55, %v2558_v30  ;;  %v2570_v60 = vor.u32 %v2569_v1, %v2566_v21 }
 0x1b5   :  { %v2273_v30 = vrot.slane %v2271_v17, 1 }
 0x1b6   :  { %v1845_v28 = vmax.f32 %v1835_v7, 0.0  ;;  %v1495_v27 = vpop.f32.mrf.mxu2  ;;  %5794 = vmatmul.msk.bf16.gmra.mxu1 %vm104_vm1, %v2176_v37  ;;  %v2479_v37 = vsel %vm527_vm4, %v2477_v19, %v2478_v0 }
 0x1b7   :  { %v1726_v38 = vpop.f32.mrf.mxu0  ;;  %5802 = vmatmul.msk.bf16.vlgmr.msra.gmra.mxu3 %vm104_vm1, %v2366_v33  ;;  %v1516_v29 = vadd.f32 %v1495_v27, %v7066_v58 }
 0x1b8   :  { %1855 = vst [vmem:[#allocation2 + $0x58] sm:$0xff] %v1845_v28  ;;  %v1748_v10 = vadd.f32 %v1726_v38, %v1628_v44 }
 0x1b9   :  { %v1629_v46 = vadd.f32 %v1608_v4, %v1516_v29  ;;  %v2268_v4 = vor.u32 %v2267_v50, %v2264_v3 }
 0x1ba   :  { %v1826_v5 = vadd.f32 %v1804_v31, %v1748_v10  ;;  %5772 = vmatmul.msk.bf16.gmra.mxu0 %vm104_vm1, %v2063_v16  ;;  %v1611_v45 = vpop.f32.mrf.mxu3 }
 0x1bb   :  { %v1806_v49 = vpop.f32.mrf.mxu1  ;;  %5796 = vmatmul.msk.bf16.vlgmr.msra.gmra.mxu2 %vm104_vm1, %v2260_v53  ;;  %v2269_v6 = vsel %vm405_vm5, %v7218_v26, %v2268_v4 }
 0x1bc   :  { %v1836_v18 = vadd.f32 %v6811_v52, %v1826_v5  ;;  %v2367_v52 = vrot.slane %v7083_v63, 2  ;;  %v2571_v63 = vsel %vm721_vm6, %v2562_v39, %v2570_v60 }
 0x1be   :  { %v1846_v57 = vmax.f32 %v1836_v18, 0.0  ;;  %v1498_v58 = vpop.f32.mrf.mxu2  ;;  %v2368_v24 = vsel %vm527_vm4, %v2365_v56, %v2367_v52  ;;  %v2276_v18 = vrot.slane %v2274_v14, 2 }
 0x1bf   :  { %v1728_v59 = vpop.f32.mrf.mxu0  ;;  %v1517_v15 = vadd.f32 %v1498_v58, %v7077_v9  ;;  %v7251_v9 = vld [vmem:[%s8571_s0 + $0x80] sm:$0xff] }
 0x1c0   :  { %1856 = vst [vmem:[#allocation2 + $0x60] sm:$0xff] %v1846_v57  ;;  %v1749_v61 = vadd.f32 %v1728_v59, %v1629_v46  ;;  %v2573_v12 = vshrl.u32 %v7251_v9, 16  ;;  %v2576_v28 = vshll.u32 %v7251_v9, 16  ;;  %v2480_v1 = vrot.slane %v7251_v9, 2  ;;  %v7277_v46 = vld [vmem:[%s8571_s0 + $0x88] sm:$0xff] }
 0x1c1   :  { %v1630_v34 = vadd.f32 %v1611_v45, %v1517_v15  ;;  %v2369_v45 = vrot.slane %v7111_v42, 2  ;;  %v2277_v58 = vor.u32 %v2276_v18, %v2273_v30  ;;  %v2585_v15 = vshll.u32 %v7277_v46, 16 }
 0x1c2   :  { %v1827_v23 = vadd.f32 %v1806_v49, %v1749_v61  ;;  %v1613_v35 = vpop.f32.mrf.mxu3  ;;  %v2575_v51 = vrot.slane %v2573_v12, 2  ;;  %v2578_v10 = vrot.slane %v2576_v28, 3  ;;  %v2481_v3 = vsel %vm527_vm4, %v2478_v0, %v2480_v1 }
 0x1c3   :  { %v1809_v13 = vpop.f32.mrf.mxu1  ;;  %v2370_v42 = vsel %vm527_vm4, %v2367_v52, %v2369_v45  ;;  %v2371_v12 = vrot.slane %v7142_v40, 2 }
 0x1c4   :  { %v1837_v48 = vadd.f32 %v7244_v20, %v1827_v23  ;;  %v2579_v5 = vor.u32 %v2578_v10, %v2575_v51  ;;  %v2278_v23 = vsel %vm405_vm5, %v2268_v4, %v2277_v58 }
 0x1c6   :  { %v1847_v22 = vmax.f32 %v1837_v48, 0.0  ;;  %v1500_v7 = vpop.f32.mrf.mxu2  ;;  %5830 = vmatmul.msk.bf16.vlgmr.msra.gmra.mxu1 %vm104_vm1, %v2571_v63  ;;  %v2580_v57 = vsel %vm721_vm6, %v2570_v60, %v2579_v5  ;;  %v2582_v60 = vshrl.u32 %v7277_v46, 16  ;;  %v2587_v63 = vrot.slane %v2585_v15, 3 }
 0x1c7   :  { %v1731_v31 = vpop.f32.mrf.mxu0  ;;  %5803 = vmatmul.msk.bf16.gmra.mxu3 %vm104_vm1, %v2368_v24  ;;  %v1518_v56 = vadd.f32 %v1500_v7, %v7094_v62  ;;  %v2280_v24 = vshrl.u32 %v7142_v40, 16 }
 0x1c8   :  { %1857 = vst [vmem:[#allocation2 + $0x68] sm:$0xff] %v1847_v22  ;;  %v1750_v33 = vadd.f32 %v1731_v31, %v1630_v34  ;;  %v2584_v0 = vrot.slane %v2582_v60, 2  ;;  %v2283_v22 = vshll.u32 %v7142_v40, 16 }
 0x1c9   :  { %v1631_v53 = vadd.f32 %v1613_v35, %v1518_v56  ;;  %v2282_v28 = vrot.slane %v2280_v24, 1  ;;  %v5896_v24 = vld [vmem:[%s8572_s1 + $0x8] sm:$0x3] }
 0x1ca   :  { %v1828_v44 = vadd.f32 %v1809_v13, %v1750_v33  ;;  %5824 = vmatmul.msk.bf16.vlgmr.msra.gmra.mxu0 %vm104_vm1, %v2479_v37  ;;  %v1616_v27 = vpop.f32.mrf.mxu3  ;;  %v7292_v37 = vor.u32 %v2587_v63, %v2584_v0  ;;  %v2239_v33 = vld [vmem:[%s8571_s0 + $0x94] sm:$0x3]  ;;  %v5874_v63 = vld [vmem:[%s8572_s1 + $0x6] sm:$0x3] }
 0x1cb   :  { %v1811_v16 = vpop.f32.mrf.mxu1  ;;  %5797 = vmatmul.msk.bf16.gmra.mxu2 %vm104_vm1, %v2269_v6  ;;  %v2285_v6 = vrot.slane %v2283_v22, 2  ;;  %v2242_v51 = vunpack.c.l.b16 %v2239_v33  ;;  %v3107_v22 = vsel %vm120_vm0, %v5874_v63, 0 }
 0x1cc   :  { %v1838_v38 = vadd.f32 %v7244_v20, %v1828_v44  ;;  %v2589_v14 = vsel %vm721_vm6, %v2579_v5, %v7292_v37  ;;  %3116 = vmatpush.bf16.msra.mxu2 %v3107_v22  ;;  %v6253_v22 = vld [vmem:[%s8571_s0 + $0x9c] sm:$0xe] }
 0x1ce   :  { %v1848_v8 = vmax.f32 %v1838_v38, 0.0  ;;  %v1503_v26 = vpop.f32.mrf.mxu2  ;;  %v2482_v38 = vrot.slane %v7277_v46, 2 }
 0x1cf   :  { %v1733_v29 = vpop.f32.mrf.mxu0  ;;  %v1519_v49 = vadd.f32 %v1503_v26, %v7105_v32 }
 0x1d0   :  { %1858 = vst [vmem:[#allocation2 + $0x70] sm:$0xff] %v1848_v8  ;;  %v1751_v62 = vadd.f32 %v1733_v29, %v1631_v53  ;;  %v7311_v8 = vor.u32 %v2285_v6, %v2282_v28  ;;  %v2483_v30 = vsel %vm527_vm4, %v2480_v1, %v2482_v38 }
 0x1d1   :  { %v1632_v61 = vadd.f32 %v1616_v27, %v1519_v49  ;;  %v2243_v49 = vpack.c.b16 %v2242_v51, %v2242_v51 }
 0x1d2   :  { %v1829_v55 = vadd.f32 %v1811_v16, %v1751_v62  ;;  %v1618_v21 = vpop.f32.mrf.mxu3  ;;  %v7303_v16 = vld [vmem:[%s8571_s0 + $0x90] sm:$0xff] }
 0x1d3   :  { %v1814_v11 = vpop.f32.mrf.mxu1  ;;  %v2591_v18 = vshrl.u32 %v7303_v16, 16  ;;  %v2594_v5 = vshll.u32 %v7303_v16, 16 }
 0x1d4   :  { %v1839_v36 = vadd.f32 %v7244_v20, %v1829_v55 }
 0x1d5   :  { %v2596_v1 = vrot.slane %v2594_v5, 3 }
 0x1d6   :  { %v1849_v59 = vmax.f32 %v1839_v36, 0.0  ;;  %v1505_v32 = vpop.f32.mrf.mxu2  ;;  %5831 = vmatmul.msk.bf16.gmra.mxu1 %vm104_vm1, %v2580_v57  ;;  %v2593_v57 = vrot.slane %v2591_v18, 2 }
 0x1d7   :  { %v1736_v39 = vpop.f32.mrf.mxu0  ;;  %5804 = vmatmul.msk.bf16.gmra.mxu3 %vm104_vm1, %v2370_v42  ;;  %v1520_v52 = vadd.f32 %v1505_v32, %v7122_v43  ;;  %v2289_v42 = vshrl.u32 %v2243_v49, 16 }
 0x1d8   :  { %1859 = vst [vmem:[#allocation2 + $0x78] sm:$0xff] %v1849_v59  ;;  %v1752_v50 = vadd.f32 %v1736_v39, %v1632_v61  ;;  %v2292_v59 = vshll.u32 %v2243_v49, 16  ;;  %v2550_v39 = vld [vmem:[%s8571_s0 + $0x98] sm:$0x7] }
 0x1d9   :  { %v1633_v7 = vadd.f32 %v1618_v21, %v1520_v52  ;;  %v2291_v52 = vrot.slane %v2289_v42, 1  ;;  %v2553_v0 = vunpack.c.l.b16 %v2550_v39 }
 0x1da   :  { %v1830_v35 = vadd.f32 %v1814_v11, %v1752_v50  ;;  %5825 = vmatmul.msk.bf16.gmra.mxu0 %vm104_vm1, %v2481_v3  ;;  %v1621_v19 = vpop.f32.mrf.mxu3  ;;  %v7337_v50 = vld [vmem:[%s8571_s0 + $0x9c] sm:$0xf0] }
 0x1db   :  { %v1816_v13 = vpop.f32.mrf.mxu1  ;;  %5798 = vmatmul.msk.bf16.gmra.mxu2 %vm104_vm1, %v2278_v23  ;;  %v7339_v23 = vor.u32 %v2596_v1, %v2593_v57  ;;  %v7354_v6 = vpack.c.b16 %v2553_v0, %v2553_v0 }
 0x1dc   :  { %v1840_v48 = vadd.f32 %v7244_v20, %v1830_v35  ;;  %v2294_v35 = vrot.slane %v2292_v59, 2 }
 0x1dd   :  { %v2598_v28 = vsel %vm721_vm6, %v7292_v37, %v7339_v23  ;;  %v2600_v40 = vshrl.u32 %v7354_v6, 16 }
 0x1de   :  { %v1850_v34 = vmax.f32 %v1840_v48, 0.0  ;;  %v1508_v4 = vpop.f32.mrf.mxu2 }
 0x1df   :  { %v1738_v31 = vpop.f32.mrf.mxu0  ;;  %v1521_v56 = vadd.f32 %v1508_v4, %v7136_v54  ;;  %v2372_v54 = vsel %vm527_vm4, %v2369_v45, %v2371_v12  ;;  %v2287_v45 = vsel %vm405_vm5, %v2277_v58, %v7311_v8 }
 0x1e0   :  { %1860 = vst [vmem:[#allocation2 + $0x80] sm:$0xff] %v1850_v34  ;;  %v1753_v43 = vadd.f32 %v1738_v31, %v1633_v7  ;;  %v3227_v34 = vsel %vm120_vm0, %v5896_v24, 0  ;;  %v2484_v31 = vrot.slane %v7303_v16, 2  ;;  %v2676_v24 = vrot.slane %v7213_v25, 3  ;;  %v7416_v25 = vld [vmem:[%s8571_s0 + $0xac] sm:$0xff] }
 0x1e1   :  { %v1634_v26 = vadd.f32 %v1621_v19, %v1521_v56  ;;  %3236 = vmatpush.bf16.msra.mxu3 %v3227_v34 }
 0x1e2   :  { %v1831_v44 = vadd.f32 %v1816_v13, %v1753_v43  ;;  %v1623_v27 = vpop.f32.mrf.mxu3  ;;  %v2373_v13 = vrot.slane %v2243_v49, 2  ;;  %v2602_v49 = vrot.slane %v2600_v40, 2 }
 0x1e3   :  { %v1819_v17 = vpop.f32.mrf.mxu1 }
 0x1e4   :  { %v1841_v10 = vadd.f32 %v7244_v20, %v1831_v44  ;;  %v2374_v56 = vsel %vm527_vm4, %v2371_v12, %v2373_v13  ;;  %v2295_v44 = vor.u32 %v2294_v35, %v2291_v52  ;;  %v2603_v12 = vshll.u32 %v7354_v6, 16 }
 0x1e6   :  { %v1851_v53 = vmax.f32 %v1841_v10, 0.0  ;;  %v1510_v29 = vpop.f32.mrf.mxu2  ;;  %5832 = vmatmul.msk.bf16.gmra.mxu1 %vm104_vm1, %v2589_v14  ;;  %v2447_v14 = vld [vmem:[%s8571_s0 + $0x98] sm:$0x3] }
 0x1e7   :  { %v1741_v62 = vpop.f32.mrf.mxu0  ;;  %5805 = vmatmul.msk.bf16.gmra.mxu3 %vm104_vm1, %v2372_v54  ;;  %v1522_v21 = vadd.f32 %v1510_v29, %v7150_v47  ;;  %v7332_v47 = vld [vmem:[%s8571_s0 + $0x9c] sm:$0xff]   ;;  %v2296_v54 = vsel %vm405_vm5, %v7311_v8, %v2295_v44  ;;  %v5902_v29 = vld [vmem:[%s8572_s1 + $0xa] sm:$0x3]  ;;  %v2835_v44 = vshll.u32 %v7416_v25, 16 }
 0x1e8   :  { %1861 = vst [vmem:[#allocation2 + $0x88] sm:$0xff] %v1851_v53  ;;  %v1754_v55 = vadd.f32 %v1741_v62, %v1634_v26  ;;  %v2822_v53 = vshll.u32 %v7332_v47, 16  ;;  %v2670_v26 = vld [vmem:[%s8571_s0 + $0x70] sm:$0x8]  ;;  %v3305_v18 = vsel %vm120_vm0, %v5902_v29, 0  ;;  %v2678_v29 = vrot.slane %v7251_v9, 3 }
 0x1e9   :  { %v1635_v3 = vadd.f32 %v1623_v27, %v1522_v21  ;;  %3314 = vmatpush.bf16.msra.mxu0 %v3305_v18  ;;  %v5908_v21 = vld [vmem:[%s8572_s1 + $0xc] sm:$0x3] }
 0x1ea   :  { %v1832_v36 = vadd.f32 %v1819_v17, %v1754_v55  ;;  %5826 = vmatmul.msk.bf16.gmra.mxu0 %vm104_vm1, %v2483_v30  ;;  %v2023_v11 = vpop.f32.mrf.mxu3  ;;  %v2470_v30 = vunpack.c.l.b16 %v2447_v14  ;;  %v2605_v55 = vrot.slane %v2603_v12, 3  ;;  %v3418_v1 = vsel %vm120_vm0, %v5908_v21, 0 }
 0x1eb   :  { %v1821_v32 = vpop.f32.mrf.mxu1  ;;  %5799 = vmatmul.msk.bf16.gmra.mxu2 %vm104_vm1, %v2287_v45  ;;  %v2673_v45 = vunpack.c.l.b16 %v2670_v26  ;;  %3427 = vmatpush.bf16.msra.mxu1 %v3418_v1  ;;  %v2837_v12 = vrot.slane %v2835_v44, 1 }
 0x1ec   :  { %v1842_v61 = vadd.f32 %v7244_v20, %v1832_v36  ;;  %v2820_v36 = vshrl.u32 %v7332_v47, 16 }
 0x1ee   :  { %v1852_v58 = vmax.f32 %v1842_v61, 0.0  ;;  %v1976_v15 = vpop.f32.mrf.mxu2  ;;  %v2476_v61 = vpack.c.b16 %v2470_v30, %v2470_v30 }
 0x1ef   :  { %v1743_v60 = vpop.f32.mrf.mxu0  ;;  %v2024_v48 = vadd.f32 %v2023_v11, %v1976_v15  ;;  %v2824_v11 = vrot.slane %v2822_v53, 1  ;;  %v2674_v15 = vpack.c.b16 %v2461_v41, %v2673_v45 }
 0x1f0   :  { %1862 = vst [vmem:[#allocation2 + $0x90] sm:$0xff] %v1852_v58  ;;  %v1755_v19 = vadd.f32 %v1743_v60, %v1635_v3  ;;  %v2606_v58 = vor.u32 %v2605_v55, %v2602_v49  ;;  %v2679_v49 = vsel %vm843_vm7, %v2676_v24, %v2678_v29  ;;  %v7437_v55 = vld [vmem:[%s8571_s0 + $0xb4] sm:$0xff] }
 0x1f1   :  { %v2825_v3 = vor.u32 %v2824_v11, %v2820_v36  ;;  %v2675_v63 = vrot.slane %v2674_v15, 3  ;;  %v2839_v36 = vshrl.u32 %v7416_v25, 16  ;;  %v2843_v11 = vshll.u32 %v7437_v55, 16 }
 0x1f2   :  { %v1833_v7 = vadd.f32 %v1821_v32, %v1755_v19  ;;  %v2025_v4 = vpop.f32.mrf.mxu3  ;;  %v2486_v19 = vrot.slane %v2476_v61, 2  ;;  %v2607_v13 = vsel %vm721_vm6, %v7339_v23, %v2606_v58  ;;  %v2970_v61 = vrot.slane %v7416_v25, 1 }
 0x1f3   :  { %v2204_v33 = vpop.f32.mrf.mxu1  ;;  %v2677_v23 = vsel %vm843_vm7, %v2675_v63, %v2676_v24  ;;  %v7458_v24 = vld [vmem:[%s8571_s0 + $0xbc] sm:$0xff] }
 0x1f4   :  { %v1843_v43 = vadd.f32 %v7244_v20, %v1833_v7  ;;  %v2485_v20 = vsel %vm527_vm4, %v2482_v38, %v2484_v31  ;;  %v7376_v38 = vld [vmem:[%s8571_s0 + $0xa4] sm:$0xff]  ;;  %v2487_v41 = vsel %vm527_vm4, %v2484_v31, %v2486_v19  ;;  %v6254_v31 = vor.u32 %v6253_v22, %v7337_v50 }
 0x1f5   :  { %v2827_v57 = vshll.u32 %v7376_v38, 16 }
 0x1f6   :  { %v1853_v27 = vmax.f32 %v1843_v43, 0.0  ;;  %v1978_v51 = vpop.f32.mrf.mxu2  ;;  %5833 = vmatmul.msk.bf16.gmra.mxu1 %vm104_vm1, %v2598_v28 }
 0x1f7   :  { %v2091_v10 = vpop.f32.mrf.mxu0  ;;  %v2026_v37 = vadd.f32 %v2025_v4, %v1978_v51  ;;  %5806 = vmatmul.msk.bf16.gmra.mxu3 %vm104_vm1, %v2374_v56  ;;  %v2829_v60 = vrot.slane %v2827_v57, 1  ;;  %v2831_v56 = vshrl.u32 %v7376_v38, 16 }
 0x1f8   :  { %1863 = vst [vmem:[#allocation2 + $0x98] sm:$0xff] %v1853_v27  ;;  %v2116_v17 = vadd.f32 %v2091_v10, %v2024_v48 }
 0x1f9   :  { %v2830_v0 = vsel %vm59_vm2, %v2825_v3, %v2829_v60  ;;  %v2833_v40 = vor.u32 %v2831_v56, %v2829_v60 }
 0x1fa   :  { %5827 = vmatmul.msk.bf16.gmra.mxu0 %vm104_vm1, %v2485_v20  ;;  %v7386_v62 = vadd.f32 %v2204_v33, %v2116_v17  ;;  %v2028_v8 = vpop.f32.mrf.mxu3  ;;  %v2968_v17 = vrot.slane %v7376_v38, 1 }
 0x1fb   :  { %v2206_v5 = vpop.f32.mrf.mxu1  ;;  %5800 = vmatmul.msk.bf16.gmra.mxu2 %vm104_vm1, %v2296_v54  ;;  %v2838_v50 = vsel %vm59_vm2, %v2833_v40, %v2837_v12 }
 0x1fc   :  { %v2971_v60 = vsel %vm211_vm3, %v2968_v17, %v2970_v61 }
 0x1fe   :  { %v1981_v42 = vpop.f32.mrf.mxu2 }
 0x1ff   :  { %v2093_v59 = vpop.f32.mrf.mxu0  ;;  %v2029_v32 = vadd.f32 %v2028_v8, %v1981_v42 }
 0x200   :  { %v2117_v39 = vadd.f32 %v2093_v59, %v2026_v37  ;;  %v2967_v37 = vrot.slane %v6254_v31, 1 }
 0x202   :  { %v7398_v52 = vadd.f32 %v2206_v5, %v2117_v39  ;;  %v2030_v35 = vpop.f32.mrf.mxu3  ;;  %v2969_v26 = vsel %vm211_vm3, %v2967_v37, %v2968_v17  ;;  %v2845_v39 = vrot.slane %v2843_v11, 1  ;;  %v2682_v37 = vrot.slane %v7303_v16, 3 }
 0x203   :  { %v2209_v48 = vpop.f32.mrf.mxu1 }
 0x206   :  { %v1983_v34 = vpop.f32.mrf.mxu2  ;;  %5834 = vmatmul.msk.bf16.gmra.mxu1 %vm104_vm1, %v2607_v13 }
 0x207   :  { %v2096_v2 = vpop.f32.mrf.mxu0  ;;  %v2031_v7 = vadd.f32 %v2030_v35, %v1983_v34  ;;  %5858 = vmatmul.msk.bf16.vlgmr.msrb.gmra.mxu3 %vm104_vm1, %v2830_v0  ;;  %v2680_v35 = vrot.slane %v7277_v46, 3 }
 0x208   :  { %v2118_v4 = vadd.f32 %v2096_v2, %v2029_v32  ;;  %v2841_v32 = vor.u32 %v2839_v36, %v2837_v12  ;;  %v2847_v2 = vshrl.u32 %v7437_v55, 16 }
 0x209   :  { %v2681_v63 = vsel %vm843_vm7, %v2678_v29, %v2680_v35 }
 0x20a   :  { %5828 = vmatmul.msk.bf16.gmra.mxu0 %vm104_vm1, %v2487_v41  ;;  %v7419_v43 = vadd.f32 %v2209_v48, %v2118_v4  ;;  %v2033_v33 = vpop.f32.mrf.mxu3  ;;  %v2846_v15 = vsel %vm59_vm2, %v2841_v32, %v2845_v39  ;;  %v2851_v41 = vshll.u32 %v7458_v24, 16  ;;  %v2849_v31 = vor.u32 %v2847_v2, %v2845_v39 }
 0x20b   :  { %v2211_v28 = vpop.f32.mrf.mxu1  ;;  %5836 = vmatmul.msk.bf16.vlgmr.msrb.gmra.mxu2 %vm104_vm1, %v2677_v23 }
 0x20c   :  { %v2853_v56 = vrot.slane %v2851_v41, 1 }
 0x20e   :  { %v1986_v27 = vpop.f32.mrf.mxu2 }
 0x20f   :  { %v2098_v51 = vpop.f32.mrf.mxu0  ;;  %v2034_v10 = vadd.f32 %v2033_v33, %v1986_v27 }
 0x210   :  { %v2119_v20 = vadd.f32 %v2098_v51, %v2031_v7 }
 0x212   :  { %v7426_v14 = vadd.f32 %v2211_v28, %v2119_v20  ;;  %v2035_v54 = vpop.f32.mrf.mxu3  ;;  %v2972_v28 = vrot.slane %v7437_v55, 1  ;;  %v2854_v20 = vsel %vm59_vm2, %v2849_v31, %v2853_v56 }
 0x213   :  { %v2214_v53 = vpop.f32.mrf.mxu1 }
 0x216   :  { %v1988_v8 = vpop.f32.mrf.mxu2  ;;  %5869 = vmatmul.msk.bf16.vlgmr.msrb.gmra.mxu1 %vm104_vm1, %v2969_v26  ;;  %v2683_v26 = vsel %vm843_vm7, %v2680_v35, %v2682_v37 }
 0x217   :  { %v2101_v30 = vpop.f32.mrf.mxu0  ;;  %v2036_v18 = vadd.f32 %v2035_v54, %v1988_v8  ;;  %5859 = vmatmul.msk.bf16.gmra.mxu3 %vm104_vm1, %v2838_v50 }
 0x218   :  { %v2120_v5 = vadd.f32 %v2101_v30, %v2034_v10  ;;  %v2973_v10 = vsel %vm211_vm3, %v2970_v61, %v2972_v28  ;;  %v2855_v30 = vshrl.u32 %v7458_v24, 16 }
 0x21a   :  { %5863 = vmatmul.msk.bf16.vlgmr.msrb.gmra.mxu0 %vm104_vm1, %v7332_v47  ;;  %v7441_v45 = vadd.f32 %v2214_v53, %v2120_v5  ;;  %v2038_v9 = vpop.f32.mrf.mxu3  ;;  %v3040_v5 = vld [vmem:[%s8571_s0 + $0xa0] sm:$0xe]  ;;  %v2857_v61 = vor.u32 %v2855_v30, %v2853_v56 }
 0x21b   :  { %v2216_v21 = vpop.f32.mrf.mxu1  ;;  %5837 = vmatmul.msk.bf16.gmra.mxu2 %vm104_vm1, %v2679_v49  ;;  %v7494_v49 = vld [vmem:[%s8571_s0 + $0xa4] sm:$0xff]  }
 0x21e   :  { %v1991_v57 = vpop.f32.mrf.mxu2 }
 0x21f   :  { %v2103_v1 = vpop.f32.mrf.mxu0  ;;  %v2039_v42 = vadd.f32 %v2038_v9, %v1991_v57  ;;  %v3063_v57 = vunpack.c.l.b16 %v3040_v5 }
 0x220   :  { %v2121_v59 = vadd.f32 %v2103_v1, %v2036_v18  ;;  %v3064_v1 = vunpack.c.l.b16 %v7494_v49 }
 0x222   :  { %v7447_v58 = vadd.f32 %v2216_v21, %v2121_v59  ;;  %v2040_v47 = vpop.f32.mrf.mxu3  ;;  %v2974_v21 = vrot.slane %v7458_v24, 1  ;;  %v5936_v59 = vld [vmem:[%s8572_s1 + $0x10] sm:$0x3] }
 0x223   :  { %v2219_v3 = vpop.f32.mrf.mxu1 }
 0x224   :  { %v2975_v35 = vsel %vm211_vm3, %v2972_v28, %v2974_v21  ;;  %v5942_v28 = vld [vmem:[%s8572_s1 + $0x2] sm:$0x3] }
 0x225   :  { %v3793_v56 = vsel %vm120_vm0, %v5942_v28, 0 }
 0x226   :  { %v1993_v19 = vpop.f32.mrf.mxu2  ;;  %5870 = vmatmul.msk.bf16.gmra.mxu1 %vm104_vm1, %v2971_v60  ;;  %3802 = vmatpush.bf16.msrb.mxu0 %v3793_v56 }
 0x227   :  { %v2106_v48 = vpop.f32.mrf.mxu0  ;;  %v2041_v13 = vadd.f32 %v2040_v47, %v1993_v19  ;;  %5860 = vmatmul.msk.bf16.gmra.mxu3 %vm104_vm1, %v2846_v15  ;;  %v3616_v47 = vsel %vm120_vm0, %v5936_v59, 0  ;;  %v3074_v19 = vpack.c.b16 %v3064_v1, %v3063_v57 }
 0x228   :  { %v2122_v0 = vadd.f32 %v2106_v48, %v2039_v42  ;;  %v5930_v42 = vld [vmem:[%s8572_s1 + $0xe] sm:$0x3]  ;;  %3625 = vmatpush.bf16.msrb.mxu3 %v3616_v47 }
 0x229   :  { %v3538_v39 = vsel %vm120_vm0, %v5930_v42, 0  ;;  %v3159_v41 = vshrl.u32 %v3074_v19, 16 }
 0x22a   :  { %5864 = vmatmul.msk.bf16.gmra.mxu0 %vm104_vm1, %v7376_v38  ;;  %v7462_v22 = vadd.f32 %v2219_v3, %v2122_v0  ;;  %v2043_v46 = vpop.f32.mrf.mxu3  ;;  %v2789_v38 = vld [vmem:[%s8571_s0 + $0xc4] sm:$0x1]  ;;  %3547 = vmatpush.bf16.msrb.mxu2 %v3538_v39  ;;  %v7517_v0 = vld [vmem:[%s8571_s0 + $0xa8] sm:$0xff]  ;;  %v3273_v39 = vld [vmem:[%s8571_s0 + $0xa0] sm:$0xc] }
 0x22b   :  { %v2221_v34 = vpop.f32.mrf.mxu1  ;;  %5838 = vmatmul.msk.bf16.gmra.mxu2 %vm104_vm1, %v2681_v63  ;;  %v2812_v17 = vunpack.c.l.b16 %v2789_v38 }
 0x22d   :  { %v7479_v50 = vpack.c.b16 %v2812_v17, %v2812_v17 }
 0x22e   :  { %v1996_v7 = vpop.f32.mrf.mxu2 }
 0x22f   :  { %v2108_v4 = vpop.f32.mrf.mxu0  ;;  %v2044_v23 = vadd.f32 %v2043_v46, %v1996_v7  ;;  %v2859_v18 = vshll.u32 %v7479_v50, 16 }
 0x230   :  { %v2123_v33 = vadd.f32 %v2108_v4, %v2041_v13  ;;  %v2684_v13 = vrot.slane %v7354_v6, 3  ;;  %v3162_v4 = vshll.u32 %v3074_v19, 16  ;;  %v3167_v6 = vshrl.u32 %v7517_v0, 16 }
 0x231   :  { %v2861_v32 = vrot.slane %v2859_v18, 1 }
 0x232   :  { %v7471_v44 = vadd.f32 %v2221_v34, %v2123_v33  ;;  %v2045_v27 = vpop.f32.mrf.mxu3  ;;  %v2685_v7 = vsel %vm843_vm7, %v2682_v37, %v2684_v13  ;;  %v7571_v13 = vld [vmem:[%s8571_s0 + $0xac] sm:$0xff] }
 0x233   :  { %v2224_v51 = vpop.f32.mrf.mxu1  ;;  %v2862_v48 = vsel %vm59_vm2, %v2857_v61, %v2861_v32  ;;  %v3375_v32 = vunpack.c.h.b16 %v7494_v49 }
 0x236   :  { %v1998_v40 = vpop.f32.mrf.mxu2  ;;  %5871 = vmatmul.msk.bf16.gmra.mxu1 %vm104_vm1, %v2973_v10  ;;  %v3169_v10 = vrot.slane %v3167_v6, 1 }
 0x237   :  { %v2111_v12 = vpop.f32.mrf.mxu0  ;;  %v2046_v54 = vadd.f32 %v2045_v27, %v1998_v40  ;;  %5861 = vmatmul.msk.bf16.gmra.mxu3 %vm104_vm1, %v2854_v20  ;;  %v3161_v27 = vrot.slane %v3159_v41, 1 }
 0x238   :  { %v2124_v53 = vadd.f32 %v2111_v12, %v2044_v23  ;;  %v3170_v23 = vshll.u32 %v7517_v0, 16 }
 0x23a   :  { %5865 = vmatmul.msk.bf16.gmra.mxu0 %vm104_vm1, %v7416_v25  ;;  %v7483_v29 = vadd.f32 %v2224_v51, %v2124_v53  ;;  %v2402_v8 = vpop.f32.mrf.mxu3  ;;  %v3702_v51 = vld [vmem:[%s8572_s1] sm:$0x3]  ;;  %v3172_v20 = vrot.slane %v3170_v23, 2  ;;  %v2976_v53 = vrot.slane %v7479_v50, 1  ;;  %v7551_v50 = vld [vmem:[%s8571_s0 + $0xb0] sm:$0xff]  ;;  %v3392_v23 = vrot.slane %v7571_v13, 2 }
 0x23b   :  { %v2226_v16 = vpop.f32.mrf.mxu1  ;;  %5839 = vmatmul.msk.bf16.gmra.mxu2 %vm104_vm1, %v2683_v26  ;;  %v3840_v37 = vsel %vm120_vm0, %v3702_v51, 0 }
 0x23c   :  { %3849 = vmatpush.bf16.msrb.mxu1 %v3840_v37 }
 0x23e   :  { %v2324_v9 = vpop.f32.mrf.mxu2 }
 0x23f   :  { %v2113_v25 = vpop.f32.mrf.mxu0  ;;  %v2349_v11 = vadd.f32 %v2324_v9, %v7386_v62 }
 0x240   :  { %v2125_v36 = vadd.f32 %v2113_v25, %v2046_v54  ;;  %v2977_v25 = vsel %vm211_vm3, %v2974_v21, %v2976_v53 }
 0x241   :  { %v2427_v3 = vadd.f32 %v2402_v8, %v2349_v11  ;;  %v3173_v8 = vor.u32 %v3172_v20, %v3169_v10  ;;  %v3081_v11 = vrot.slane %v7517_v0, 1  ;;  %v7591_v10 = vld [vmem:[%s8571_s0 + $0xb8] sm:$0xff] }
 0x242   :  { %v7507_v62 = vadd.f32 %v2226_v16, %v2125_v36  ;;  %v2404_v60 = vpop.f32.mrf.mxu3  ;;  %v3080_v36 = vrot.slane %v3074_v19, 1  ;;  %v3276_v19 = vunpack.c.l.b16 %v3273_v39  ;;  %v3188_v53 = vshll.u32 %v7591_v10, 16 }
 0x243   :  { %v2635_v15 = vpop.f32.mrf.mxu1  ;;  %v3281_v39 = vrot.slane %v7551_v50, 2 }
 0x244   :  { %v3082_v47 = vsel %vm211_vm3, %v3080_v36, %v3081_v11  ;;  %v3277_v41 = vpack.c.b16 %v3064_v1, %v3276_v19 }
 0x246   :  { %v2326_v63 = vpop.f32.mrf.mxu2  ;;  %5872 = vmatmul.msk.bf16.gmra.mxu1 %vm104_vm1, %v2975_v35 }
 0x247   :  { %v2515_v46 = vpop.f32.mrf.mxu0  ;;  %v2350_v34 = vadd.f32 %v2326_v63, %v7398_v52  ;;  %5862 = vmatmul.msk.bf16.gmra.mxu3 %vm104_vm1, %v2862_v48 }
 0x248   :  { %v2540_v2 = vadd.f32 %v2515_v46, %v2427_v3  ;;  %v3176_v3 = vshrl.u32 %v7551_v50, 16 }
 0x249   :  { %v2428_v33 = vadd.f32 %v2404_v60, %v2350_v34  ;;  %v3179_v60 = vshll.u32 %v7551_v50, 16 }
 0x24a   :  { %5866 = vmatmul.msk.bf16.gmra.mxu0 %vm104_vm1, %v7437_v55  ;;  %v7530_v52 = vadd.f32 %v2635_v15, %v2540_v2  ;;  %v2407_v31 = vpop.f32.mrf.mxu3  ;;  %v3164_v55 = vrot.slane %v3162_v4, 2  ;;  %v3178_v46 = vrot.slane %v3176_v3, 1 }
 0x24b   :  { %v2637_v38 = vpop.f32.mrf.mxu1  ;;  %5840 = vmatmul.msk.bf16.gmra.mxu2 %vm104_vm1, %v2685_v7  ;;  %v3181_v34 = vrot.slane %v3179_v60, 2 }
 0x24c   :  { %v3165_v26 = vor.u32 %v3164_v55, %v3161_v27  ;;  %v3279_v27 = vrot.slane %v7517_v0, 2 }
 0x24e   :  { %v2329_v17 = vpop.f32.mrf.mxu2  ;;  %v3174_v9 = vsel %vm405_vm5, %v3165_v26, %v3173_v8 }
 0x24f   :  { %v2517_v40 = vpop.f32.mrf.mxu0  ;;  %v2351_v12 = vadd.f32 %v2329_v17, %v7419_v43  ;;  %v3351_v43 = vld [vmem:[%s8571_s0 + $0xa4] sm:$0xc] }
 0x250   :  { %v2541_v54 = vadd.f32 %v2517_v40, %v2428_v33  ;;  %v3374_v61 = vunpack.c.l.b16 %v3351_v43  ;;  %v3182_v33 = vor.u32 %v3181_v34, %v3178_v46 }
 0x251   :  { %v2429_v16 = vadd.f32 %v2407_v31, %v2351_v12 }
 0x252   :  { %v7540_v30 = vadd.f32 %v2637_v38, %v2541_v54  ;;  %v2409_v18 = vpop.f32.mrf.mxu3  ;;  %v7575_v63 = vpack.c.b16 %v3375_v32, %v3374_v61  ;;  %v3278_v38 = vrot.slane %v3277_v41, 2  ;;  %v3183_v1 = vsel %vm405_vm5, %v3173_v8, %v3182_v33 }
 0x253   :  { %v2640_v5 = vpop.f32.mrf.mxu1  ;;  %v3185_v54 = vshrl.u32 %v7591_v10, 16 }
 0x254   :  { %v3391_v6 = vrot.slane %v7575_v63, 2  ;;  %v3280_v17 = vsel %vm527_vm4, %v3278_v38, %v3279_v27 }
 0x256   :  { %v2331_v57 = vpop.f32.mrf.mxu2  ;;  %5873 = vmatmul.msk.bf16.gmra.mxu1 %vm104_vm1, %v2977_v25  ;;  %v3393_v55 = vsel %vm527_vm4, %v3391_v6, %v3392_v23  ;;  %v3190_v25 = vrot.slane %v3188_v53, 2 }
 0x257   :  { %v2520_v42 = vpop.f32.mrf.mxu0  ;;  %v2352_v21 = vadd.f32 %v2331_v57, %v7426_v14  ;;  %5897 = vmatmul.msk.bf16.vlgmr.msra.gmra.mxu3 %vm104_vm1, %v3174_v9 }
 0x258   :  { %v2542_v59 = vadd.f32 %v2520_v42, %v2429_v16 }
 0x259   :  { %v2430_v14 = vadd.f32 %v2409_v18, %v2352_v21 }
 0x25a   :  { %5867 = vmatmul.msk.bf16.gmra.mxu0 %vm104_vm1, %v7458_v24  ;;  %v7565_v15 = vadd.f32 %v2640_v5, %v2542_v59  ;;  %v2412_v35 = vpop.f32.mrf.mxu3  ;;  %v3187_v5 = vrot.slane %v3185_v54, 1 }
 0x25b   :  { %v2642_v48 = vpop.f32.mrf.mxu1  ;;  %5891 = vmatmul.msk.bf16.vlgmr.msra.gmra.mxu2 %vm104_vm1, %v3082_v47 }
 0x25c   :  { %v3191_v42 = vor.u32 %v3190_v25, %v3187_v5 }
 0x25e   :  { %v2334_v24 = vpop.f32.mrf.mxu2  ;;  %v3192_v60 = vsel %vm405_vm5, %v3182_v33, %v3191_v42 }
 0x25f   :  { %v2522_v2 = vpop.f32.mrf.mxu0  ;;  %v2353_v7 = vadd.f32 %v2334_v24, %v7441_v45  ;;  %v3083_v45 = vrot.slane %v7551_v50, 1 }
 0x260   :  { %v2543_v4 = vadd.f32 %v2522_v2, %v2430_v14  ;;  %v3085_v14 = vrot.slane %v7591_v10, 1 }
 0x261   :  { %v2431_v28 = vadd.f32 %v2412_v35, %v2353_v7  ;;  %v3084_v12 = vsel %vm211_vm3, %v3081_v11, %v3083_v45 }
 0x262   :  { %v7582_v31 = vadd.f32 %v2642_v48, %v2543_v4  ;;  %v2414_v56 = vpop.f32.mrf.mxu3  ;;  %v3282_v48 = vsel %vm527_vm4, %v3279_v27, %v3281_v39  ;;  %v3086_v34 = vsel %vm211_vm3, %v3083_v45, %v3085_v14 }
 0x263   :  { %v2645_v51 = vpop.f32.mrf.mxu1 }
 0x266   :  { %v2336_v20 = vpop.f32.mrf.mxu2  ;;  %5925 = vmatmul.msk.bf16.vlgmr.msra.gmra.mxu1 %vm104_vm1, %v3393_v55 }
 0x267   :  { %v2525_v37 = vpop.f32.mrf.mxu0  ;;  %v2354_v0 = vadd.f32 %v2336_v20, %v7447_v58  ;;  %5898 = vmatmul.msk.bf16.gmra.mxu3 %vm104_vm1, %v3183_v1  ;;  %v7607_v58 = vld [vmem:[%s8571_s0 + $0xb4] sm:$0xff] }
 0x268   :  { %v2544_v40 = vadd.f32 %v2525_v37, %v2431_v28  ;;  %v3394_v57 = vrot.slane %v7607_v58, 2  ;;  %v3153_v28 = vld [vmem:[%s8571_s0 + $0xc8] sm:$0x3] }
 0x269   :  { %v2432_v26 = vadd.f32 %v2414_v56, %v2354_v0  ;;  %v3156_v45 = vunpack.c.l.b16 %v3153_v28  ;;  %v3283_v0 = vrot.slane %v7591_v10, 2 }
 0x26a   :  { %5903 = vmatmul.msk.bf16.vlgmr.msra.gmra.mxu0 %vm104_vm1, %v3280_v17  ;;  %v7601_v8 = vadd.f32 %v2645_v51, %v2544_v40  ;;  %v2417_v16 = vpop.f32.mrf.mxu3  ;;  %v3395_v3 = vsel %vm527_vm4, %v3392_v23, %v3394_v57 }
 0x26b   :  { %v2647_v18 = vpop.f32.mrf.mxu1  ;;  %5892 = vmatmul.msk.bf16.gmra.mxu2 %vm104_vm1, %v3084_v12 }
 0x26e   :  { %v2339_v9 = vpop.f32.mrf.mxu2 }
 0x26f   :  { %v2527_v36 = vpop.f32.mrf.mxu0  ;;  %v2355_v11 = vadd.f32 %v2339_v9, %v7462_v22  ;;  %v7620_v22 = vld [vmem:[%s8571_s0 + $0xc0] sm:$0xff] }
 0x270   :  { %v2545_v43 = vadd.f32 %v2527_v36, %v2432_v26  ;;  %v3194_v24 = vshrl.u32 %v7620_v22, 16  ;;  %v3197_v2 = vshll.u32 %v7620_v22, 16  ;;  %v3087_v53 = vrot.slane %v7620_v22, 1 }
 0x271   :  { %v2433_v21 = vadd.f32 %v2417_v16, %v2355_v11  ;;  %v7649_v26 = vpack.c.b16 %v3156_v45, %v3156_v45 }
 0x272   :  { %v7611_v59 = vadd.f32 %v2647_v18, %v2545_v43  ;;  %v2419_v61 = vpop.f32.mrf.mxu3  ;;  %v3196_v23 = vrot.slane %v3194_v24, 1  ;;  %v3199_v33 = vrot.slane %v3197_v2, 2  ;;  %v3284_v18 = vsel %vm527_vm4, %v3281_v39, %v3283_v0  ;;  %v3050_v43 = vld [vmem:[%s8571_s0 + $0xc8] sm:$0x1] }
 0x273   :  { %v2650_v47 = vpop.f32.mrf.mxu1  ;;  %v3088_v10 = vsel %vm211_vm3, %v3085_v14, %v3087_v53  ;;  %v3203_v9 = vshrl.u32 %v7649_v26, 16  ;;  %v3206_v36 = vshll.u32 %v7649_v26, 16 }
 0x274   :  { %v3200_v1 = vor.u32 %v3199_v33, %v3196_v23  ;;  %v3361_v23 = vld [vmem:[%s8571_s0 + $0xcc] sm:$0x3] }
 0x275   :  { %v3208_v39 = vrot.slane %v3206_v36, 2  ;;  %v3384_v45 = vunpack.c.l.b16 %v3361_v23  ;;  %v3478_v36 = vshrl.u32 %v7571_v13, 16 }
 0x276   :  { %v2341_v35 = vpop.f32.mrf.mxu2  ;;  %5926 = vmatmul.msk.bf16.gmra.mxu1 %vm104_vm1, %v3395_v3  ;;  %v3201_v54 = vsel %vm405_vm5, %v3191_v42, %v3200_v1 }
 0x277   :  { %v2530_v19 = vpop.f32.mrf.mxu0  ;;  %v2356_v50 = vadd.f32 %v2341_v35, %v7471_v44  ;;  %5899 = vmatmul.msk.bf16.gmra.mxu3 %vm104_vm1, %v3192_v60  ;;  %v7636_v44 = vld [vmem:[%s8571_s0 + $0xbc] sm:$0xff] }
 0x278   :  { %v2546_v46 = vadd.f32 %v2530_v19, %v2433_v21  ;;  %v3396_v55 = vrot.slane %v7636_v44, 2  ;;  %v7668_v21 = vld [vmem:[%s8571_s0 + $0xc4] sm:$0xff] }
 0x279   :  { %v2434_v41 = vadd.f32 %v2419_v61, %v2356_v50  ;;  %v3205_v61 = vrot.slane %v3203_v9, 1  ;;  %v3398_v19 = vrot.slane %v7668_v21, 2  ;;  %v3473_v9 = vshll.u32 %v7575_v63, 16 }
 0x27a   :  { %5904 = vmatmul.msk.bf16.gmra.mxu0 %vm104_vm1, %v3282_v48  ;;  %v7630_v7 = vadd.f32 %v2650_v47, %v2546_v46  ;;  %v2422_v4 = vpop.f32.mrf.mxu3  ;;  %v3397_v12 = vsel %vm527_vm4, %v3394_v57, %v3396_v55  ;;  %v3073_v47 = vunpack.c.l.b16 %v3050_v43  ;;  %v7675_v46 = vld [vmem:[%s8573_s2] ss:$0 sm:$0xff]  ;;  %v5997_v43 = vld [vmem:[%s8572_s1 + $0x8] sm:$0x3] }
 0x27b   :  { %v2652_v6 = vpop.f32.mrf.mxu1  ;;  %5893 = vmatmul.msk.bf16.gmra.mxu2 %vm104_vm1, %v3086_v34  ;;  %v3209_v48 = vor.u32 %v3208_v39, %v3205_v61 }
 0x27c   :  { %v3079_v50 = vpack.c.b16 %v3073_v47, %v3073_v47 }
 0x27d   :  { %v3210_v33 = vsel %vm405_vm5, %v3200_v1, %v3209_v48  ;;  %v3480_v48 = vrot.slane %v3478_v36, 2 }
 0x27e   :  { %v2344_v56 = vpop.f32.mrf.mxu2  ;;  %v3089_v28 = vrot.slane %v3079_v50, 1 }
 0x27f   :  { %v2532_v38 = vpop.f32.mrf.mxu0  ;;  %v2357_v27 = vadd.f32 %v2344_v56, %v7483_v29  ;;  %v3584_v56 = vld [vmem:[%s8571_s0 + $0xa4] sm:$0x8] }
 0x280   :  { %v2547_v51 = vadd.f32 %v2532_v38, %v2434_v41  ;;  %v3285_v41 = vrot.slane %v7620_v22, 2  ;;  %v5969_v38 = vld [vmem:[%s8572_s1 + $0x4] sm:$0x3] }
 0x281   :  { %v2435_v20 = vadd.f32 %v2422_v4, %v2357_v27  ;;  %v5975_v27 = vld [vmem:[%s8572_s1 + $0x6] sm:$0x3] }
 0x282   :  { %v7643_v37 = vadd.f32 %v2652_v6, %v2547_v51  ;;  %v2424_v17 = vpop.f32.mrf.mxu3  ;;  %v3286_v1 = vsel %vm527_vm4, %v3283_v0, %v3285_v41 }
 0x283   :  { %v2655_v40 = vpop.f32.mrf.mxu1 }
 0x286   :  { %v2346_v29 = vpop.f32.mrf.mxu2  ;;  %5927 = vmatmul.msk.bf16.gmra.mxu1 %vm104_vm1, %v3397_v12 }
 0x287   :  { %v2535_v16 = vpop.f32.mrf.mxu0  ;;  %v2358_v5 = vadd.f32 %v2346_v29, %v7507_v62  ;;  %5900 = vmatmul.msk.bf16.gmra.mxu3 %vm104_vm1, %v3201_v54  ;;  %v3090_v54 = vsel %vm211_vm3, %v3087_v53, %v3089_v28  ;;  %v3587_v29 = vunpack.c.l.b16 %v3584_v56 }
 0x288   :  { %v2548_v25 = vadd.f32 %v2535_v16, %v2435_v20  ;;  %v3908_v20 = vsel %vm120_vm0, %v5969_v38, 0 }
 0x289   :  { %v2436_v11 = vadd.f32 %v2424_v17, %v2358_v5  ;;  %v4021_v17 = vsel %vm120_vm0, %v5975_v27, 0  ;;  %3917 = vmatpush.bf16.msra.mxu2 %v3908_v20  ;;  %v3390_v5 = vpack.c.b16 %v3384_v45, %v3384_v45  ;;  %v3588_v53 = vpack.c.b16 %v3375_v32, %v3587_v29 }
 0x28a   :  { %5905 = vmatmul.msk.bf16.gmra.mxu0 %vm104_vm1, %v3284_v18  ;;  %v7662_v57 = vadd.f32 %v2655_v40, %v2548_v25  ;;  %v2890_v42 = vpop.f32.mrf.mxu3  ;;  %4030 = vmatpush.bf16.msra.mxu3 %v4021_v17 }
 0x28b   :  { %v2657_v62 = vpop.f32.mrf.mxu1  ;;  %5894 = vmatmul.msk.bf16.gmra.mxu2 %vm104_vm1, %v3088_v10  ;;  %v3400_v39 = vrot.slane %v3390_v5, 2 }
 0x28e   :  { %v2713_v60 = vpop.f32.mrf.mxu2 }
 0x28f   :  { %v2537_v3 = vpop.f32.mrf.mxu0  ;;  %v2738_v35 = vadd.f32 %v2713_v60, %v7530_v52  ;;  %v3399_v52 = vsel %vm527_vm4, %v3396_v55, %v3398_v19  ;;  %v3475_v60 = vrot.slane %v3473_v9, 3 }
 0x290   :  { %v2549_v14 = vadd.f32 %v2537_v3, %v2436_v11  ;;  %v3481_v11 = vshll.u32 %v7571_v13, 16 }
 0x291   :  { %v2748_v34 = vadd.f32 %v7675_v46, %v2738_v35  ;;  %v3590_v35 = vrot.slane %v7571_v13, 3 }
 0x292   :  { %v7678_v24 = vadd.f32 %v2657_v62, %v2549_v14  ;;  %v2892_v2 = vpop.f32.mrf.mxu3  ;;  %v3589_v14 = vrot.slane %v3588_v53, 3  ;;  %v3483_v50 = vrot.slane %v3481_v11, 3 }
 0x293   :  { %v2758_v4 = vmax.f32 %v2748_v34, 0.0  ;;  %v3005_v6 = vpop.f32.mrf.mxu1 }
 0x294   :  { %v3484_v56 = vor.u32 %v3483_v50, %v3480_v48  ;;  %v7776_v50 = vld [vmem:[%s8571_s0 + $0xe0] sm:$0xff] }
 0x295   :  { %2768 = vst [vmem:[#allocation2 + $0xa0] sm:$0xff] %v2758_v4 }
 0x296   :  { %v2715_v51 = vpop.f32.mrf.mxu2  ;;  %5928 = vmatmul.msk.bf16.gmra.mxu1 %vm104_vm1, %v3399_v52  ;;  %v3287_v52 = vrot.slane %v7649_v26, 2 }
 0x297   :  { %v2937_v55 = vpop.f32.mrf.mxu0  ;;  %v2739_v40 = vadd.f32 %v2715_v51, %v7540_v30  ;;  %5901 = vmatmul.msk.bf16.gmra.mxu3 %vm104_vm1, %v3210_v33  ;;  %v3470_v30 = vshrl.u32 %v7575_v63, 16  ;;  %v4141_v63 = vsel %vm120_vm0, %v5997_v43, 0 }
 0x298   :  { %v2938_v12 = vadd.f32 %v2937_v55, %v2890_v42  ;;  %v6003_v42 = vld [vmem:[%s8572_s1 + $0xa] sm:$0x3]  ;;  %4150 = vmatpush.bf16.msra.mxu0 %v4141_v63  ;;  %v3288_v27 = vsel %vm527_vm4, %v3285_v41, %v3287_v52  ;;  %v3499_v52 = vshll.u32 %v7636_v44, 16 }
 0x299   :  { %v2749_v16 = vadd.f32 %v7675_v46, %v2739_v40  ;;  %v4219_v49 = vsel %vm120_vm0, %v6003_v42, 0  ;;  %v3472_v3 = vrot.slane %v3470_v30, 2  ;;  %v3487_v40 = vshrl.u32 %v7607_v58, 16 }
 0x29a   :  { %5906 = vmatmul.msk.bf16.gmra.mxu0 %vm104_vm1, %v3286_v1  ;;  %v7708_v0 = vadd.f32 %v3005_v6, %v2938_v12  ;;  %v2895_v18 = vpop.f32.mrf.mxu3  ;;  %4228 = vmatpush.bf16.msra.mxu1 %v4219_v49  ;;  %v3490_v12 = vshll.u32 %v7607_v58, 16  ;;  %v3592_v30 = vrot.slane %v7607_v58, 3 }
 0x29b   :  { %v2759_v25 = vmax.f32 %v2749_v16, 0.0  ;;  %v3007_v10 = vpop.f32.mrf.mxu1  ;;  %5895 = vmatmul.msk.bf16.gmra.mxu2 %vm104_vm1, %v3090_v54  ;;  %v3476_v28 = vor.u32 %v3475_v60, %v3472_v3  ;;  %v3489_v9 = vrot.slane %v3487_v40, 2 }
 0x29c   :  { %v3492_v53 = vrot.slane %v3490_v12, 3  ;;  %v3593_v63 = vsel %vm843_vm7, %v3590_v35, %v3592_v30 }
 0x29d   :  { %2769 = vst [vmem:[#allocation2 + $0xa8] sm:$0xff] %v2759_v25  ;;  %v3485_v55 = vsel %vm721_vm6, %v3476_v28, %v3484_v56 }
 0x29e   :  { %v2718_v62 = vpop.f32.mrf.mxu2  ;;  %v3493_v49 = vor.u32 %v3492_v53, %v3489_v9  ;;  %v3508_v9 = vshll.u32 %v7668_v21, 16 }
 0x29f   :  { %v2939_v61 = vpop.f32.mrf.mxu0  ;;  %v2740_v32 = vadd.f32 %v2718_v62, %v7565_v15  ;;  %v3401_v15 = vsel %vm527_vm4, %v3398_v19, %v3400_v39  ;;  %v6235_v19 = vld [vmem:[%s8571_s0 + $0xd0] sm:$0xff]  }
 0x2a0   :  { %v2940_v47 = vadd.f32 %v2939_v61, %v2892_v2  ;;  %v3591_v2 = vsel %vm843_vm7, %v3589_v14, %v3590_v35  ;;  %v3736_v20 = vshll.u32 %v6235_v19, 16  ;;  %v3734_v16 = vshrl.u32 %v6235_v19, 16 }
 0x2a1   :  { %v2750_v34 = vadd.f32 %v7675_v46, %v2740_v32  ;;  %v3494_v60 = vsel %vm721_vm6, %v3484_v56, %v3493_v49 }
 0x2a2   :  { %v7728_v4 = vadd.f32 %v3007_v10, %v2940_v47  ;;  %v2897_v6 = vpop.f32.mrf.mxu3 }
 0x2a3   :  { %v2760_v23 = vmax.f32 %v2750_v34, 0.0  ;;  %v3010_v33 = vpop.f32.mrf.mxu1 }
 0x2a5   :  { %2770 = vst [vmem:[#allocation2 + $0xb0] sm:$0xff] %v2760_v23 }
 0x2a6   :  { %v2720_v13 = vpop.f32.mrf.mxu2  ;;  %5929 = vmatmul.msk.bf16.gmra.mxu1 %vm104_vm1, %v3401_v15 }
 0x2a7   :  { %v2942_v38 = vpop.f32.mrf.mxu0  ;;  %v2741_v26 = vadd.f32 %v2720_v13, %v7582_v31  ;;  %5937 = vmatmul.msk.bf16.vlgmr.msrb.gmra.mxu3 %vm104_vm1, %v3591_v2  ;;  %v7752_v31 = vld [vmem:[%s8571_s0 + $0xd8] sm:$0xff]  ;;  %v3749_v2 = vshll.u32 %v7776_v50, 16  ;;  %v3594_v13 = vrot.slane %v7636_v44, 3 }
 0x2a8   :  { %v2943_v51 = vadd.f32 %v2942_v38, %v2895_v18  ;;  %v3738_v18 = vrot.slane %v3736_v20, 1  ;;  %v3741_v5 = vshll.u32 %v7752_v31, 16  ;;  %v3745_v15 = vshrl.u32 %v7752_v31, 16 }
 0x2a9   :  { %v2751_v1 = vadd.f32 %v7675_v46, %v2741_v26 }
 0x2aa   :  { %5907 = vmatmul.msk.bf16.gmra.mxu0 %vm104_vm1, %v3288_v27  ;;  %v7747_v45 = vadd.f32 %v3010_v33, %v2943_v51  ;;  %v2900_v22 = vpop.f32.mrf.mxu3  ;;  %v3739_v42 = vor.u32 %v3738_v18, %v3734_v16  ;;  %v3743_v62 = vrot.slane %v3741_v5, 1  ;;  %v3501_v27 = vrot.slane %v3499_v52, 3 }
 0x2ab   :  { %v2761_v41 = vmax.f32 %v2751_v1, 0.0  ;;  %v3012_v17 = vpop.f32.mrf.mxu1  ;;  %5931 = vmatmul.msk.bf16.vlgmr.msrb.gmra.mxu2 %vm104_vm1, %v3485_v55  ;;  %v3751_v1 = vrot.slane %v3749_v2, 1 }
 0x2ac   :  { %v3744_v58 = vsel %vm59_vm2, %v3739_v42, %v3743_v62  ;;  %v3747_v55 = vor.u32 %v3745_v15, %v3743_v62 }
 0x2ad   :  { %2771 = vst [vmem:[#allocation2 + $0xb8] sm:$0xff] %v2761_v41  ;;  %v3595_v41 = vsel %vm843_vm7, %v3592_v30, %v3594_v13 }
 0x2ae   :  { %v2723_v54 = vpop.f32.mrf.mxu2 }
 0x2af   :  { %v2944_v29 = vpop.f32.mrf.mxu0  ;;  %v2742_v25 = vadd.f32 %v2723_v54, %v7601_v8 }
 0x2b0   :  { %v2945_v10 = vadd.f32 %v2944_v29, %v2897_v6 }
 0x2b1   :  { %v2752_v36 = vadd.f32 %v7675_v46, %v2742_v25  ;;  %v7802_v25 = vld [vmem:[%s8571_s0 + $0xe8] sm:$0xff] }
 0x2b2   :  { %v7761_v11 = vadd.f32 %v3012_v17, %v2945_v10  ;;  %v2902_v43 = vpop.f32.mrf.mxu3  ;;  %v3757_v42 = vshll.u32 %v7802_v25, 16 }
 0x2b3   :  { %v2762_v61 = vmax.f32 %v2752_v36, 0.0  ;;  %v3015_v39 = vpop.f32.mrf.mxu1 }
 0x2b5   :  { %2772 = vst [vmem:[#allocation2 + $0xc0] sm:$0xff] %v2762_v61 }
 0x2b6   :  { %v2725_v32 = vpop.f32.mrf.mxu2  ;;  %5964 = vmatmul.msk.bf16.vlgmr.msrb.gmra.mxu1 %vm104_vm1, %v6235_v19 }
 0x2b7   :  { %v2947_v8 = vpop.f32.mrf.mxu0  ;;  %v2743_v47 = vadd.f32 %v2725_v32, %v7611_v59  ;;  %5938 = vmatmul.msk.bf16.gmra.mxu3 %vm104_vm1, %v3593_v63  ;;  %v3496_v59 = vshrl.u32 %v7636_v44, 16  ;;  %v3752_v44 = vsel %vm59_vm2, %v3747_v55, %v3751_v1  ;;  %v3464_v32 = vld [vmem:[%s8571_s0 + $0xcc] sm:$0x7] }
 0x2b8   :  { %v2948_v3 = vadd.f32 %v2947_v8, %v2900_v22 }
 0x2b9   :  { %v2753_v14 = vadd.f32 %v7675_v46, %v2743_v47  ;;  %v3498_v38 = vrot.slane %v3496_v59, 2 }
 0x2ba   :  { %5959 = vmatmul.msk.bf16.vlgmr.msrb.gmra.mxu0 %vm104_vm1, %v3744_v58  ;;  %v7771_v35 = vadd.f32 %v3015_v39, %v2948_v3  ;;  %v2905_v48 = vpop.f32.mrf.mxu3  ;;  %v3596_v39 = vrot.slane %v7668_v21, 3 }
 0x2bb   :  { %v2763_v34 = vmax.f32 %v2753_v14, 0.0  ;;  %v3017_v6 = vpop.f32.mrf.mxu1  ;;  %5932 = vmatmul.msk.bf16.gmra.mxu2 %vm104_vm1, %v3494_v60  ;;  %v3502_v17 = vor.u32 %v3501_v27, %v3498_v38  ;;  %v3759_v60 = vrot.slane %v3757_v42, 1  ;;  %v7831_v38 = vld [vmem:[%s8571_s0 + $0xf0] sm:$0xff] }
 0x2bc   :  { %v3954_v42 = vld [vmem:[%s8571_s0 + $0xd4] sm:$0xe] }
 0x2bd   :  { %2773 = vst [vmem:[#allocation2 + $0xc8] sm:$0xff] %v2763_v34  ;;  %v3503_v29 = vsel %vm721_vm6, %v3493_v49, %v3502_v17  ;;  %v3510_v49 = vrot.slane %v3508_v9, 3  ;;  %v3467_v34 = vunpack.c.l.b16 %v3464_v32 }
 0x2be   :  { %v2728_v23 = vpop.f32.mrf.mxu2 }
 0x2bf   :  { %v2949_v33 = vpop.f32.mrf.mxu0  ;;  %v2744_v28 = vadd.f32 %v2728_v23, %v7630_v7  ;;  %v3468_v15 = vpack.c.b16 %v3467_v34, %v3467_v34 }
 0x2c0   :  { %v2950_v56 = vadd.f32 %v2949_v33, %v2902_v43  ;;  %v3753_v43 = vshrl.u32 %v7776_v50, 16 }
 0x2c1   :  { %v2754_v26 = vadd.f32 %v7675_v46, %v2744_v28 }
 0x2c2   :  { %v7786_v51 = vadd.f32 %v3017_v6, %v2950_v56  ;;  %v2907_v19 = vpop.f32.mrf.mxu3  ;;  %v3755_v3 = vor.u32 %v3753_v43, %v3751_v1 }
 0x2c3   :  { %v2764_v22 = vmax.f32 %v2754_v26, 0.0  ;;  %v3020_v20 = vpop.f32.mrf.mxu1  ;;  %v3514_v26 = vshrl.u32 %v3468_v15, 16 }
 0x2c4   :  { %v3760_v52 = vsel %vm59_vm2, %v3755_v3, %v3759_v60  ;;  %v3977_v3 = vunpack.c.l.b16 %v3954_v42 }
 0x2c5   :  { %2774 = vst [vmem:[#allocation2 + $0xd0] sm:$0xff] %v2764_v22  ;;  %v3761_v22 = vshrl.u32 %v7802_v25, 16 }
 0x2c6   :  { %v2730_v40 = vpop.f32.mrf.mxu2  ;;  %5965 = vmatmul.msk.bf16.gmra.mxu1 %vm104_vm1, %v7752_v31 }
 0x2c7   :  { %v2952_v7 = vpop.f32.mrf.mxu0  ;;  %v2745_v12 = vadd.f32 %v2730_v40, %v7643_v37  ;;  %5939 = vmatmul.msk.bf16.gmra.mxu3 %vm104_vm1, %v3595_v41  ;;  %v3505_v37 = vshrl.u32 %v7668_v21, 16  ;;  %v3516_v40 = vrot.slane %v3514_v26, 2 }
 0x2c8   :  { %v2953_v54 = vadd.f32 %v2952_v7, %v2905_v48  ;;  %v6009_v7 = vld [vmem:[%s8572_s1 + $0xc] sm:$0x3] }
 0x2c9   :  { %v2755_v16 = vadd.f32 %v7675_v46, %v2745_v12  ;;  %v3507_v63 = vrot.slane %v3505_v37, 2  ;;  %v3598_v12 = vrot.slane %v3468_v15, 3 }
 0x2ca   :  { %5960 = vmatmul.msk.bf16.gmra.mxu0 %vm104_vm1, %v3752_v44  ;;  %v7797_v18 = vadd.f32 %v3020_v20, %v2953_v54  ;;  %v2910_v5 = vpop.f32.mrf.mxu3  ;;  %v3765_v20 = vshll.u32 %v7831_v38, 16  ;;  %v6031_v44 = vld [vmem:[%s8572_s1 + $0xe] sm:$0x3] }
 0x2cb   :  { %v2765_v10 = vmax.f32 %v2755_v16, 0.0  ;;  %v3022_v30 = vpop.f32.mrf.mxu1  ;;  %5933 = vmatmul.msk.bf16.gmra.mxu2 %vm104_vm1, %v3503_v29  ;;  %v3511_v6 = vor.u32 %v3510_v49, %v3507_v63  ;;  %v4332_v29 = vsel %vm120_vm0, %v6009_v7, 0  ;;  %v4452_v16 = vsel %vm120_vm0, %v6031_v44, 0 }
 0x2cc   :  { %4341 = vmatpush.bf16.msrb.mxu2 %v4332_v29  ;;  %4461 = vmatpush.bf16.msrb.mxu3 %v4452_v16  ;;  %v3767_v37 = vrot.slane %v3765_v20, 1  ;;  %v3882_v29 = vrot.slane %v7752_v31, 1 }
 0x2cd   :  { %2775 = vst [vmem:[#allocation2 + $0xd8] sm:$0xff] %v2765_v10  ;;  %v3512_v2 = vsel %vm721_vm6, %v3502_v17, %v3511_v6 }
 0x2ce   :  { %v2733_v53 = vpop.f32.mrf.mxu2 }
 0x2cf   :  { %v2954_v36 = vpop.f32.mrf.mxu0  ;;  %v2746_v62 = vadd.f32 %v2733_v53, %v7662_v57  ;;  %v3597_v57 = vsel %vm843_vm7, %v3594_v13, %v3596_v39  ;;  %v3703_v53 = vld [vmem:[%s8571_s0 + $0xf8] sm:$0x1] }
 0x2d0   :  { %v2955_v61 = vadd.f32 %v2954_v36, %v2907_v19  ;;  %v3517_v19 = vshll.u32 %v3468_v15, 16  ;;  %v3599_v36 = vsel %vm843_vm7, %v3596_v39, %v3598_v12  ;;  %v3726_v32 = vunpack.c.l.b16 %v3703_v53  ;;  %v6236_v15 = vld [vmem:[%s8571_s0 + $0xd0] sm:$0xf0] }
 0x2d1   :  { %v2756_v8 = vadd.f32 %v7675_v46, %v2746_v62  ;;  %v7857_v62 = vld [vmem:[%s8571_s0 + $0xd8] sm:$0xff]  }
 0x2d2   :  { %v7815_v58 = vadd.f32 %v3022_v30, %v2955_v61  ;;  %v2912_v47 = vpop.f32.mrf.mxu3  ;;  %v3519_v54 = vrot.slane %v3517_v19, 3  ;;  %v3763_v30 = vor.u32 %v3761_v22, %v3759_v60  ;;  %v3978_v60 = vunpack.c.l.b16 %v7857_v62 }
 0x2d3   :  { %v2766_v14 = vmax.f32 %v2756_v8, 0.0  ;;  %v3025_v48 = vpop.f32.mrf.mxu1 }
 0x2d4   :  { %v3520_v43 = vor.u32 %v3519_v54, %v3516_v40  ;;  %v3768_v49 = vsel %vm59_vm2, %v3763_v30, %v3767_v37 }
 0x2d5   :  { %2776 = vst [vmem:[#allocation2 + $0xe0] sm:$0xff] %v2766_v14 }
 0x2d6   :  { %v2735_v21 = vpop.f32.mrf.mxu2  ;;  %5966 = vmatmul.msk.bf16.gmra.mxu1 %vm104_vm1, %v7776_v50 }
 0x2d7   :  { %v2957_v59 = vpop.f32.mrf.mxu0  ;;  %v2747_v23 = vadd.f32 %v2735_v21, %v7678_v24  ;;  %5940 = vmatmul.msk.bf16.gmra.mxu3 %vm104_vm1, %v3597_v57  ;;  %v7872_v21 = vpack.c.b16 %v3726_v32, %v3726_v32 }
 0x2d8   :  { %v2958_v33 = vadd.f32 %v2957_v59, %v2910_v5 }
 0x2d9   :  { %v2757_v28 = vadd.f32 %v7675_v46, %v2747_v23  ;;  %v3988_v23 = vpack.c.b16 %v3978_v60, %v3977_v3 }
 0x2da   :  { %5961 = vmatmul.msk.bf16.gmra.mxu0 %vm104_vm1, %v3760_v52  ;;  %v7826_v56 = vadd.f32 %v3025_v48, %v2958_v33  ;;  %v3238_v13 = vpop.f32.mrf.mxu3  ;;  %v6037_v48 = vld [vmem:[%s8572_s1 + $0x10] sm:$0x3]  ;;  %v7882_v52 = vld [vmem:[%s8571_s0 + $0xdc] sm:$0xff] }
 0x2db   :  { %v2767_v27 = vmax.f32 %v2757_v28, 0.0  ;;  %v3027_v24 = vpop.f32.mrf.mxu1  ;;  %5934 = vmatmul.msk.bf16.gmra.mxu2 %vm104_vm1, %v3512_v2  ;;  %v6237_v2 = vld [vmem:[%s8571_s0 + $0xd0] sm:$0xe]  ;;  %v4073_v42 = vshrl.u32 %v3988_v23, 16 }
 0x2dc   :  { %v6238_v22 = vor.u32 %v6237_v2, %v6236_v15 }
 0x2dd   :  { %2777 = vst [vmem:[#allocation2 + $0xe8] sm:$0xff] %v2767_v27  ;;  %v3769_v27 = vshrl.u32 %v7831_v38, 16  ;;  %v4075_v3 = vrot.slane %v4073_v42, 1 }
 0x2de   :  { %v3118_v1 = vpop.f32.mrf.mxu2  ;;  %v3881_v54 = vrot.slane %v6238_v22, 1 }
 0x2df   :  { %v2959_v55 = vpop.f32.mrf.mxu0  ;;  %v3143_v17 = vadd.f32 %v3118_v1, %v7708_v0  ;;  %v3995_v1 = vrot.slane %v7882_v52, 1  ;;  %v3771_v40 = vor.u32 %v3769_v27, %v3767_v37 }
 0x2e0   :  { %v2960_v41 = vadd.f32 %v2959_v55, %v2912_v47  ;;  %v3521_v47 = vsel %vm721_vm6, %v3511_v6, %v3520_v43  ;;  %v6043_v6 = vld [vmem:[%s8572_s1 + $0x2] sm:$0x3]  ;;  %v3994_v55 = vrot.slane %v3988_v23, 1  ;;  %v3883_v53 = vsel %vm211_vm3, %v3881_v54, %v3882_v29 }
 0x2e1   :  { %v3263_v5 = vadd.f32 %v3238_v13, %v3143_v17  ;;  %v4707_v33 = vsel %vm120_vm0, %v6043_v6, 0 }
 0x2e2   :  { %v7845_v10 = vadd.f32 %v3027_v24, %v2960_v41  ;;  %v3240_v0 = vpop.f32.mrf.mxu3  ;;  %4716 = vmatpush.bf16.msrb.mxu1 %v4707_v33  ;;  %v3773_v24 = vshll.u32 %v7872_v21, 16  ;;  %v3996_v12 = vsel %vm211_vm3, %v3994_v55, %v3995_v1 }
 0x2e3   :  { %v3429_v9 = vpop.f32.mrf.mxu1 }
 0x2e4   :  { %v3775_v7 = vrot.slane %v3773_v24, 1 }
 0x2e6   :  { %v3120_v61 = vpop.f32.mrf.mxu2  ;;  %5967 = vmatmul.msk.bf16.gmra.mxu1 %vm104_vm1, %v7802_v25 }
 0x2e7   :  { %v3316_v63 = vpop.f32.mrf.mxu0  ;;  %v3144_v39 = vadd.f32 %v3120_v61, %v7728_v4  ;;  %5941 = vmatmul.msk.bf16.gmra.mxu3 %vm104_vm1, %v3599_v36  ;;  %v4530_v4 = vsel %vm120_vm0, %v6037_v48, 0  ;;  %v4076_v61 = vshll.u32 %v3988_v23, 16  ;;  %v4193_v23 = vrot.slane %v7882_v52, 2 }
 0x2e8   :  { %v3341_v8 = vadd.f32 %v3316_v63, %v3263_v5  ;;  %4539 = vmatpush.bf16.msrb.mxu0 %v4530_v4  ;;  %v4081_v63 = vshrl.u32 %v7882_v52, 16 }
 0x2e9   :  { %v3264_v14 = vadd.f32 %v3240_v0, %v3144_v39  ;;  %v3776_v0 = vsel %vm59_vm2, %v3771_v40, %v3775_v7  ;;  %v7917_v39 = vld [vmem:[%s8571_s0 + $0xe4] sm:$0xff] }
 0x2ea   :  { %5962 = vmatmul.msk.bf16.gmra.mxu0 %vm104_vm1, %v3768_v49  ;;  %v7870_v34 = vadd.f32 %v3429_v9, %v3341_v8  ;;  %v3243_v57 = vpop.f32.mrf.mxu3  ;;  %v4084_v49 = vshll.u32 %v7882_v52, 16  ;;  %v4083_v48 = vrot.slane %v4081_v63, 1  ;;  %v3997_v33 = vrot.slane %v7917_v39, 1 }
 0x2eb   :  { %v3431_v59 = vpop.f32.mrf.mxu1  ;;  %5935 = vmatmul.msk.bf16.gmra.mxu2 %vm104_vm1, %v3521_v47 }
 0x2ee   :  { %v3123_v28 = vpop.f32.mrf.mxu2 }
 0x2ef   :  { %v3318_v13 = vpop.f32.mrf.mxu0  ;;  %v3145_v26 = vadd.f32 %v3123_v28, %v7747_v45  ;;  %v4187_v45 = vld [vmem:[%s8571_s0 + $0xd4] sm:$0xc] }
 0x2f0   :  { %v3342_v19 = vadd.f32 %v3318_v13, %v3264_v14  ;;  %v4190_v9 = vunpack.c.l.b16 %v4187_v45  ;;  %v4078_v14 = vrot.slane %v4076_v61, 2 }
 0x2f1   :  { %v3265_v20 = vadd.f32 %v3243_v57, %v3145_v26  ;;  %v4086_v57 = vrot.slane %v4084_v49, 2  ;;  %v3998_v26 = vsel %vm211_vm3, %v3995_v1, %v3997_v33  ;;  %v3886_v49 = vrot.slane %v7802_v25, 1 }
 0x2f2   :  { %v7895_v41 = vadd.f32 %v3431_v59, %v3342_v19  ;;  %v3245_v17 = vpop.f32.mrf.mxu3  ;;  %v4079_v28 = vor.u32 %v4078_v14, %v4075_v3  ;;  %v3884_v19 = vrot.slane %v7776_v50, 1  ;;  %v4090_v50 = vshrl.u32 %v7917_v39, 16 }
 0x2f3   :  { %v3434_v44 = vpop.f32.mrf.mxu1  ;;  %v4087_v13 = vor.u32 %v4086_v57, %v4083_v48 }
 0x2f4   :  { %v4092_v45 = vrot.slane %v4090_v50, 1 }
 0x2f5   :  { %v4088_v52 = vsel %vm405_vm5, %v4079_v28, %v4087_v13 }
 0x2f6   :  { %v3125_v16 = vpop.f32.mrf.mxu2  ;;  %5968 = vmatmul.msk.bf16.gmra.mxu1 %vm104_vm1, %v7831_v38 }
 0x2f7   :  { %v3321_v5 = vpop.f32.mrf.mxu0  ;;  %v3146_v30 = vadd.f32 %v3125_v16, %v7761_v11  ;;  %5992 = vmatmul.msk.bf16.vlgmr.msra.gmra.mxu3 %vm104_vm1, %v3996_v12  ;;  %v4191_v11 = vpack.c.b16 %v3978_v60, %v4190_v9 }
 0x2f8   :  { %v3343_v37 = vadd.f32 %v3321_v5, %v3265_v20 }
 0x2f9   :  { %v3266_v31 = vadd.f32 %v3245_v17, %v3146_v30  ;;  %v4192_v6 = vrot.slane %v4191_v11, 2  ;;  %v3885_v17 = vsel %vm211_vm3, %v3882_v29, %v3884_v19  ;;  %v4195_v30 = vrot.slane %v7917_v39, 2 }
 0x2fa   :  { %5963 = vmatmul.msk.bf16.gmra.mxu0 %vm104_vm1, %v3776_v0  ;;  %v7909_v36 = vadd.f32 %v3434_v44, %v3343_v37  ;;  %v3248_v43 = vpop.f32.mrf.mxu3  ;;  %v4093_v44 = vshll.u32 %v7917_v39, 16 }
 0x2fb   :  { %v3436_v32 = vpop.f32.mrf.mxu1  ;;  %5970 = vmatmul.msk.bf16.vlgmr.msra.gmra.mxu2 %vm104_vm1, %v3883_v53  ;;  %v4194_v24 = vsel %vm527_vm4, %v4192_v6, %v4193_v23  ;;  %v4196_v61 = vsel %vm527_vm4, %v4193_v23, %v4195_v30 }
 0x2fc   :  { %v4095_v16 = vrot.slane %v4093_v44, 2 }
 0x2fe   :  { %v3128_v8 = vpop.f32.mrf.mxu2 }
 0x2ff   :  { %v3323_v47 = vpop.f32.mrf.mxu0  ;;  %v3147_v4 = vadd.f32 %v3128_v8, %v7771_v35 }
 0x300   :  { %v3344_v59 = vadd.f32 %v3323_v47, %v3266_v31  ;;  %v3887_v47 = vsel %vm211_vm3, %v3884_v19, %v3886_v49 }
 0x301   :  { %v3267_v60 = vadd.f32 %v3248_v43, %v3147_v4  ;;  %v4096_v43 = vor.u32 %v4095_v16, %v4092_v45 }
 0x302   :  { %v7922_v15 = vadd.f32 %v3436_v32, %v3344_v59  ;;  %v3250_v2 = vpop.f32.mrf.mxu3 }
 0x303   :  { %v3439_v27 = vpop.f32.mrf.mxu1 }
 0x306   :  { %v3130_v35 = vpop.f32.mrf.mxu2  ;;  %6004 = vmatmul.msk.bf16.vlgmr.msra.gmra.mxu1 %vm104_vm1, %v4194_v24 }
 0x307   :  { %v3326_v55 = vpop.f32.mrf.mxu0  ;;  %v3148_v22 = vadd.f32 %v3130_v35, %v7786_v51  ;;  %5993 = vmatmul.msk.bf16.gmra.mxu3 %vm104_vm1, %v3998_v26  ;;  %v7941_v51 = vld [vmem:[%s8571_s0 + $0xec] sm:$0xff] }
 0x308   :  { %v3345_v20 = vadd.f32 %v3326_v55, %v3267_v60  ;;  %v3999_v37 = vrot.slane %v7941_v51, 1  ;;  %v4099_v25 = vshrl.u32 %v7941_v51, 16  ;;  %v4102_v57 = vshll.u32 %v7941_v51, 16 }
 0x309   :  { %v3268_v40 = vadd.f32 %v3250_v2, %v3148_v22  ;;  %v4197_v28 = vrot.slane %v7941_v51, 2  ;;  %v3888_v22 = vrot.slane %v7831_v38, 1 }
 0x30a   :  { %5998 = vmatmul.msk.bf16.vlgmr.msra.gmra.mxu0 %vm104_vm1, %v4088_v52  ;;  %v7933_v7 = vadd.f32 %v3439_v27, %v3345_v20  ;;  %v3253_v1 = vpop.f32.mrf.mxu3  ;;  %v4000_v63 = vsel %vm211_vm3, %v3997_v33, %v3999_v37  ;;  %v4101_v23 = vrot.slane %v4099_v25, 1  ;;  %v4104_v33 = vrot.slane %v4102_v57, 2 }
 0x30b   :  { %v3441_v12 = vpop.f32.mrf.mxu1  ;;  %5971 = vmatmul.msk.bf16.gmra.mxu2 %vm104_vm1, %v3885_v17  ;;  %v4198_v55 = vsel %vm527_vm4, %v4195_v30, %v4197_v28  ;;  %v3889_v44 = vsel %vm211_vm3, %v3886_v49, %v3888_v22  ;;  %v3890_v57 = vrot.slane %v7872_v21, 1 }
 0x30c   :  { %v4105_v19 = vor.u32 %v4104_v33, %v4101_v23 }
 0x30e   :  { %v3133_v54 = vpop.f32.mrf.mxu2 }
 0x30f   :  { %v3328_v29 = vpop.f32.mrf.mxu0  ;;  %v3149_v5 = vadd.f32 %v3133_v54, %v7797_v18  ;;  %v4097_v18 = vsel %vm405_vm5, %v4087_v13, %v4096_v43 }
 0x310   :  { %v3346_v0 = vadd.f32 %v3328_v29, %v3268_v40  ;;  %v4106_v40 = vsel %vm405_vm5, %v4096_v43, %v4105_v19 }
 0x311   :  { %v3269_v9 = vadd.f32 %v3253_v1, %v3149_v5  ;;  %v4265_v5 = vld [vmem:[%s8571_s0 + $0xd8] sm:$0xc] }
 0x312   :  { %v7946_v53 = vadd.f32 %v3441_v12, %v3346_v0  ;;  %v3255_v31 = vpop.f32.mrf.mxu3  ;;  %v4288_v49 = vunpack.c.l.b16 %v4265_v5 }
 0x313   :  { %v3444_v42 = vpop.f32.mrf.mxu1 }
 0x316   :  { %v3135_v32 = vpop.f32.mrf.mxu2  ;;  %6005 = vmatmul.msk.bf16.gmra.mxu1 %vm104_vm1, %v4196_v61  ;;  %v4067_v61 = vld [vmem:[%s8571_s0 + $0xfc] sm:$0x3] }
 0x317   :  { %v3331_v11 = vpop.f32.mrf.mxu0  ;;  %v3150_v39 = vadd.f32 %v3135_v32, %v7815_v58  ;;  %5994 = vmatmul.msk.bf16.gmra.mxu3 %vm104_vm1, %v4000_v63  ;;  %v7965_v58 = vld [vmem:[%s8571_s0 + $0xf4] sm:$0xff]  ;;  %v4289_v32 = vunpack.c.h.b16 %v7857_v62 }
 0x318   :  { %v3347_v8 = vadd.f32 %v3331_v11, %v3269_v9  ;;  %v4001_v13 = vrot.slane %v7965_v58, 1  ;;  %v4108_v29 = vshrl.u32 %v7965_v58, 16  ;;  %v4111_v45 = vshll.u32 %v7965_v58, 16 }
 0x319   :  { %v3270_v3 = vadd.f32 %v3255_v31, %v3150_v39 }
 0x31a   :  { %5999 = vmatmul.msk.bf16.gmra.mxu0 %vm104_vm1, %v4097_v18  ;;  %v7957_v14 = vadd.f32 %v3444_v42, %v3347_v8  ;;  %v3258_v48 = vpop.f32.mrf.mxu3  ;;  %v4002_v52 = vsel %vm211_vm3, %v3999_v37, %v4001_v13  ;;  %v4110_v37 = vrot.slane %v4108_v29, 1  ;;  %v4113_v9 = vrot.slane %v4111_v45, 2  ;;  %v8043_v29 = vld [vmem:[%s8571_s0 + $0x104] sm:$0xff]  }
 0x31b   :  { %v3446_v4 = vpop.f32.mrf.mxu1  ;;  %5972 = vmatmul.msk.bf16.gmra.mxu2 %vm104_vm1, %v3887_v47  ;;  %v4199_v42 = vrot.slane %v7965_v58, 2  ;;  %v4070_v47 = vunpack.c.l.b16 %v4067_v61  ;;  %v8048_v45 = vld [vmem:[%s8571_s0 + $0x104] sm:$0xf0] }
 0x31c   :  { %v8000_v8 = vor.u32 %v4113_v9, %v4110_v37  ;;  %v6098_v61 = vld [vmem:[%s8572_s1 + $0x8] sm:$0x3] }
 0x31d   :  { %v4200_v25 = vsel %vm527_vm4, %v4197_v28, %v4199_v42 }
 0x31e   :  { %v3138_v59 = vpop.f32.mrf.mxu2 }
 0x31f   :  { %v3333_v6 = vpop.f32.mrf.mxu0  ;;  %v3151_v60 = vadd.f32 %v3138_v59, %v7826_v56  ;;  %v3964_v56 = vld [vmem:[%s8571_s0 + $0xfc] sm:$0x1]  ;;  %v8015_v59 = vpack.c.b16 %v4289_v32, %v4288_v49 }
 0x320   :  { %v3348_v2 = vadd.f32 %v3333_v6, %v3270_v3  ;;  %v3987_v12 = vunpack.c.l.b16 %v3964_v56 }
 0x321   :  { %v3271_v27 = vadd.f32 %v3258_v48, %v3151_v60  ;;  %v4115_v60 = vsel %vm405_vm5, %v4105_v19, %v8000_v8  ;;  %v6070_v19 = vld [vmem:[%s8572_s1 + $0x4] sm:$0x3] }
 0x322   :  { %v7970_v24 = vadd.f32 %v3446_v4, %v3348_v2  ;;  %v3260_v26 = vpop.f32.mrf.mxu3  ;;  %v4071_v2 = vpack.c.b16 %v4070_v47, %v4070_v47  ;;  %v4822_v56 = vsel %vm120_vm0, %v6070_v19, 0 }
 0x323   :  { %v3449_v35 = vpop.f32.mrf.mxu1  ;;  %4831 = vmatpush.bf16.msra.mxu3 %v4822_v56 }
 0x326   :  { %v3140_v20 = vpop.f32.mrf.mxu2  ;;  %6006 = vmatmul.msk.bf16.gmra.mxu1 %vm104_vm1, %v4198_v55  ;;  %v4384_v55 = vshrl.u32 %v8015_v59, 16 }
 0x327   :  { %v3336_v17 = vpop.f32.mrf.mxu0  ;;  %v3152_v1 = vadd.f32 %v3140_v20, %v7845_v10  ;;  %5995 = vmatmul.msk.bf16.gmra.mxu3 %vm104_vm1, %v4002_v52  ;;  %v3993_v10 = vpack.c.b16 %v3987_v12, %v3987_v12 }
 0x328   :  { %v3349_v50 = vadd.f32 %v3336_v17, %v3271_v27  ;;  %v4117_v17 = vshrl.u32 %v4071_v2, 16 }
 0x329   :  { %v3272_v38 = vadd.f32 %v3260_v26, %v3152_v1  ;;  %v4003_v63 = vrot.slane %v3993_v10, 1 }
 0x32a   :  { %6000 = vmatmul.msk.bf16.gmra.mxu0 %vm104_vm1, %v4106_v40  ;;  %v7984_v51 = vadd.f32 %v3449_v35, %v3349_v50  ;;  %v3627_v54 = vpop.f32.mrf.mxu3  ;;  %v4616_v35 = vld [vmem:[%s8572_s1] sm:$0x3]  ;;  %v4120_v40 = vshll.u32 %v4071_v2, 16 }
 0x32b   :  { %v3451_v16 = vpop.f32.mrf.mxu1  ;;  %5973 = vmatmul.msk.bf16.gmra.mxu2 %vm104_vm1, %v3889_v44  ;;  %v4004_v4 = vsel %vm211_vm3, %v4001_v13, %v4003_v63  ;;  %v3891_v13 = vsel %vm211_vm3, %v3888_v22, %v3890_v57  ;;  %v4754_v52 = vsel %vm120_vm0, %v4616_v35, 0  ;;  %v4386_v44 = vrot.slane %v4384_v55, 2 }
 0x32c   :  { %4763 = vmatpush.bf16.msra.mxu2 %v4754_v52  ;;  %v4122_v37 = vrot.slane %v4120_v40, 2 }
 0x32e   :  { %v3549_v30 = vpop.f32.mrf.mxu2 }
 0x32f   :  { %v3338_v0 = vpop.f32.mrf.mxu0  ;;  %v3574_v43 = vadd.f32 %v3549_v30, %v7870_v34  ;;  %v8005_v34 = vld [vmem:[%s8571_s0 + $0xe0] sm:$0xff]  ;;  %v4119_v30 = vrot.slane %v4117_v17, 1 }
 0x330   :  { %v3350_v31 = vadd.f32 %v3338_v0, %v3272_v38  ;;  %v4392_v27 = vshrl.u32 %v8005_v34, 16  ;;  %v4395_v26 = vshll.u32 %v8005_v34, 16  ;;  %v4201_v0 = vrot.slane %v4071_v2, 2 }
 0x331   :  { %v3652_v11 = vadd.f32 %v3627_v54, %v3574_v43  ;;  %v6076_v43 = vld [vmem:[%s8572_s1 + $0x6] sm:$0x3] }
 0x332   :  { %v7998_v18 = vadd.f32 %v3451_v16, %v3350_v31  ;;  %v3629_v39 = vpop.f32.mrf.mxu3  ;;  %v4394_v38 = vrot.slane %v4392_v27, 2  ;;  %v4397_v54 = vrot.slane %v4395_v26, 3  ;;  %v4202_v57 = vsel %vm527_vm4, %v4199_v42, %v4201_v0 }
 0x333   :  { %v3662_v3 = vadd.f32 %v7675_v46, %v3652_v11  ;;  %v3851_v48 = vpop.f32.mrf.mxu1  ;;  %v4935_v11 = vsel %vm120_vm0, %v6076_v43, 0  ;;  %v4504_v43 = vrot.slane %v8005_v34, 3 }
 0x334   :  { %v4398_v49 = vor.u32 %v4397_v54, %v4394_v38  ;;  %4944 = vmatpush.bf16.msra.mxu0 %v4935_v11 }
 0x335   :  { %v3672_v6 = vmax.f32 %v3662_v3, 0.0  ;;  %v4123_v3 = vor.u32 %v4122_v37, %v4119_v30 }
 0x336   :  { %v3551_v23 = vpop.f32.mrf.mxu2  ;;  %6007 = vmatmul.msk.bf16.gmra.mxu1 %vm104_vm1, %v4200_v25 }
 0x337   :  { %v3804_v33 = vpop.f32.mrf.mxu0  ;;  %3682 = vst [vmem:[#allocation2 + $0xf0] sm:$0xff] %v3672_v6  ;;  %v3575_v21 = vadd.f32 %v3551_v23, %v7895_v41  ;;  %5996 = vmatmul.msk.bf16.gmra.mxu3 %vm104_vm1, %v4004_v4  ;;  %v4387_v41 = vshll.u32 %v8015_v59, 16  ;;  %v4305_v6 = vrot.slane %v8015_v59, 2  ;;  %v4306_v23 = vrot.slane %v8005_v34, 2  ;;  %v8083_v59 = vld [vmem:[%s8571_s0 + $0x10c] sm:$0xff] }
 0x338   :  { %v8022_v28 = vadd.f32 %v3851_v48, %v3804_v33  ;;  %v8071_v33 = vld [vmem:[%s8571_s0 + $0xe8] sm:$0xff]  ;;  %v4655_v17 = vshll.u32 %v8083_v59, 16 }
 0x339   :  { %v3653_v20 = vadd.f32 %v3629_v39, %v3575_v21  ;;  %v4389_v12 = vrot.slane %v4387_v41, 3  ;;  %v5055_v39 = vsel %vm120_vm0, %v6098_v61, 0  ;;  %v4650_v21 = vshll.u32 %v8043_v29, 16  ;;  %v8096_v41 = vld [vmem:[%s8573_s2] ss:$0 sm:$0xff] }
 0x33a   :  { %6001 = vmatmul.msk.bf16.gmra.mxu0 %vm104_vm1, %v4115_v60  ;;  %v3632_v22 = vpop.f32.mrf.mxu3  ;;  %5064 = vmatpush.bf16.msra.mxu1 %v5055_v39  ;;  %v4401_v26 = vshrl.u32 %v8071_v33, 16 }
 0x33b   :  { %v3663_v1 = vadd.f32 %v7675_v46, %v3653_v20  ;;  %v3853_v50 = vpop.f32.mrf.mxu1  ;;  %5974 = vmatmul.msk.bf16.gmra.mxu2 %vm104_vm1, %v3891_v13  ;;  %v4390_v63 = vor.u32 %v4389_v12, %v4386_v44  ;;  %v4498_v13 = vld [vmem:[%s8571_s0 + $0xd8] sm:$0x8]  ;;  %v4648_v20 = vshrl.u32 %v8043_v29, 16 }
 0x33c   :  { %v4501_v55 = vunpack.c.l.b16 %v4498_v13  ;;  %v4403_v40 = vrot.slane %v4401_v26, 2 }
 0x33d   :  { %v3673_v16 = vmax.f32 %v3663_v1, 0.0  ;;  %v4399_v4 = vsel %vm721_vm6, %v4390_v63, %v4398_v49 }
 0x33e   :  { %v3554_v10 = vpop.f32.mrf.mxu2  ;;  %v4502_v38 = vpack.c.b16 %v4289_v32, %v4501_v55  ;;  %v4308_v32 = vrot.slane %v8071_v33, 2 }
 0x33f   :  { %v3806_v5 = vpop.f32.mrf.mxu0  ;;  %3683 = vst [vmem:[#allocation2 + $0xf8] sm:$0xff] %v3673_v16  ;;  %v3576_v9 = vadd.f32 %v3554_v10, %v7909_v36 }
 0x340   :  { %v8051_v31 = vadd.f32 %v3853_v50, %v3806_v5  ;;  %v4657_v5 = vrot.slane %v4655_v17, 1 }
 0x341   :  { %v3654_v47 = vadd.f32 %v3632_v22, %v3576_v9  ;;  %v4652_v22 = vrot.slane %v4650_v21, 1  ;;  %v4503_v9 = vrot.slane %v4502_v38, 3 }
 0x342   :  { %v3634_v36 = vpop.f32.mrf.mxu3 }
 0x343   :  { %v3664_v48 = vadd.f32 %v7675_v46, %v3654_v47  ;;  %v3856_v25 = vpop.f32.mrf.mxu1  ;;  %v4124_v46 = vsel %vm405_vm5, %v8000_v8, %v4123_v3  ;;  %v4307_v8 = vsel %vm527_vm4, %v4305_v6, %v4306_v23  ;;  %v4653_v10 = vor.u32 %v4652_v22, %v4648_v20 }
 0x344   :  { %v4505_v34 = vsel %vm843_vm7, %v4503_v9, %v4504_v43  ;;  %v4506_v20 = vrot.slane %v8071_v33, 3 }
 0x345   :  { %v3674_v60 = vmax.f32 %v3664_v48, 0.0  ;;  %v4658_v11 = vsel %vm59_vm2, %v4653_v10, %v4657_v5 }
 0x346   :  { %v3556_v2 = vpop.f32.mrf.mxu2  ;;  %6008 = vmatmul.msk.bf16.gmra.mxu1 %vm104_vm1, %v4202_v57 }
 0x347   :  { %v3809_v27 = vpop.f32.mrf.mxu0  ;;  %3684 = vst [vmem:[#allocation2 + $0x100] sm:$0xff] %v3674_v60  ;;  %v3577_v58 = vadd.f32 %v3556_v2, %v7922_v15  ;;  %6032 = vmatmul.msk.bf16.vlgmr.msrb.gmra.mxu3 %vm104_vm1, %v4399_v4  ;;  %v4404_v15 = vshll.u32 %v8071_v33, 16  ;;  %v4507_v33 = vsel %vm843_vm7, %v4504_v43, %v4506_v20 }
 0x348   :  { %v8077_v42 = vadd.f32 %v3856_v25, %v3809_v27  ;;  %v4309_v25 = vsel %vm527_vm4, %v4306_v23, %v4308_v32  ;;  %v4659_v27 = vshrl.u32 %v8083_v59, 16 }
 0x349   :  { %v3655_v35 = vadd.f32 %v3634_v36, %v3577_v58  ;;  %v4406_v1 = vrot.slane %v4404_v15, 3 }
 0x34a   :  { %6002 = vmatmul.msk.bf16.gmra.mxu0 %vm104_vm1, %v4124_v46  ;;  %v3637_v19 = vpop.f32.mrf.mxu3 }
 0x34b   :  { %v3665_v52 = vadd.f32 %v8096_v41, %v3655_v35  ;;  %v3858_v56 = vpop.f32.mrf.mxu1  ;;  %6026 = vmatmul.msk.bf16.vlgmr.msrb.gmra.mxu2 %vm104_vm1, %v4307_v8  ;;  %v4407_v0 = vor.u32 %v4406_v1, %v4403_v40  ;;  %v4661_v35 = vor.u32 %v4659_v27, %v4657_v5  ;;  %v8158_v5 = vld [vmem:[%s8571_s0 + $0x11c] sm:$0xff] }
 0x34d   :  { %v3675_v50 = vmax.f32 %v3665_v52, 0.0  ;;  %v4408_v62 = vsel %vm721_vm6, %v4398_v49, %v4407_v0  ;;  %v8126_v49 = vld [vmem:[%s8571_s0 + $0x114] sm:$0xff] }
 0x34e   :  { %v3559_v44 = vpop.f32.mrf.mxu2  ;;  %v4663_v46 = vshll.u32 %v8126_v49, 16 }
 0x34f   :  { %v3811_v12 = vpop.f32.mrf.mxu0  ;;  %3685 = vst [vmem:[#allocation2 + $0x108] sm:$0xff] %v3675_v50  ;;  %v3578_v54 = vadd.f32 %v3559_v44, %v7933_v7  ;;  %v8115_v7 = vld [vmem:[%s8571_s0 + $0xf0] sm:$0xff] }
 0x350   :  { %v8105_v16 = vadd.f32 %v3858_v56, %v3811_v12  ;;  %v4410_v57 = vshrl.u32 %v8115_v7, 16  ;;  %v4413_v4 = vshll.u32 %v8115_v7, 16  ;;  %v4310_v50 = vrot.slane %v8115_v7, 2 }
 0x351   :  { %v3656_v30 = vadd.f32 %v3637_v19, %v3578_v54  ;;  %v4665_v19 = vrot.slane %v4663_v46, 1  ;;  %v4508_v27 = vrot.slane %v8115_v7, 3 }
 0x352   :  { %v3639_v37 = vpop.f32.mrf.mxu3  ;;  %v4412_v58 = vrot.slane %v4410_v57, 2  ;;  %v4415_v21 = vrot.slane %v4413_v4, 3 }
 0x353   :  { %v3666_v61 = vadd.f32 %v8096_v41, %v3656_v30  ;;  %v3861_v63 = vpop.f32.mrf.mxu1  ;;  %v4666_v40 = vsel %vm59_vm2, %v4661_v35, %v4665_v19 }
 0x354   :  { %v4416_v55 = vor.u32 %v4415_v21, %v4412_v58 }
 0x355   :  { %v3676_v39 = vmax.f32 %v3666_v61, 0.0 }
 0x356   :  { %v3561_v47 = vpop.f32.mrf.mxu2  ;;  %6060 = vmatmul.msk.bf16.vlgmr.msrb.gmra.mxu1 %vm104_vm1, %v4658_v11  ;;  %v4417_v1 = vsel %vm721_vm6, %v4407_v0, %v4416_v55  ;;  %v4311_v0 = vsel %vm527_vm4, %v4308_v32, %v4310_v50  ;;  %v4671_v11 = vshll.u32 %v8158_v5, 16 }
 0x357   :  { %v3814_v36 = vpop.f32.mrf.mxu0  ;;  %3686 = vst [vmem:[#allocation2 + $0x110] sm:$0xff] %v3676_v39  ;;  %v3579_v3 = vadd.f32 %v3561_v47, %v7946_v53  ;;  %6033 = vmatmul.msk.bf16.gmra.mxu3 %vm104_vm1, %v4408_v62  ;;  %v4378_v47 = vld [vmem:[%s8571_s0 + $0x100] sm:$0x7] }
 0x358   :  { %v8120_v48 = vadd.f32 %v3861_v63, %v3814_v36  ;;  %v4667_v63 = vshrl.u32 %v8126_v49, 16  ;;  %v4673_v4 = vrot.slane %v4671_v11, 1  ;;  %v6110_v11 = vld [vmem:[%s8572_s1 + $0xc] sm:$0x3] }
 0x359   :  { %v3657_v6 = vadd.f32 %v3639_v37, %v3579_v3 }
 0x35a   :  { %6038 = vmatmul.msk.bf16.vlgmr.msrb.gmra.mxu0 %vm104_vm1, %v4505_v34  ;;  %v3642_v60 = vpop.f32.mrf.mxu3  ;;  %v4669_v57 = vor.u32 %v4667_v63, %v4665_v19  ;;  %v4509_v19 = vsel %vm843_vm7, %v4506_v20, %v4508_v27  ;;  %v6104_v63 = vld [vmem:[%s8572_s1 + $0xa] sm:$0x3] }
 0x35b   :  { %v3667_v53 = vadd.f32 %v8096_v41, %v3657_v6  ;;  %v3863_v2 = vpop.f32.mrf.mxu1  ;;  %6027 = vmatmul.msk.bf16.gmra.mxu2 %vm104_vm1, %v4309_v25 }
 0x35c   :  { %v4674_v21 = vsel %vm59_vm2, %v4669_v57, %v4673_v4 }
 0x35d   :  { %v3677_v23 = vmax.f32 %v3667_v53, 0.0 }
 0x35e   :  { %v3564_v13 = vpop.f32.mrf.mxu2 }
 0x35f   :  { %v3816_v8 = vpop.f32.mrf.mxu0  ;;  %3687 = vst [vmem:[#allocation2 + $0x118] sm:$0xff] %v3677_v23  ;;  %v3580_v26 = vadd.f32 %v3564_v13, %v7957_v14  ;;  %v8147_v14 = vld [vmem:[%s8571_s0 + $0xf8] sm:$0xff] }
 0x360   :  { %v8137_v15 = vadd.f32 %v3863_v2, %v3816_v8  ;;  %v4419_v30 = vshrl.u32 %v8147_v14, 16  ;;  %v4422_v37 = vshll.u32 %v8147_v14, 16  ;;  %v4312_v13 = vrot.slane %v8147_v14, 2 }
 0x361   :  { %v3658_v52 = vadd.f32 %v3642_v60, %v3580_v26  ;;  %v4381_v60 = vunpack.c.l.b16 %v4378_v47  ;;  %v5133_v47 = vsel %vm120_vm0, %v6104_v63, 0 }
 0x362   :  { %v3644_v56 = vpop.f32.mrf.mxu3  ;;  %v4421_v62 = vrot.slane %v4419_v30, 2  ;;  %v4424_v39 = vrot.slane %v4422_v37, 3  ;;  %5142 = vmatpush.bf16.msrb.mxu2 %v5133_v47 }
 0x363   :  { %v3668_v22 = vadd.f32 %v8096_v41, %v3658_v52  ;;  %v3866_v17 = vpop.f32.mrf.mxu1 }
 0x364   :  { %v4425_v6 = vor.u32 %v4424_v39, %v4421_v62 }
 0x365   :  { %v3678_v44 = vmax.f32 %v3668_v22, 0.0 }
 0x366   :  { %v3566_v12 = vpop.f32.mrf.mxu2  ;;  %6061 = vmatmul.msk.bf16.gmra.mxu1 %vm104_vm1, %v4666_v40  ;;  %v4426_v23 = vsel %vm721_vm6, %v4416_v55, %v4425_v6  ;;  %v8190_v55 = vld [vmem:[%s8571_s0 + $0x124] sm:$0xff] }
 0x367   :  { %v3819_v38 = vpop.f32.mrf.mxu0  ;;  %3688 = vst [vmem:[#allocation2 + $0x120] sm:$0xff] %v3678_v44  ;;  %v3581_v54 = vadd.f32 %v3566_v12, %v7970_v24  ;;  %6034 = vmatmul.msk.bf16.gmra.mxu3 %vm104_vm1, %v4417_v1  ;;  %v4675_v12 = vshrl.u32 %v8158_v5, 16 }
 0x368   :  { %v8152_v10 = vadd.f32 %v3866_v17, %v3819_v38 }
 0x369   :  { %v3659_v9 = vadd.f32 %v3644_v56, %v3581_v54  ;;  %v4313_v56 = vsel %vm527_vm4, %v4310_v50, %v4312_v13  ;;  %v4679_v50 = vshll.u32 %v8190_v55, 16 }
 0x36a   :  { %6039 = vmatmul.msk.bf16.gmra.mxu0 %vm104_vm1, %v4507_v33  ;;  %v3647_v43 = vpop.f32.mrf.mxu3 }
 0x36b   :  { %v3669_v24 = vadd.f32 %v8096_v41, %v3659_v9  ;;  %v3868_v61 = vpop.f32.mrf.mxu1  ;;  %6028 = vmatmul.msk.bf16.gmra.mxu2 %vm104_vm1, %v4311_v0 }
 0x36d   :  { %v3679_v32 = vmax.f32 %v3669_v24, 0.0  ;;  %v4677_v24 = vor.u32 %v4675_v12, %v4673_v4 }
 0x36e   :  { %v3569_v36 = vpop.f32.mrf.mxu2 }
 0x36f   :  { %v3821_v34 = vpop.f32.mrf.mxu0  ;;  %3689 = vst [vmem:[#allocation2 + $0x128] sm:$0xff] %v3679_v32  ;;  %v3582_v3 = vadd.f32 %v3569_v36, %v7984_v51  ;;  %v8179_v51 = vpack.c.b16 %v4381_v60, %v4381_v60  ;;  %v4617_v32 = vld [vmem:[%s8571_s0 + $0x12c] sm:$0x1] }
 0x370   :  { %v8172_v25 = vadd.f32 %v3868_v61, %v3821_v34  ;;  %v4681_v61 = vrot.slane %v4679_v50, 1  ;;  %v4640_v60 = vunpack.c.l.b16 %v4617_v32 }
 0x371   :  { %v3660_v53 = vadd.f32 %v3647_v43, %v3582_v3  ;;  %v4428_v22 = vshrl.u32 %v8179_v51, 16  ;;  %v4431_v17 = vshll.u32 %v8179_v51, 16  ;;  %v4510_v3 = vrot.slane %v8147_v14, 3 }
 0x372   :  { %v3649_v2 = vpop.f32.mrf.mxu3  ;;  %v4682_v4 = vsel %vm59_vm2, %v4677_v24, %v4681_v61 }
 0x373   :  { %v3670_v46 = vadd.f32 %v8096_v41, %v3660_v53  ;;  %v3871_v58 = vpop.f32.mrf.mxu1  ;;  %v4430_v38 = vrot.slane %v4428_v22, 2  ;;  %v4433_v33 = vrot.slane %v4431_v17, 3 }
 0x375   :  { %v3680_v8 = vmax.f32 %v3670_v46, 0.0  ;;  %v4434_v62 = vor.u32 %v4433_v33, %v4430_v38  ;;  %v6256_v46 = vld [vmem:[%s8571_s0 + $0x104] sm:$0xe] }
 0x376   :  { %v3571_v26 = vpop.f32.mrf.mxu2  ;;  %6062 = vmatmul.msk.bf16.gmra.mxu1 %vm104_vm1, %v4674_v21 }
 0x377   :  { %v3824_v35 = vpop.f32.mrf.mxu0  ;;  %3690 = vst [vmem:[#allocation2 + $0x130] sm:$0xff] %v3680_v8  ;;  %v3583_v7 = vadd.f32 %v3571_v26, %v7998_v18  ;;  %6035 = vmatmul.msk.bf16.gmra.mxu3 %vm104_vm1, %v4426_v23  ;;  %v4275_v18 = vld [vmem:[%s8571_s0 + $0x100] sm:$0x3]  ;;  %v4435_v53 = vsel %vm721_vm6, %v4425_v6, %v4434_v62  ;;  %v4511_v23 = vsel %vm843_vm7, %v4508_v27, %v4510_v3  ;;  %v4683_v27 = vshrl.u32 %v8190_v55, 16 }
 0x378   :  { %v8184_v52 = vadd.f32 %v3871_v58, %v3824_v35  ;;  %v4298_v54 = vunpack.c.l.b16 %v4275_v18  ;;  %v8227_v26 = vpack.c.b16 %v4640_v60, %v4640_v60  ;;  %v6138_v18 = vld [vmem:[%s8572_s1 + $0x10] sm:$0x3] }
 0x379   :  { %v3661_v40 = vadd.f32 %v3649_v2, %v3583_v7 }
 0x37a   :  { %6040 = vmatmul.msk.bf16.gmra.mxu0 %vm104_vm1, %v4509_v19  ;;  %v4032_v20 = vpop.f32.mrf.mxu3  ;;  %v4304_v39 = vpack.c.b16 %v4298_v54, %v4298_v54  ;;  %v6132_v19 = vld [vmem:[%s8572_s1 + $0xe] sm:$0x3]  ;;  %v4687_v17 = vshll.u32 %v8227_v26, 16 }
 0x37b   :  { %v3671_v1 = vadd.f32 %v8096_v41, %v3661_v40  ;;  %v3873_v44 = vpop.f32.mrf.mxu1  ;;  %6029 = vmatmul.msk.bf16.gmra.mxu2 %vm104_vm1, %v4313_v56  ;;  %v8246_v40 = vld [vmem:[%s8571_s0 + $0x10c] sm:$0xff]  }
 0x37c   :  { %v4314_v2 = vrot.slane %v4304_v39, 2  ;;  %v4892_v38 = vunpack.c.l.b16 %v8246_v40 }
 0x37d   :  { %v3681_v0 = vmax.f32 %v3671_v1, 0.0  ;;  %v5444_v1 = vsel %vm120_vm0, %v6138_v18, 0 }
 0x37e   :  { %v3919_v37 = vpop.f32.mrf.mxu2  ;;  %v4315_v6 = vsel %vm527_vm4, %v4312_v13, %v4314_v2  ;;  %v4868_v13 = vld [vmem:[%s8571_s0 + $0x108] sm:$0xe]  ;;  %5453 = vmatpush.bf16.msrb.mxu1 %v5444_v1 }
 0x37f   :  { %v3826_v30 = vpop.f32.mrf.mxu0  ;;  %3691 = vst [vmem:[#allocation2 + $0x138] sm:$0xff] %v3681_v0  ;;  %v3944_v43 = vadd.f32 %v3919_v37, %v8022_v28  ;;  %v5246_v28 = vsel %vm120_vm0, %v6110_v11, 0  ;;  %v4891_v50 = vunpack.c.l.b16 %v4868_v13  ;;  %v4685_v0 = vor.u32 %v4683_v27, %v4681_v61 }
 0x380   :  { %v8203_v9 = vadd.f32 %v3873_v44, %v3826_v30  ;;  %5255 = vmatpush.bf16.msrb.mxu3 %v5246_v28  ;;  %v4689_v30 = vrot.slane %v4687_v17, 1  ;;  %v4512_v11 = vrot.slane %v8179_v51, 3 }
 0x381   :  { %v4057_v36 = vadd.f32 %v4032_v20, %v3944_v43  ;;  %v6257_v20 = vor.u32 %v6256_v46, %v8048_v45  ;;  %v4796_v43 = vrot.slane %v8083_v59, 1  ;;  %v4902_v62 = vpack.c.b16 %v4892_v38, %v4891_v50 }
 0x382   :  { %v4034_v34 = vpop.f32.mrf.mxu3  ;;  %v4690_v32 = vsel %vm59_vm2, %v4685_v0, %v4689_v30 }
 0x383   :  { %v4230_v57 = vpop.f32.mrf.mxu1  ;;  %v4795_v37 = vrot.slane %v6257_v20, 1  ;;  %v4987_v51 = vshrl.u32 %v4902_v62, 16  ;;  %v4908_v18 = vrot.slane %v4902_v62, 1 }
 0x385   :  { %v4797_v61 = vsel %vm211_vm3, %v4795_v37, %v4796_v43 }
 0x386   :  { %v3921_v58 = vpop.f32.mrf.mxu2  ;;  %6063 = vmatmul.msk.bf16.gmra.mxu1 %vm104_vm1, %v4682_v4 }
 0x387   :  { %v4152_v21 = vpop.f32.mrf.mxu0  ;;  %v3945_v8 = vadd.f32 %v3921_v58, %v8051_v31  ;;  %6036 = vmatmul.msk.bf16.gmra.mxu3 %vm104_vm1, %v4435_v53  ;;  %v5366_v31 = vsel %vm120_vm0, %v6132_v19, 0 }
 0x388   :  { %v4177_v14 = vadd.f32 %v4152_v21, %v4057_v36  ;;  %5375 = vmatpush.bf16.msrb.mxu0 %v5366_v31  ;;  %v4513_v36 = vsel %vm843_vm7, %v4510_v3, %v4512_v11  ;;  %v4989_v3 = vrot.slane %v4987_v51, 1  ;;  %v4798_v31 = vrot.slane %v8126_v49, 1 }
 0x389   :  { %v4058_v35 = vadd.f32 %v4034_v34, %v3945_v8  ;;  %v4990_v34 = vshll.u32 %v4902_v62, 16 }
 0x38a   :  { %6041 = vmatmul.msk.bf16.gmra.mxu0 %vm104_vm1, %v4511_v23  ;;  %v8234_v7 = vadd.f32 %v4230_v57, %v4177_v14  ;;  %v4037_v56 = vpop.f32.mrf.mxu3 }
 0x38b   :  { %v4232_v22 = vpop.f32.mrf.mxu1  ;;  %6030 = vmatmul.msk.bf16.gmra.mxu2 %vm104_vm1, %v4315_v6  ;;  %v4992_v23 = vrot.slane %v4990_v34, 2 }
 0x38e   :  { %v3924_v44 = vpop.f32.mrf.mxu2 }
 0x38f   :  { %v4154_v12 = vpop.f32.mrf.mxu0  ;;  %v3946_v33 = vadd.f32 %v3924_v44, %v8077_v42  ;;  %v8265_v42 = vld [vmem:[%s8571_s0 + $0x110] sm:$0xff]  ;;  %v8288_v44 = vld [vmem:[%s8571_s0 + $0x118] sm:$0xff] }
 0x390   :  { %v4178_v54 = vadd.f32 %v4154_v12, %v4058_v35  ;;  %v4995_v60 = vshrl.u32 %v8265_v42, 16  ;;  %v4998_v53 = vshll.u32 %v8265_v42, 16  ;;  %v5004_v30 = vshrl.u32 %v8288_v44, 16 }
 0x391   :  { %v4059_v24 = vadd.f32 %v4037_v56, %v3946_v33  ;;  %v4993_v56 = vor.u32 %v4992_v23, %v4989_v3  ;;  %v5007_v37 = vshll.u32 %v8288_v44, 16 }
 0x392   :  { %v8256_v63 = vadd.f32 %v4232_v22, %v4178_v54  ;;  %v4039_v45 = vpop.f32.mrf.mxu3  ;;  %v5000_v8 = vrot.slane %v4998_v53, 2  ;;  %v5006_v62 = vrot.slane %v5004_v30, 1 }
 0x393   :  { %v4235_v39 = vpop.f32.mrf.mxu1 }
 0x396   :  { %v3926_v47 = vpop.f32.mrf.mxu2  ;;  %6064 = vmatmul.msk.bf16.gmra.mxu1 %vm104_vm1, %v4690_v32 }
 0x397   :  { %v4157_v28 = vpop.f32.mrf.mxu0  ;;  %v3947_v57 = vadd.f32 %v3926_v47, %v8105_v16  ;;  %6071 = vmatmul.msk.bf16.vlgmr.msra.gmra.mxu3 %vm104_vm1, %v4797_v61  ;;  %v4997_v16 = vrot.slane %v4995_v60, 1 }
 0x398   :  { %v4179_v4 = vadd.f32 %v4157_v28, %v4059_v24 }
 0x399   :  { %v4060_v2 = vadd.f32 %v4039_v45, %v3947_v57  ;;  %v5001_v27 = vor.u32 %v5000_v8, %v4997_v16 }
 0x39a   :  { %6042 = vmatmul.msk.bf16.gmra.mxu0 %vm104_vm1, %v4513_v36  ;;  %v8275_v46 = vadd.f32 %v4235_v39, %v4179_v4  ;;  %v4042_v58 = vpop.f32.mrf.mxu3  ;;  %v5009_v39 = vrot.slane %v5007_v37, 2  ;;  %v4800_v36 = vrot.slane %v8158_v5, 1  ;;  %v4911_v4 = vrot.slane %v8288_v44, 1 }
 0x39b   :  { %v4237_v21 = vpop.f32.mrf.mxu1  ;;  %6065 = vmatmul.msk.bf16.vlgmr.msra.gmra.mxu2 %vm104_vm1, %v8043_v29  ;;  %v4909_v29 = vrot.slane %v8265_v42, 1  ;;  %v5002_v1 = vsel %vm405_vm5, %v4993_v56, %v5001_v27 }
 0x39c   :  { %v5010_v28 = vor.u32 %v5009_v39, %v5006_v62 }
 0x39d   :  { %v4910_v33 = vsel %vm211_vm3, %v4908_v18, %v4909_v29 }
 0x39e   :  { %v3929_v14 = vpop.f32.mrf.mxu2  ;;  %v5011_v53 = vsel %vm405_vm5, %v5001_v27, %v5010_v28 }
 0x39f   :  { %v4159_v6 = vpop.f32.mrf.mxu0  ;;  %v3948_v35 = vadd.f32 %v3929_v14, %v8120_v48  ;;  %v4799_v48 = vsel %vm211_vm3, %v4796_v43, %v4798_v31 }
 0x3a0   :  { %v4180_v19 = vadd.f32 %v4159_v6, %v4060_v2 }
 0x3a1   :  { %v4061_v22 = vadd.f32 %v4042_v58, %v3948_v35 }
 0x3a2   :  { %v8281_v17 = vadd.f32 %v4237_v21, %v4180_v19  ;;  %v4044_v13 = vpop.f32.mrf.mxu3  ;;  %v4912_v21 = vsel %vm211_vm3, %v4909_v29, %v4911_v4  ;;  %v4802_v29 = vrot.slane %v8190_v55, 1 }
 0x3a3   :  { %v4240_v20 = vpop.f32.mrf.mxu1 }
 0x3a6   :  { %v3931_v12 = vpop.f32.mrf.mxu2  ;;  %6099 = vmatmul.msk.bf16.vlgmr.msra.gmra.mxu1 %vm104_vm1, %v5002_v1 }
 0x3a7   :  { %v4162_v50 = vpop.f32.mrf.mxu0  ;;  %v3949_v54 = vadd.f32 %v3931_v12, %v8137_v15  ;;  %6072 = vmatmul.msk.bf16.gmra.mxu3 %vm104_vm1, %v4799_v48 }
 0x3a8   :  { %v4181_v0 = vadd.f32 %v4162_v50, %v4061_v22 }
 0x3a9   :  { %v4062_v24 = vadd.f32 %v4044_v13, %v3949_v54 }
 0x3aa   :  { %6093 = vmatmul.msk.bf16.vlgmr.msra.gmra.mxu0 %vm104_vm1, %v4910_v33  ;;  %v8298_v45 = vadd.f32 %v4240_v20, %v4181_v0  ;;  %v4047_v43 = vpop.f32.mrf.mxu3 }
 0x3ab   :  { %v4242_v11 = vpop.f32.mrf.mxu1  ;;  %6066 = vmatmul.msk.bf16.gmra.mxu2 %vm104_vm1, %v8083_v59  ;;  %v8311_v59 = vld [vmem:[%s8571_s0 + $0x120] sm:$0xff] }
 0x3ac   :  { %v5013_v16 = vshrl.u32 %v8311_v59, 16  ;;  %v5016_v8 = vshll.u32 %v8311_v59, 16  ;;  %v4913_v12 = vrot.slane %v8311_v59, 1 }
 0x3ae   :  { %v3934_v15 = vpop.f32.mrf.mxu2  ;;  %v5015_v56 = vrot.slane %v5013_v16, 1  ;;  %v5018_v27 = vrot.slane %v5016_v8, 2  ;;  %v4914_v30 = vsel %vm211_vm3, %v4911_v4, %v4913_v12 }
 0x3af   :  { %v4164_v32 = vpop.f32.mrf.mxu0  ;;  %v3950_v61 = vadd.f32 %v3934_v15, %v8152_v10  ;;  %v4801_v10 = vsel %vm211_vm3, %v4798_v31, %v4800_v36 }
 0x3b0   :  { %v4182_v47 = vadd.f32 %v4164_v32, %v4062_v24  ;;  %v5019_v18 = vor.u32 %v5018_v27, %v5015_v56  ;;  %v4878_v27 = vld [vmem:[%s8571_s0 + $0x130] sm:$0x1] }
 0x3b1   :  { %v4063_v51 = vadd.f32 %v4047_v43, %v3950_v61 }
 0x3b2   :  { %v8304_v34 = vadd.f32 %v4242_v11, %v4182_v47  ;;  %v4049_v57 = vpop.f32.mrf.mxu3  ;;  %v5020_v33 = vsel %vm405_vm5, %v5010_v28, %v5019_v18 }
 0x3b3   :  { %v4245_v60 = vpop.f32.mrf.mxu1 }
 0x3b6   :  { %v3936_v2 = vpop.f32.mrf.mxu2  ;;  %6100 = vmatmul.msk.bf16.gmra.mxu1 %vm104_vm1, %v5011_v53 }
 0x3b7   :  { %v4167_v58 = vpop.f32.mrf.mxu0  ;;  %v3951_v3 = vadd.f32 %v3936_v2, %v8172_v25  ;;  %6073 = vmatmul.msk.bf16.gmra.mxu3 %vm104_vm1, %v4801_v10 }
 0x3b8   :  { %v4183_v23 = vadd.f32 %v4167_v58, %v4063_v51 }
 0x3b9   :  { %v4064_v14 = vadd.f32 %v4049_v57, %v3951_v3 }
 0x3ba   :  { %6094 = vmatmul.msk.bf16.gmra.mxu0 %vm104_vm1, %v4912_v21  ;;  %v8321_v6 = vadd.f32 %v4245_v60, %v4183_v23  ;;  %v4052_v35 = vpop.f32.mrf.mxu3  ;;  %v4804_v60 = vrot.slane %v8227_v26, 1  ;;  %v5179_v26 = vld [vmem:[%s8571_s0 + $0x10c] sm:$0xc] }
 0x3bb   :  { %v4247_v19 = vpop.f32.mrf.mxu1  ;;  %6067 = vmatmul.msk.bf16.gmra.mxu2 %vm104_vm1, %v8126_v49  ;;  %v8334_v49 = vld [vmem:[%s8571_s0 + $0x128] sm:$0xff] }
 0x3bc   :  { %v5022_v43 = vshrl.u32 %v8334_v49, 16  ;;  %v5025_v11 = vshll.u32 %v8334_v49, 16  ;;  %v4805_v23 = vsel %vm211_vm3, %v4802_v29, %v4804_v60 }
 0x3be   :  { %v3939_v25 = vpop.f32.mrf.mxu2  ;;  %v5024_v61 = vrot.slane %v5022_v43, 1  ;;  %v5027_v47 = vrot.slane %v5025_v11, 2 }
 0x3bf   :  { %v4169_v31 = vpop.f32.mrf.mxu0  ;;  %v3952_v22 = vadd.f32 %v3939_v25, %v8184_v52  ;;  %v4803_v52 = vsel %vm211_vm3, %v4800_v36, %v4802_v29  ;;  %v5202_v25 = vunpack.c.l.b16 %v5179_v26 }
 0x3c0   :  { %v4184_v13 = vadd.f32 %v4169_v31, %v4064_v14  ;;  %v5028_v57 = vor.u32 %v5027_v47, %v5024_v61  ;;  %v5203_v31 = vunpack.c.h.b16 %v8246_v40  ;;  %v5412_v40 = vld [vmem:[%s8571_s0 + $0x10c] sm:$0x8] }
 0x3c1   :  { %v4065_v20 = vadd.f32 %v4052_v35, %v3952_v22 }
 0x3c2   :  { %v8327_v1 = vadd.f32 %v4247_v19, %v4184_v13  ;;  %v4054_v48 = vpop.f32.mrf.mxu3  ;;  %v5029_v21 = vsel %vm405_vm5, %v5019_v18, %v5028_v57  ;;  %v5101_v18 = vld [vmem:[%s8571_s0 + $0x108] sm:$0xc] }
 0x3c3   :  { %v4250_v50 = vpop.f32.mrf.mxu1 }
 0x3c6   :  { %v3941_v54 = vpop.f32.mrf.mxu2  ;;  %6101 = vmatmul.msk.bf16.gmra.mxu1 %vm104_vm1, %v5020_v33 }
 0x3c7   :  { %v4172_v0 = vpop.f32.mrf.mxu0  ;;  %v3953_v37 = vadd.f32 %v3941_v54, %v8203_v9  ;;  %6074 = vmatmul.msk.bf16.gmra.mxu3 %vm104_vm1, %v4803_v52  ;;  %v4981_v9 = vld [vmem:[%s8571_s0 + $0x130] sm:$0x3]  ;;  %v5213_v52 = vpack.c.b16 %v5203_v31, %v5202_v25  ;;  %v5104_v54 = vunpack.c.l.b16 %v5101_v18 }
 0x3c8   :  { %v4185_v24 = vadd.f32 %v4172_v0, %v4065_v20  ;;  %v4984_v4 = vunpack.c.l.b16 %v4981_v9  ;;  %v4901_v20 = vunpack.c.l.b16 %v4878_v27 }
 0x3c9   :  { %v4066_v62 = vadd.f32 %v4054_v48, %v3953_v37 }
 0x3ca   :  { %6095 = vmatmul.msk.bf16.gmra.mxu0 %vm104_vm1, %v4914_v30  ;;  %v8344_v39 = vadd.f32 %v4250_v50, %v4185_v24  ;;  %v4463_v15 = vpop.f32.mrf.mxu3  ;;  %v8359_v3 = vpack.c.b16 %v4984_v4, %v4984_v4  ;;  %v4907_v24 = vpack.c.b16 %v4901_v20, %v4901_v20 }
 0x3cb   :  { %v4252_v32 = vpop.f32.mrf.mxu1  ;;  %6068 = vmatmul.msk.bf16.gmra.mxu2 %vm104_vm1, %v8158_v5  ;;  %v4915_v5 = vrot.slane %v8334_v49, 1 }
 0x3cc   :  { %v5031_v19 = vshrl.u32 %v8359_v3, 16  ;;  %v5034_v56 = vshll.u32 %v8359_v3, 16  ;;  %v4917_v9 = vrot.slane %v4907_v24, 1 }
 0x3cd   :  { %v4916_v14 = vsel %vm211_vm3, %v4913_v12, %v4915_v5 }
 0x3ce   :  { %v4343_v36 = vpop.f32.mrf.mxu2  ;;  %v5033_v50 = vrot.slane %v5031_v19, 1  ;;  %v5036_v33 = vrot.slane %v5034_v56, 2 }
 0x3cf   :  { %v4174_v28 = vpop.f32.mrf.mxu0  ;;  %v4368_v53 = vadd.f32 %v4343_v36, %v8234_v7 }
 0x3d0   :  { %v4186_v51 = vadd.f32 %v4174_v28, %v4066_v62  ;;  %v5037_v11 = vor.u32 %v5036_v33, %v5033_v50  ;;  %v5219_v62 = vrot.slane %v5213_v52, 2 }
 0x3d1   :  { %v4488_v16 = vadd.f32 %v4463_v15, %v4368_v53  ;;  %v5107_v53 = vrot.slane %v8265_v42, 2 }
 0x3d2   :  { %v8353_v10 = vadd.f32 %v4252_v32, %v4186_v51  ;;  %v4465_v2 = vpop.f32.mrf.mxu3  ;;  %v5038_v51 = vsel %vm405_vm5, %v5028_v57, %v5037_v11  ;;  %v5415_v57 = vunpack.c.l.b16 %v5412_v40 }
 0x3d3   :  { %v8356_v58 = vpop.f32.mrf.mxu1 }
 0x3d4   :  { %v5416_v27 = vpack.c.b16 %v5203_v31, %v5415_v57 }
 0x3d6   :  { %v4345_v8 = vpop.f32.mrf.mxu2  ;;  %6102 = vmatmul.msk.bf16.gmra.mxu1 %vm104_vm1, %v5029_v21  ;;  %v4918_v21 = vsel %vm211_vm3, %v4915_v5, %v4917_v9  ;;  %v5417_v33 = vrot.slane %v5416_v27, 3 }
 0x3d7   :  { %v4541_v7 = vpop.f32.mrf.mxu0  ;;  %6075 = vmatmul.msk.bf16.gmra.mxu3 %vm104_vm1, %v4805_v23  ;;  %v4369_v22 = vadd.f32 %v4345_v8, %v8256_v63  ;;  %v8387_v63 = vld [vmem:[%s8571_s0 + $0x114] sm:$0xff] }
 0x3d8   :  { %v4566_v35 = vadd.f32 %v4541_v7, %v4488_v16  ;;  %v5220_v15 = vrot.slane %v8387_v63, 2  ;;  %v5298_v7 = vshrl.u32 %v5213_v52, 16  ;;  %v5309_v19 = vshll.u32 %v8387_v63, 16 }
 0x3d9   :  { %v4489_v0 = vadd.f32 %v4465_v2, %v4369_v22 }
 0x3da   :  { %v4576_v13 = vadd.f32 %v8096_v41, %v4566_v35  ;;  %6096 = vmatmul.msk.bf16.gmra.mxu0 %vm104_vm1, %v4916_v14  ;;  %v4468_v29 = vpop.f32.mrf.mxu3  ;;  %v5221_v4 = vsel %vm527_vm4, %v5219_v62, %v5220_v15  ;;  %v5301_v14 = vshll.u32 %v5213_v52, 16  ;;  %v5306_v35 = vshrl.u32 %v8387_v63, 16 }
 0x3db   :  { %v8380_v12 = vpop.f32.mrf.mxu1  ;;  %6069 = vmatmul.msk.bf16.gmra.mxu2 %vm104_vm1, %v8190_v55  ;;  %v5105_v55 = vpack.c.b16 %v4892_v38, %v5104_v54  ;;  %v5300_v18 = vrot.slane %v5298_v7, 2  ;;  %v5418_v52 = vrot.slane %v8387_v63, 3 }
 0x3dc   :  { %v4586_v48 = vmax.f32 %v4576_v13, 0.0  ;;  %v5308_v20 = vrot.slane %v5306_v35, 2 }
 0x3dd   :  { %v5106_v60 = vrot.slane %v5105_v55, 2  ;;  %v5419_v62 = vsel %vm843_vm7, %v5417_v33, %v5418_v52 }
 0x3de   :  { %4596 = vst [vmem:[#allocation2 + $0x140] sm:$0xff] %v4586_v48  ;;  %v4348_v30 = vpop.f32.mrf.mxu2  ;;  %v5311_v48 = vrot.slane %v5309_v19, 3 }
 0x3df   :  { %v4543_v37 = vpop.f32.mrf.mxu0  ;;  %v4370_v32 = vadd.f32 %v4348_v30, %v8275_v46  ;;  %v5108_v16 = vsel %vm527_vm4, %v5106_v60, %v5107_v53 }
 0x3e0   :  { %v4567_v43 = vadd.f32 %v4543_v37, %v4489_v0  ;;  %v5312_v24 = vor.u32 %v5311_v48, %v5308_v20 }
 0x3e1   :  { %v4490_v38 = vadd.f32 %v4468_v29, %v4370_v32  ;;  %v5303_v29 = vrot.slane %v5301_v14, 3  ;;  %v5109_v32 = vrot.slane %v8288_v44, 2 }
 0x3e2   :  { %v4577_v61 = vadd.f32 %v8096_v41, %v4567_v43  ;;  %v4470_v47 = vpop.f32.mrf.mxu3 }
 0x3e3   :  { %v8394_v36 = vpop.f32.mrf.mxu1  ;;  %v5304_v37 = vor.u32 %v5303_v29, %v5300_v18 }
 0x3e4   :  { %v4587_v28 = vmax.f32 %v4577_v61, 0.0 }
 0x3e6   :  { %4597 = vst [vmem:[#allocation2 + $0x148] sm:$0xff] %v4587_v28  ;;  %v4350_v46 = vpop.f32.mrf.mxu2  ;;  %6103 = vmatmul.msk.bf16.gmra.mxu1 %vm104_vm1, %v5038_v51  ;;  %v5110_v28 = vsel %vm527_vm4, %v5107_v53, %v5109_v32  ;;  %v8443_v53 = vld [vmem:[%s8571_s0 + $0x124] sm:$0xff] }
 0x3e7   :  { %v4546_v2 = vpop.f32.mrf.mxu0  ;;  %6127 = vmatmul.msk.bf16.vlgmr.msrb.gmra.mxu3 %vm104_vm1, %v5221_v4  ;;  %v4371_v42 = vadd.f32 %v4350_v46, %v8281_v17  ;;  %v8417_v17 = vld [vmem:[%s8571_s0 + $0x11c] sm:$0xff]  ;;  %v5327_v33 = vshll.u32 %v8443_v53, 16 }
 0x3e8   :  { %v4568_v23 = vadd.f32 %v4546_v2, %v4490_v38  ;;  %v5222_v54 = vrot.slane %v8417_v17, 2  ;;  %v5318_v60 = vshll.u32 %v8417_v17, 16 }
 0x3e9   :  { %v4491_v25 = vadd.f32 %v4470_v47, %v4371_v42  ;;  %v5224_v42 = vrot.slane %v8443_v53, 2 }
 0x3ea   :  { %v4578_v26 = vadd.f32 %v8096_v41, %v4568_v23  ;;  %6097 = vmatmul.msk.bf16.gmra.mxu0 %vm104_vm1, %v4918_v21  ;;  %v4473_v8 = vpop.f32.mrf.mxu3  ;;  %v5223_v55 = vsel %vm527_vm4, %v5220_v15, %v5222_v54  ;;  %v5315_v15 = vshrl.u32 %v8417_v17, 16  ;;  %v5320_v23 = vrot.slane %v5318_v60, 3 }
 0x3eb   :  { %v8411_v56 = vpop.f32.mrf.mxu1  ;;  %6105 = vmatmul.msk.bf16.vlgmr.msrb.gmra.mxu2 %vm104_vm1, %v5108_v16  ;;  %v5420_v16 = vrot.slane %v8417_v17, 3  ;;  %v5225_v27 = vsel %vm527_vm4, %v5222_v54, %v5224_v42 }
 0x3ec   :  { %v4588_v5 = vmax.f32 %v4578_v26, 0.0  ;;  %v5317_v21 = vrot.slane %v5315_v15, 2  ;;  %v5189_v15 = vld [vmem:[%s8571_s0 + $0x134] sm:$0x3] }
 0x3ee   :  { %4598 = vst [vmem:[#allocation2 + $0x150] sm:$0xff] %v4588_v5  ;;  %v4353_v22 = vpop.f32.mrf.mxu2  ;;  %v5321_v14 = vor.u32 %v5320_v23, %v5317_v21  ;;  %v5421_v5 = vsel %vm843_vm7, %v5418_v52, %v5420_v16 }
 0x3ef   :  { %v4548_v13 = vpop.f32.mrf.mxu0  ;;  %v4372_v31 = vadd.f32 %v4353_v22, %v8298_v45  ;;  %v5313_v45 = vsel %vm721_vm6, %v5304_v37, %v5312_v24 }
 0x3f0   :  { %v4569_v50 = vadd.f32 %v4548_v13, %v4491_v25  ;;  %v5111_v25 = vrot.slane %v8311_v59, 2 }
 0x3f1   :  { %v4492_v63 = vadd.f32 %v4473_v8, %v4372_v31  ;;  %v8469_v31 = vld [vmem:[%s8571_s0 + $0x12c] sm:$0xff] }
 0x3f2   :  { %v4579_v0 = vadd.f32 %v8096_v41, %v4569_v50  ;;  %v4475_v30 = vpop.f32.mrf.mxu3  ;;  %v5112_v29 = vsel %vm527_vm4, %v5109_v32, %v5111_v25  ;;  %v5324_v50 = vshrl.u32 %v8443_v53, 16  ;;  %v5333_v23 = vshrl.u32 %v8469_v31, 16 }
 0x3f3   :  { %v8423_v11 = vpop.f32.mrf.mxu1 }
 0x3f4   :  { %v4589_v43 = vmax.f32 %v4579_v0, 0.0  ;;  %v5326_v37 = vrot.slane %v5324_v50, 2 }
 0x3f6   :  { %4599 = vst [vmem:[#allocation2 + $0x158] sm:$0xff] %v4589_v43  ;;  %v4355_v61 = vpop.f32.mrf.mxu2  ;;  %6139 = vmatmul.msk.bf16.vlgmr.msrb.gmra.mxu1 %vm104_vm1, %v5419_v62  ;;  %v5422_v62 = vrot.slane %v8443_v53, 3 }
 0x3f7   :  { %v4551_v47 = vpop.f32.mrf.mxu0  ;;  %6128 = vmatmul.msk.bf16.gmra.mxu3 %vm104_vm1, %v5223_v55  ;;  %v4373_v51 = vadd.f32 %v4355_v61, %v8304_v34  ;;  %v5226_v55 = vrot.slane %v8469_v31, 2 }
 0x3f8   :  { %v4570_v9 = vadd.f32 %v4551_v47, %v4492_v63 }
 0x3f9   :  { %v4493_v34 = vadd.f32 %v4475_v30, %v4373_v51  ;;  %v5227_v51 = vsel %vm527_vm4, %v5224_v42, %v5226_v55 }
 0x3fa   :  { %v4580_v4 = vadd.f32 %v8096_v41, %v4570_v9  ;;  %6133 = vmatmul.msk.bf16.vlgmr.msrb.gmra.mxu0 %vm104_vm1, %v5313_v45  ;;  %v4478_v44 = vpop.f32.mrf.mxu3 }
 0x3fb   :  { %v8437_v38 = vpop.f32.mrf.mxu1  ;;  %6106 = vmatmul.msk.bf16.gmra.mxu2 %vm104_vm1, %v5110_v28  ;;  %v5423_v28 = vsel %vm843_vm7, %v5420_v16, %v5422_v62 }
 0x3fc   :  { %v4590_v40 = vmax.f32 %v4580_v4, 0.0  ;;  %v5113_v4 = vrot.slane %v8334_v49, 2 }
 0x3fe   :  { %4600 = vst [vmem:[#allocation2 + $0x160] sm:$0xff] %v4590_v40  ;;  %v4358_v46 = vpop.f32.mrf.mxu2  ;;  %v5114_v53 = vsel %vm527_vm4, %v5111_v25, %v5113_v4  ;;  %v5424_v25 = vrot.slane %v8469_v31, 3 }
 0x3ff   :  { %v4553_v2 = vpop.f32.mrf.mxu0  ;;  %v4374_v26 = vadd.f32 %v4358_v46, %v8321_v6  ;;  %v5322_v6 = vsel %vm721_vm6, %v5312_v24, %v5321_v14  ;;  %v5329_v24 = vrot.slane %v5327_v33, 3  ;;  %v8491_v46 = vld [vmem:[%s8573_s2] ss:$0 sm:$0xff] }
 0x400   :  { %v4571_v57 = vadd.f32 %v4553_v2, %v4493_v34  ;;  %v5212_v34 = vunpack.c.l.b16 %v5189_v15  ;;  %v5425_v50 = vsel %vm843_vm7, %v5422_v62, %v5424_v25 }
 0x401   :  { %v4494_v22 = vadd.f32 %v4478_v44, %v4374_v26  ;;  %v5330_v47 = vor.u32 %v5329_v24, %v5326_v37 }
 0x402   :  { %v4581_v8 = vadd.f32 %v8096_v41, %v4571_v57  ;;  %v4480_v7 = vpop.f32.mrf.mxu3  ;;  %v5336_v57 = vshll.u32 %v8469_v31, 16 }
 0x403   :  { %v8449_v19 = vpop.f32.mrf.mxu1 }
 0x404   :  { %v4591_v35 = vmax.f32 %v4581_v8, 0.0 }
 0x406   :  { %4601 = vst [vmem:[#allocation2 + $0x168] sm:$0xff] %v4591_v35  ;;  %v4360_v17 = vpop.f32.mrf.mxu2  ;;  %6140 = vmatmul.msk.bf16.gmra.mxu1 %vm104_vm1, %v5421_v5  ;;  %v5338_v35 = vrot.slane %v5336_v57, 3 }
 0x407   :  { %v4556_v13 = vpop.f32.mrf.mxu0  ;;  %6129 = vmatmul.msk.bf16.gmra.mxu3 %vm104_vm1, %v5225_v27  ;;  %v4375_v20 = vadd.f32 %v4360_v17, %v8327_v1 }
 0x408   :  { %v4572_v18 = vadd.f32 %v4556_v13, %v4494_v22  ;;  %v5292_v22 = vld [vmem:[%s8571_s0 + $0x134] sm:$0x7]  ;;  %s6284_s0 = smov [#allocation2]  }
 0x409   :  { %v4495_v1 = vadd.f32 %v4480_v7, %v4375_v20  ;;  %v5295_v20 = vunpack.c.l.b16 %v5292_v22  ;;  %s5524_s22 = sshll.u32 %s6284_s0, 4  ;;  %s5525_s22 = int_to_ptr.vmem [resolvable:$true] %s5524_s22 }
 0x40a   :  { %v4582_v48 = vadd.f32 %v8096_v41, %v4572_v18  ;;  %6134 = vmatmul.msk.bf16.gmra.mxu0 %vm104_vm1, %v5322_v6  ;;  %v4483_v59 = vpop.f32.mrf.mxu3 }
 0x40b   :  { %v8463_v54 = vpop.f32.mrf.mxu1  ;;  %6107 = vmatmul.msk.bf16.gmra.mxu2 %vm104_vm1, %v5112_v29 }
 0x40c   :  { %v4592_v52 = vmax.f32 %v4582_v48, 0.0 }
 0x40e   :  { %4602 = vst [vmem:[#allocation2 + $0x170] sm:$0xff] %v4592_v52  ;;  %v4363_v0 = vpop.f32.mrf.mxu2 }
 0x40f   :  { %v4558_v30 = vpop.f32.mrf.mxu0  ;;  %v4376_v32 = vadd.f32 %v4363_v0, %v8344_v39  ;;  %v5296_v0 = vpack.c.b16 %v5295_v20, %v5295_v20 }
 0x410   :  { %v4573_v43 = vadd.f32 %v4558_v30, %v4495_v1 }
 0x411   :  { %v4496_v44 = vadd.f32 %v4483_v59, %v4376_v32  ;;  %v5345_v32 = vshll.u32 %v5296_v0, 16 }
 0x412   :  { %v4583_v63 = vadd.f32 %v8096_v41, %v4573_v43  ;;  %v4485_v61 = vpop.f32.mrf.mxu3  ;;  %v5331_v41 = vsel %vm721_vm6, %v5321_v14, %v5330_v47  ;;  %v5335_v14 = vrot.slane %v5333_v23, 2 }
 0x413   :  { %v8475_v9 = vpop.f32.mrf.mxu1 }
 0x414   :  { %v4593_v45 = vmax.f32 %v4583_v63, 0.0  ;;  %v5339_v29 = vor.u32 %v5338_v35, %v5335_v14 }
 0x416   :  { %4603 = vst [vmem:[#allocation2 + $0x178] sm:$0xff] %v4593_v45  ;;  %v4365_v39 = vpop.f32.mrf.mxu2  ;;  %6141 = vmatmul.msk.bf16.gmra.mxu1 %vm104_vm1, %v5423_v28  ;;  %v5340_v1 = vsel %vm721_vm6, %v5330_v47, %v5339_v29 }
 0x417   :  { %v4561_v60 = vpop.f32.mrf.mxu0  ;;  %6130 = vmatmul.msk.bf16.gmra.mxu3 %vm104_vm1, %v5227_v51  ;;  %v4377_v49 = vadd.f32 %v4365_v39, %v8353_v10  ;;  %v5218_v10 = vpack.c.b16 %v5212_v34, %v5212_v34 }
 0x418   :  { %v4574_v40 = vadd.f32 %v4561_v60, %v4496_v44  ;;  %v5426_v44 = vrot.slane %v5296_v0, 3 }
 0x419   :  { %v4497_v26 = vadd.f32 %v4485_v61, %v4377_v49  ;;  %v5228_v17 = vrot.slane %v5218_v10, 2 }
 0x41a   :  { %v4584_v2 = vadd.f32 %v8491_v46, %v4574_v40  ;;  %6135 = vmatmul.msk.bf16.gmra.mxu0 %vm104_vm1, %v5331_v41  ;;  %v4833_v21 = vpop.f32.mrf.mxu3  ;;  %v5427_v40 = vsel %vm843_vm7, %v5424_v25, %v5426_v44 }
 0x41b   :  { %v8497_v42 = vpop.f32.mrf.mxu1  ;;  %6108 = vmatmul.msk.bf16.gmra.mxu2 %vm104_vm1, %v5114_v53  ;;  %v5229_v33 = vsel %vm527_vm4, %v5226_v55, %v5228_v17  ;;  %v5342_v55 = vshrl.u32 %v5296_v0, 16 }
 0x41c   :  { %v4594_v16 = vmax.f32 %v4584_v2, 0.0 }
 0x41d   :  { %v5344_v45 = vrot.slane %v5342_v55, 2 }
 0x41e   :  { %4604 = vst [vmem:[#allocation2 + $0x180] sm:$0xff] %v4594_v16  ;;  %v4765_v7 = vpop.f32.mrf.mxu2 }
 0x41f   :  { %v4563_v8 = vpop.f32.mrf.mxu0  ;;  %v4766_v27 = vadd.f32 %v4765_v7, %v8356_v58  ;;  %v5115_v58 = vrot.slane %v8359_v3, 2 }
 0x420   :  { %v4575_v5 = vadd.f32 %v4563_v8, %v4497_v26 }
 0x421   :  { %v4858_v6 = vadd.f32 %v4833_v21, %v4766_v27  ;;  %v5116_v24 = vsel %vm527_vm4, %v5113_v4, %v5115_v58 }
 0x422   :  { %v4585_v13 = vadd.f32 %v8491_v46, %v4575_v5  ;;  %v4835_v18 = vpop.f32.mrf.mxu3 }
 0x423   :  { %v5066_v59 = vpop.f32.mrf.mxu1 }
 0x424   :  { %v4595_v48 = vmax.f32 %v4585_v13, 0.0 }
 0x426   :  { %4605 = vst [vmem:[#allocation2 + $0x188] sm:$0xff] %v4595_v48  ;;  %v4767_v52 = vpop.f32.mrf.mxu2  ;;  %6142 = vmatmul.msk.bf16.gmra.mxu1 %vm104_vm1, %v5425_v50 }
 0x427   :  { %v4946_v31 = vpop.f32.mrf.mxu0  ;;  %v4768_v30 = vadd.f32 %v4767_v52, %v8380_v12  ;;  %6131 = vmatmul.msk.bf16.gmra.mxu3 %vm104_vm1, %v5229_v33  ;;  %v5347_v12 = vrot.slane %v5345_v32, 3 }
 0x428   :  { %v4971_v37 = vadd.f32 %v4946_v31, %v4858_v6 }
 0x429   :  { %v4859_v43 = vadd.f32 %v4835_v18, %v4768_v30  ;;  %v5348_v60 = vor.u32 %v5347_v12, %v5344_v45 }
 0x42a   :  { %6136 = vmatmul.msk.bf16.gmra.mxu0 %vm104_vm1, %v5340_v1  ;;  %v8515_v62 = vadd.f32 %v5066_v59, %v4971_v37  ;;  %v4838_v3 = vpop.f32.mrf.mxu3 }
 0x42b   :  { %v5068_v63 = vpop.f32.mrf.mxu1  ;;  %6109 = vmatmul.msk.bf16.gmra.mxu2 %vm104_vm1, %v5116_v24  ;;  %v5349_v49 = vsel %vm721_vm6, %v5339_v29, %v5348_v60 }
 0x42e   :  { %v4770_v61 = vpop.f32.mrf.mxu2 }
 0x42f   :  { %v4948_v47 = vpop.f32.mrf.mxu0  ;;  %v4771_v28 = vadd.f32 %v4770_v61, %v8394_v36 }
 0x430   :  { %v4972_v51 = vadd.f32 %v4948_v47, %v4859_v43 }
 0x431   :  { %v4860_v4 = vadd.f32 %v4838_v3, %v4771_v28 }
 0x432   :  { %v8519_v15 = vadd.f32 %v5068_v63, %v4972_v51  ;;  %v4840_v39 = vpop.f32.mrf.mxu3 }
 0x433   :  { %v5071_v41 = vpop.f32.mrf.mxu1 }
 0x436   :  { %v4772_v53 = vpop.f32.mrf.mxu2  ;;  %6143 = vmatmul.msk.bf16.gmra.mxu1 %vm104_vm1, %v5427_v40 }
 0x437   :  { %v4951_v34 = vpop.f32.mrf.mxu0  ;;  %v4773_v2 = vadd.f32 %v4772_v53, %v8411_v56 }
 0x438   :  { %v4973_v21 = vadd.f32 %v4951_v34, %v4860_v4 }
 0x439   :  { %v4861_v36 = vadd.f32 %v4840_v39, %v4773_v2 }
 0x43a   :  { %6137 = vmatmul.msk.bf16.gmra.mxu0 %vm104_vm1, %v5349_v49  ;;  %v8526_v23 = vadd.f32 %v5071_v41, %v4973_v21  ;;  %v4843_v57 = vpop.f32.mrf.mxu3 }
 0x43b   :  { %v5073_v16 = vpop.f32.mrf.mxu1 }
 0x43e   :  { %v4775_v10 = vpop.f32.mrf.mxu2 }
 0x43f   :  { %v4953_v26 = vpop.f32.mrf.mxu0  ;;  %v4776_v8 = vadd.f32 %v4775_v10, %v8423_v11 }
 0x440   :  { %v4974_v7 = vadd.f32 %v4953_v26, %v4861_v36 }
 0x441   :  { %v4862_v14 = vadd.f32 %v4843_v57, %v4776_v8 }
 0x442   :  { %v8529_v35 = vadd.f32 %v5073_v16, %v4974_v7  ;;  %v4845_v5 = vpop.f32.mrf.mxu3 }
 0x443   :  { %v5076_v27 = vpop.f32.mrf.mxu1 }
 0x446   :  { %v4777_v25 = vpop.f32.mrf.mxu2 }
 0x447   :  { %v4956_v56 = vpop.f32.mrf.mxu0  ;;  %v4778_v22 = vadd.f32 %v4777_v25, %v8437_v38 }
 0x448   :  { %v4975_v17 = vadd.f32 %v4956_v56, %v4862_v14 }
 0x449   :  { %v4863_v13 = vadd.f32 %v4845_v5, %v4778_v22 }
 0x44a   :  { %v8532_v6 = vadd.f32 %v5076_v27, %v4975_v17  ;;  %v4848_v18 = vpop.f32.mrf.mxu3 }
 0x44b   :  { %v5078_v29 = vpop.f32.mrf.mxu1 }
 0x44e   :  { %v4780_v20 = vpop.f32.mrf.mxu2 }
 0x44f   :  { %v4958_v48 = vpop.f32.mrf.mxu0  ;;  %v4781_v11 = vadd.f32 %v4780_v20, %v8449_v19 }
 0x450   :  { %v4976_v59 = vadd.f32 %v4958_v48, %v4863_v13 }
 0x451   :  { %v4864_v50 = vadd.f32 %v4848_v18, %v4781_v11 }
 0x452   :  { %v8535_v33 = vadd.f32 %v5078_v29, %v4976_v59  ;;  %v4850_v58 = vpop.f32.mrf.mxu3 }
 0x453   :  { %v5081_v52 = vpop.f32.mrf.mxu1 }
 0x456   :  { %v4782_v31 = vpop.f32.mrf.mxu2 }
 0x457   :  { %v4961_v1 = vpop.f32.mrf.mxu0  ;;  %v4783_v38 = vadd.f32 %v4782_v31, %v8463_v54 }
 0x458   :  { %v4977_v0 = vadd.f32 %v4961_v1, %v4864_v50 }
 0x459   :  { %v4865_v30 = vadd.f32 %v4850_v58, %v4783_v38 }
 0x45a   :  { %v8538_v37 = vadd.f32 %v5081_v52, %v4977_v0  ;;  %v4853_v24 = vpop.f32.mrf.mxu3 }
 0x45b   :  { %v5083_v43 = vpop.f32.mrf.mxu1 }
 0x45e   :  { %v4785_v3 = vpop.f32.mrf.mxu2 }
 0x45f   :  { %v4963_v55 = vpop.f32.mrf.mxu0  ;;  %v4786_v19 = vadd.f32 %v4785_v3, %v8475_v9 }
 0x460   :  { %v4978_v32 = vadd.f32 %v4963_v55, %v4865_v30 }
 0x461   :  { %v4866_v63 = vadd.f32 %v4853_v24, %v4786_v19 }
 0x462   :  { %v8541_v61 = vadd.f32 %v5083_v43, %v4978_v32  ;;  %v4855_v47 = vpop.f32.mrf.mxu3 }
 0x463   :  { %v5086_v45 = vpop.f32.mrf.mxu1 }
 0x466   :  { %v4787_v12 = vpop.f32.mrf.mxu2 }
 0x467   :  { %v4966_v28 = vpop.f32.mrf.mxu0  ;;  %v4788_v54 = vadd.f32 %v4787_v12, %v8497_v42 }
 0x468   :  { %v4979_v51 = vadd.f32 %v4966_v28, %v4866_v63 }
 0x469   :  { %v4867_v44 = vadd.f32 %v4855_v47, %v4788_v54 }
 0x46a   :  { %v8544_v4 = vadd.f32 %v5086_v45, %v4979_v51  ;;  %v5257_v39 = vpop.f32.mrf.mxu3 }
 0x46b   :  { %v5088_v60 = vpop.f32.mrf.mxu1 }
 0x46e   :  { %v5144_v40 = vpop.f32.mrf.mxu2 }
 0x46f   :  { %v4968_v41 = vpop.f32.mrf.mxu0  ;;  %v5169_v9 = vadd.f32 %v5144_v40, %v8515_v62 }
 0x470   :  { %v4980_v53 = vadd.f32 %v4968_v41, %v4867_v44 }
 0x471   :  { %v5282_v21 = vadd.f32 %v5257_v39, %v5169_v9 }
 0x472   :  { %v8547_v34 = vadd.f32 %v5088_v60, %v4980_v53  ;;  %v5259_v49 = vpop.f32.mrf.mxu3 }
 0x473   :  { %v5455_v2 = vpop.f32.mrf.mxu1 }
 0x476   :  { %v5146_v36 = vpop.f32.mrf.mxu2 }
 0x477   :  { %v5377_v57 = vpop.f32.mrf.mxu0  ;;  %v5170_v42 = vadd.f32 %v5146_v36, %v8519_v15 }
 0x478   :  { %v5402_v16 = vadd.f32 %v5377_v57, %v5282_v21 }
 0x479   :  { %v5283_v5 = vadd.f32 %v5259_v49, %v5170_v42 }
 0x47a   :  { %v5480_v10 = vadd.f32 %v5455_v2, %v5402_v16  ;;  %v5262_v26 = vpop.f32.mrf.mxu3 }
 0x47b   :  { %v5457_v7 = vpop.f32.mrf.mxu1 }
 0x47c   :  { %v5490_v8 = vadd.f32 %v8491_v46, %v5480_v10 }
 0x47e   :  { %v5500_v14 = vmax.f32 %v5490_v8, 0.0  ;;  %v5149_v27 = vpop.f32.mrf.mxu2 }
 0x47f   :  { %v5379_v25 = vpop.f32.mrf.mxu0  ;;  %v5171_v56 = vadd.f32 %v5149_v27, %v8526_v23 }
 0x480   :  { %5510 = vst [vmem:[#allocation2 + $0x190] sm:$0xff] %v5500_v14  ;;  %v5403_v62 = vadd.f32 %v5379_v25, %v5283_v5 }
 0x481   :  { %v5284_v15 = vadd.f32 %v5262_v26, %v5171_v56 }
 0x482   :  { %v5481_v22 = vadd.f32 %v5457_v7, %v5403_v62  ;;  %v5264_v17 = vpop.f32.mrf.mxu3 }
 0x483   :  { %v5460_v18 = vpop.f32.mrf.mxu1 }
 0x484   :  { %v5491_v13 = vadd.f32 %v8491_v46, %v5481_v22 }
 0x486   :  { %v5501_v29 = vmax.f32 %v5491_v13, 0.0  ;;  %v5151_v20 = vpop.f32.mrf.mxu2 }
 0x487   :  { %v5382_v48 = vpop.f32.mrf.mxu0  ;;  %v5172_v59 = vadd.f32 %v5151_v20, %v8529_v35 }
 0x488   :  { %5511 = vst [vmem:[#allocation2 + $0x198] sm:$0xff] %v5501_v29  ;;  %v5404_v11 = vadd.f32 %v5382_v48, %v5284_v15 }
 0x489   :  { %v5285_v23 = vadd.f32 %v5264_v17, %v5172_v59 }
 0x48a   :  { %v5482_v50 = vadd.f32 %v5460_v18, %v5404_v11  ;;  %v5267_v58 = vpop.f32.mrf.mxu3 }
 0x48b   :  { %v5462_v31 = vpop.f32.mrf.mxu1 }
 0x48c   :  { %v5492_v52 = vadd.f32 %v8491_v46, %v5482_v50 }
 0x48e   :  { %v5502_v1 = vmax.f32 %v5492_v52, 0.0  ;;  %v5154_v38 = vpop.f32.mrf.mxu2 }
 0x48f   :  { %v5384_v0 = vpop.f32.mrf.mxu0  ;;  %v5173_v24 = vadd.f32 %v5154_v38, %v8532_v6 }
 0x490   :  { %5512 = vst [vmem:[#allocation2 + $0x1a0] sm:$0xff] %v5502_v1  ;;  %v5405_v30 = vadd.f32 %v5384_v0, %v5285_v23 }
 0x491   :  { %v5286_v35 = vadd.f32 %v5267_v58, %v5173_v24 }
 0x492   :  { %v5483_v43 = vadd.f32 %v5462_v31, %v5405_v30  ;;  %v5269_v19 = vpop.f32.mrf.mxu3 }
 0x493   :  { %v5465_v55 = vpop.f32.mrf.mxu1 }
 0x494   :  { %v5493_v3 = vadd.f32 %v8491_v46, %v5483_v43 }
 0x496   :  { %v5503_v32 = vmax.f32 %v5493_v3, 0.0  ;;  %v5156_v63 = vpop.f32.mrf.mxu2 }
 0x497   :  { %v5387_v47 = vpop.f32.mrf.mxu0  ;;  %v5174_v12 = vadd.f32 %v5156_v63, %v8535_v33 }
 0x498   :  { %5513 = vst [vmem:[#allocation2 + $0x1a8] sm:$0xff] %v5503_v32  ;;  %v5406_v45 = vadd.f32 %v5387_v47, %v5286_v35 }
 0x499   :  { %v5287_v6 = vadd.f32 %v5269_v19, %v5174_v12 }
 0x49a   :  { %v5484_v28 = vadd.f32 %v5465_v55, %v5406_v45  ;;  %v5272_v39 = vpop.f32.mrf.mxu3 }
 0x49b   :  { %v5467_v51 = vpop.f32.mrf.mxu1 }
 0x49c   :  { %v5494_v54 = vadd.f32 %v8491_v46, %v5484_v28 }
 0x49e   :  { %v5504_v44 = vmax.f32 %v5494_v54, 0.0  ;;  %v5159_v60 = vpop.f32.mrf.mxu2 }
 0x49f   :  { %v5389_v41 = vpop.f32.mrf.mxu0  ;;  %v5175_v53 = vadd.f32 %v5159_v60, %v8538_v37 }
 0x4a0   :  { %5514 = vst [vmem:[#allocation2 + $0x1b0] sm:$0xff] %v5504_v44  ;;  %v5407_v40 = vadd.f32 %v5389_v41, %v5287_v6 }
 0x4a1   :  { %v5288_v36 = vadd.f32 %v5272_v39, %v5175_v53 }
 0x4a2   :  { %v5485_v9 = vadd.f32 %v5467_v51, %v5407_v40  ;;  %v5274_v42 = vpop.f32.mrf.mxu3 }
 0x4a3   :  { %v5470_v2 = vpop.f32.mrf.mxu1 }
 0x4a4   :  { %v5495_v49 = vadd.f32 %v8491_v46, %v5485_v9 }
 0x4a6   :  { %v5505_v21 = vmax.f32 %v5495_v49, 0.0  ;;  %v5161_v33 = vpop.f32.mrf.mxu2 }
 0x4a7   :  { %v5392_v57 = vpop.f32.mrf.mxu0  ;;  %v5176_v10 = vadd.f32 %v5161_v33, %v8541_v61 }
 0x4a8   :  { %5515 = vst [vmem:[#allocation2 + $0x1b8] sm:$0xff] %v5505_v21  ;;  %v5408_v16 = vadd.f32 %v5392_v57, %v5288_v36 }
 0x4a9   :  { %v5289_v5 = vadd.f32 %v5274_v42, %v5176_v10 }
 0x4aa   :  { %v5486_v26 = vadd.f32 %v5470_v2, %v5408_v16  ;;  %v5277_v22 = vpop.f32.mrf.mxu3 }
 0x4ab   :  { %v5472_v7 = vpop.f32.mrf.mxu1 }
 0x4ac   :  { %v5496_v8 = vadd.f32 %v8491_v46, %v5486_v26 }
 0x4ae   :  { %v5506_v14 = vmax.f32 %v5496_v8, 0.0  ;;  %v5164_v37 = vpop.f32.mrf.mxu2 }
 0x4af   :  { %v5394_v27 = vpop.f32.mrf.mxu0  ;;  %v5177_v62 = vadd.f32 %v5164_v37, %v8544_v4 }
 0x4b0   :  { %5516 = vst [vmem:[#allocation2 + $0x1c0] sm:$0xff] %v5506_v14  ;;  %v5409_v25 = vadd.f32 %v5394_v27, %v5289_v5 }
 0x4b1   :  { %v5290_v29 = vadd.f32 %v5277_v22, %v5177_v62 }
 0x4b2   :  { %v5487_v56 = vadd.f32 %v5472_v7, %v5409_v25  ;;  %v5279_v50 = vpop.f32.mrf.mxu3 }
 0x4b3   :  { %v5475_v18 = vpop.f32.mrf.mxu1 }
 0x4b4   :  { %v5497_v17 = vadd.f32 %v8491_v46, %v5487_v56 }
 0x4b6   :  { %v5507_v13 = vmax.f32 %v5497_v17, 0.0  ;;  %v5166_v61 = vpop.f32.mrf.mxu2 }
 0x4b7   :  { %v5397_v15 = vpop.f32.mrf.mxu0  ;;  %v5178_v48 = vadd.f32 %v5166_v61, %v8547_v34 }
 0x4b8   :  { %5517 = vst [vmem:[#allocation2 + $0x1c8] sm:$0xff] %v5507_v13  ;;  %v5410_v20 = vadd.f32 %v5397_v15, %v5290_v29 }
 0x4b9   :  { %v5291_v52 = vadd.f32 %v5279_v50, %v5178_v48 }
 0x4ba   :  { %v5488_v11 = vadd.f32 %v5475_v18, %v5410_v20 }
 0x4bb   :  { %v5477_v1 = vpop.f32.mrf.mxu1 }
 0x4bc   :  { %v5498_v59 = vadd.f32 %v8491_v46, %v5488_v11 }
 0x4be   :  { %v5508_v58 = vmax.f32 %v5498_v59, 0.0 }
 0x4bf   :  { %v5399_v4 = vpop.f32.mrf.mxu0 }
 0x4c0   :  { %5518 = vst [vmem:[#allocation2 + $0x1d0] sm:$0xff] %v5508_v58  ;;  %v5411_v31 = vadd.f32 %v5399_v4, %v5291_v52 }
 0x4c2   :  { %v5489_v23 = vadd.f32 %v5477_v1, %v5411_v31 }
 0x4c4   :  { %v5499_v38 = vadd.f32 %v8491_v46, %v5489_v23 }
 0x4c6   :  { %v5509_v34 = vmax.f32 %v5499_v38, 0.0 }
 0x4c8   :  { %5519 = vst [vmem:[#allocation2 + $0x1d8] sm:$0xff] %v5509_v34 }
 0x4c9   :  { %5532 = dma.vmem_to_hbm [thread:$0]  %s5525_s22, 7680, %s5527_s25, [#allocation3], %s6285_s26, %s6285_s26, %s6286_s27  }
 0x4ca   :  { %6282 = dma.done.wait [#allocation3], 7680  }
 0x4cb   :  { %6283 = vsyncadd [#allocation3], 4294959616 }
 0x4cc   :  { %5537 = vsyncpa [#allocation3], 1 }

</bundles_post_ra>
